<compile_context>
chip_gen: v6e
topology: v6e:2x2x1
jax: 0.10.0
libtpu: 0.0.40
codegen_flags: <defaults>
</compile_context>

<pallas_src>
import jax
import jax.numpy as jnp
from jax.experimental import pallas as pl
from jax.experimental.pallas import tpu as pltpu

# ---- hyper-parameters (mirror the module's params dict) --------------------
B = 8              # batch (packed onto sublanes: 8 sequences per call)
L = 16             # look_back (sequence length)
F = 4              # features_num (= GRU input size = GRU hidden size)
NL = 2             # GRU num_layers
P = 8              # predict_steps
GX = 3 * F         # packed gate width: [r_half | z_half | n]
RPL = 2 * F + 2    # param-slab rows per GRU layer: F wi + 1 bi + F wh + 1 bh
FC_BASE = NL * RPL
PAR_ROWS = ((FC_BASE + F + 1 + 7) // 8) * 8
OUT_PAD = 128      # lane-dense padded output width (sliced to P in the wrapper)


def _mac_tree(cols, rows, bias_b):
    """sum_f cols[f] * rows[f] + bias, tree-reduced (short dependent chain)."""
    terms = [c * r for c, r in zip(cols, rows)]
    while len(terms) > 1:
        nxt = [terms[i] + terms[i + 1] for i in range(0, len(terms) - 1, 2)]
        if len(terms) % 2:
            nxt.append(terms[-1])
        terms = nxt
    return bias_b + terms[0]


def _gru_step(h, gi, wh_rows, bh_b):
    """One GRU cell update.

    gi columns: [0.5*(W_ir x + b_ir + b_hr) | 0.5*(W_iz x + b_iz + b_hz) | W_in x + b_in]
    wh/bh columns (half-scaled): [0.5*W_hr | 0.5*W_hz | 0.5*W_hn] / [0 | 0 | 0.5*b_hn]
    """
    hcols = [h[:, f:f + 1] for f in range(F)]
    hp = _mac_tree(hcols, wh_rows, bh_b)              # (B, GX), half-scaled r/z/n_h
    pre_rz = gi[:, 0:2 * F] + hp[:, 0:2 * F]
    rz = jnp.tanh(pre_rz)                             # one EUP op covers both r and z
    rt = rz[:, 0:F]
    zt = rz[:, F:2 * F]
    ghn = hp[:, 2 * F:3 * F]                          # 0.5*(W_hn h + b_hn)
    # n = tanh(W_in x + b_in + sigmoid(r)*(W_hn h + b_hn)); sigmoid folded via 0.5 scaling
    n = jnp.tanh(gi[:, 2 * F:3 * F] + ghn + rt * ghn)
    z = 0.5 * zt + 0.5                                # sigmoid(z_pre), off n's chain
    return n + z * (h - n)                            # == (1-z)*n + z*h


def gru_kernel(x_ref, par_ref, out_ref):
    # x_ref:   (L*B, F) time-major rows (row t*B + b == x[b, t, :])
    # par_ref: (PAR_ROWS, 128) packed weights/biases (see build_param_slab)

    # ---- hoisted per-layer weight-row / bias sublane-broadcasts -------------
    wi_rows, bi_b, wh_rows, bh_b = [], [], [], []
    for l in range(NL):
        base = l * RPL
        wi_rows.append([jnp.broadcast_to(par_ref[base + f:base + f + 1, 0:GX], (B, GX))
                        for f in range(F)])
        bi_b.append(jnp.broadcast_to(par_ref[base + F:base + F + 1, 0:GX], (B, GX)))
        wh_rows.append([jnp.broadcast_to(par_ref[base + F + 1 + f:base + F + 2 + f, 0:GX],
                                         (B, GX)) for f in range(F)])
        bh_b.append(jnp.broadcast_to(par_ref[base + 2 * F + 1:base + 2 * F + 2, 0:GX],
                                     (B, GX)))

    # ---- layer-0 input-gate preactivations for ALL timesteps ----------------
    # Depends only on x (ref loads) and weights -> entirely off the serial
    # recurrence chain; the scheduler is free to overlap it with the recurrence.
    gi0 = []
    for t in range(L):
        xt = x_ref[t * B:(t + 1) * B, :]              # (B, F), aligned sublane-tile load
        xcols = [xt[:, f:f + 1] for f in range(F)]
        gi0.append(_mac_tree(xcols, wi_rows[0], bi_b[0]))

    # ---- skewed (wavefront) recurrence over time x layers -------------------
    hs = [jnp.zeros((B, F), jnp.float32) for _ in range(NL)]
    for t in range(L):
        gi = gi0[t]
        for l in range(NL):
            hs[l] = _gru_step(hs[l], gi, wh_rows[l], bh_b[l])
            if l + 1 < NL:
                # next layer's input-gate preactivation from the fresh h_{l,t}
                hcols = [hs[l][:, f:f + 1] for f in range(F)]
                gi = _mac_tree(hcols, wi_rows[l + 1], bi_b[l + 1])
        # nn.GRU inter-layer dropout is training-only; identity in eval (not applied).
    h_last = hs[NL - 1]                               # == out[:, -1, :]

    # ---- fc: F broadcast-MACs onto a lane-dense (B, 128) slab ---------------
    fb = jnp.broadcast_to(par_ref[FC_BASE + F:FC_BASE + F + 1, :], (B, OUT_PAD))
    fw_rows = [jnp.broadcast_to(par_ref[FC_BASE + f:FC_BASE + f + 1, :], (B, OUT_PAD))
               for f in range(F)]
    hcols = [h_last[:, f:f + 1] for f in range(F)]
    out_ref[...] = _mac_tree(hcols, fw_rows, fb)      # single unmasked lane-dense store


def gru_forward(x, par_slab):
    """x: (B, L, F) batch_first -> (B, P)."""
    x_tm = jnp.transpose(x, (1, 0, 2)).reshape(L * B, F)   # time-major rows (layout plumbing)
    vmem = pltpu.MemorySpace.VMEM
    out_pad = pl.pallas_call(
        gru_kernel,
        out_shape=jax.ShapeDtypeStruct((B, OUT_PAD), jnp.float32),
        in_specs=[pl.BlockSpec(memory_space=vmem)] * 2,
        out_specs=pl.BlockSpec(memory_space=vmem),
    )(x_tm, par_slab)
    return out_pad[:, :P]                             # slice padded lanes in the wrapper


def build_param_slab(w_ih, w_hh, b_ih, b_hh, fc_w, fc_b):
    """Host-side repack of PyTorch GRU + Linear params into one (PAR_ROWS, 128) slab.

    Per layer (RPL = 2F+2 rows, lanes 0:GX used):
      rows 0..F-1 : wi_cat = [0.5*W_ir.T | 0.5*W_iz.T | W_in.T]
      row  F      : bi_cat = [0.5*(b_ir+b_hr) | 0.5*(b_iz+b_hz) | b_in]
      rows F+1..2F: wh_cat = [0.5*W_hr.T | 0.5*W_hz.T | 0.5*W_hn.T]
      row  2F+1   : bh_cat = [0 | 0 | 0.5*b_hn]
    Then F rows of fc_w.T (lanes 0:P) and one row of fc_b (lanes 0:P); lanes
    [P:128] stay zero so the kernel's padded output lanes are zero.
    """
    slab = jnp.zeros((PAR_ROWS, OUT_PAD), jnp.float32)
    for l in range(NL):
        wi, wh = w_ih[l], w_hh[l]                     # (3F, F), gate order [r, z, n]
        bi, bh = b_ih[l], b_hh[l]
        wi_cat = jnp.concatenate(
            [0.5 * wi[0:F].T, 0.5 * wi[F:2 * F].T, wi[2 * F:3 * F].T], axis=1)
        bi_cat = jnp.concatenate(
            [0.5 * (bi[0:2 * F] + bh[0:2 * F]), bi[2 * F:3 * F]])
        wh_cat = jnp.concatenate(
            [0.5 * wh[0:F].T, 0.5 * wh[F:2 * F].T, 0.5 * wh[2 * F:3 * F].T], axis=1)
        bh_cat = jnp.concatenate(
            [jnp.zeros((2 * F,), jnp.float32), 0.5 * bh[2 * F:3 * F]])
        base = l * RPL
        slab = slab.at[base:base + F, 0:GX].set(wi_cat)
        slab = slab.at[base + F, 0:GX].set(bi_cat)
        slab = slab.at[base + F + 1:base + 2 * F + 1, 0:GX].set(wh_cat)
        slab = slab.at[base + 2 * F + 1, 0:GX].set(bh_cat)
    slab = slab.at[FC_BASE:FC_BASE + F, 0:P].set(fc_w.T)
    slab = slab.at[FC_BASE + F, 0:P].set(fc_b)
    return slab


def reference_forward(x, w_ih, w_hh, b_ih, b_hh, fc_w, fc_b):
    """Pure-JAX reference matching torch.nn.GRU (batch_first, eval) + Linear."""
    seq = x
    for l in range(NL):
        h = jnp.zeros((x.shape[0], F), jnp.float32)
        outs = []
        for t in range(L):
            xt = seq[:, t, :]
            gi = xt @ w_ih[l].T + b_ih[l]
            gh = h @ w_hh[l].T + b_hh[l]
            r = jax.nn.sigmoid(gi[:, 0:F] + gh[:, 0:F])
            z = jax.nn.sigmoid(gi[:, F:2 * F] + gh[:, F:2 * F])
            n = jnp.tanh(gi[:, 2 * F:] + r * gh[:, 2 * F:])
            h = (1.0 - z) * n + z * h
            outs.append(h)
        seq = jnp.stack(outs, axis=1)
    return seq[:, -1, :] @ fc_w.T + fc_b


if __name__ == "__main__":
    key = jax.random.PRNGKey(0)
    ks = jax.random.split(key, 7)

    # Deterministic synthetic parameters (shapes follow nn.GRU / nn.Linear).
    w_ih = jax.random.normal(ks[0], (NL, 3 * F, F), jnp.float32) * 0.4   # weight_ih_l{k}
    w_hh = jax.random.normal(ks[1], (NL, 3 * F, F), jnp.float32) * 0.4   # weight_hh_l{k}
    b_ih = jax.random.normal(ks[2], (NL, 3 * F), jnp.float32) * 0.1      # bias_ih_l{k}
    b_hh = jax.random.normal(ks[3], (NL, 3 * F), jnp.float32) * 0.1      # bias_hh_l{k}
    fc_w = jax.random.normal(ks[4], (P, F), jnp.float32) * 0.3           # Linear weight (out, in)
    fc_b = jax.random.normal(ks[5], (P,), jnp.float32) * 0.1             # Linear bias
    x = jax.random.normal(ks[6], (B, L, F), jnp.float32)

    par_slab = build_param_slab(w_ih, w_hh, b_ih, b_hh, fc_w, fc_b)

    out = gru_forward(x, par_slab)
    out = jax.block_until_ready(out)

    ref = reference_forward(x, w_ih, w_hh, b_ih, b_hh, fc_w, fc_b)
    err = float(jnp.max(jnp.abs(out - ref)))
    assert out.shape == (B, P), out.shape
    assert err < 5e-5, f"max abs error vs reference: {err}"
    print("KERNEL_OK")
</pallas_src>

<mosaic_0001>
module attributes {stable_mosaic.version = 11 : i64} {
  func.func @gru_kernel(%arg0: memref<128x4xf32, #tpu.memory_space<vmem>>, %arg1: memref<32x128xf32, #tpu.memory_space<vmem>>, %arg2: memref<8x128xf32, #tpu.memory_space<vmem>>) attributes {dimension_semantics = [], scalar_prefetch = 0 : i64, scratch_operands = 0 : i64, tpu.core_type = #tpu.core_type<tc>} {
    %c0 = arith.constant 0 : index
    %c0_0 = arith.constant 0 : index
    %0 = vector.load %arg1[%c0, %c0_0] : memref<32x128xf32, #tpu.memory_space<vmem>>, vector<1x12xf32>
    %1 = vector.shape_cast %0 : vector<1x12xf32> to vector<1x12xf32>
    %2 = vector.broadcast %1 : vector<1x12xf32> to vector<8x12xf32>
    %c1 = arith.constant 1 : index
    %c0_1 = arith.constant 0 : index
    %3 = vector.load %arg1[%c1, %c0_1] : memref<32x128xf32, #tpu.memory_space<vmem>>, vector<1x12xf32>
    %4 = vector.shape_cast %3 : vector<1x12xf32> to vector<1x12xf32>
    %5 = vector.broadcast %4 : vector<1x12xf32> to vector<8x12xf32>
    %c2 = arith.constant 2 : index
    %c0_2 = arith.constant 0 : index
    %6 = vector.load %arg1[%c2, %c0_2] : memref<32x128xf32, #tpu.memory_space<vmem>>, vector<1x12xf32>
    %7 = vector.shape_cast %6 : vector<1x12xf32> to vector<1x12xf32>
    %8 = vector.broadcast %7 : vector<1x12xf32> to vector<8x12xf32>
    %c3 = arith.constant 3 : index
    %c0_3 = arith.constant 0 : index
    %9 = vector.load %arg1[%c3, %c0_3] : memref<32x128xf32, #tpu.memory_space<vmem>>, vector<1x12xf32>
    %10 = vector.shape_cast %9 : vector<1x12xf32> to vector<1x12xf32>
    %11 = vector.broadcast %10 : vector<1x12xf32> to vector<8x12xf32>
    %c4 = arith.constant 4 : index
    %c0_4 = arith.constant 0 : index
    %12 = vector.load %arg1[%c4, %c0_4] : memref<32x128xf32, #tpu.memory_space<vmem>>, vector<1x12xf32>
    %13 = vector.shape_cast %12 : vector<1x12xf32> to vector<1x12xf32>
    %14 = vector.broadcast %13 : vector<1x12xf32> to vector<8x12xf32>
    %c5 = arith.constant 5 : index
    %c0_5 = arith.constant 0 : index
    %15 = vector.load %arg1[%c5, %c0_5] : memref<32x128xf32, #tpu.memory_space<vmem>>, vector<1x12xf32>
    %16 = vector.shape_cast %15 : vector<1x12xf32> to vector<1x12xf32>
    %17 = vector.broadcast %16 : vector<1x12xf32> to vector<8x12xf32>
    %c6 = arith.constant 6 : index
    %c0_6 = arith.constant 0 : index
    %18 = vector.load %arg1[%c6, %c0_6] : memref<32x128xf32, #tpu.memory_space<vmem>>, vector<1x12xf32>
    %19 = vector.shape_cast %18 : vector<1x12xf32> to vector<1x12xf32>
    %20 = vector.broadcast %19 : vector<1x12xf32> to vector<8x12xf32>
    %c7 = arith.constant 7 : index
    %c0_7 = arith.constant 0 : index
    %21 = vector.load %arg1[%c7, %c0_7] : memref<32x128xf32, #tpu.memory_space<vmem>>, vector<1x12xf32>
    %22 = vector.shape_cast %21 : vector<1x12xf32> to vector<1x12xf32>
    %23 = vector.broadcast %22 : vector<1x12xf32> to vector<8x12xf32>
    %c8 = arith.constant 8 : index
    %c0_8 = arith.constant 0 : index
    %24 = vector.load %arg1[%c8, %c0_8] : memref<32x128xf32, #tpu.memory_space<vmem>>, vector<1x12xf32>
    %25 = vector.shape_cast %24 : vector<1x12xf32> to vector<1x12xf32>
    %26 = vector.broadcast %25 : vector<1x12xf32> to vector<8x12xf32>
    %c9 = arith.constant 9 : index
    %c0_9 = arith.constant 0 : index
    %27 = vector.load %arg1[%c9, %c0_9] : memref<32x128xf32, #tpu.memory_space<vmem>>, vector<1x12xf32>
    %28 = vector.shape_cast %27 : vector<1x12xf32> to vector<1x12xf32>
    %29 = vector.broadcast %28 : vector<1x12xf32> to vector<8x12xf32>
    %c10 = arith.constant 10 : index
    %c0_10 = arith.constant 0 : index
    %30 = vector.load %arg1[%c10, %c0_10] : memref<32x128xf32, #tpu.memory_space<vmem>>, vector<1x12xf32>
    %31 = vector.shape_cast %30 : vector<1x12xf32> to vector<1x12xf32>
    %32 = vector.broadcast %31 : vector<1x12xf32> to vector<8x12xf32>
    %c11 = arith.constant 11 : index
    %c0_11 = arith.constant 0 : index
    %33 = vector.load %arg1[%c11, %c0_11] : memref<32x128xf32, #tpu.memory_space<vmem>>, vector<1x12xf32>
    %34 = vector.shape_cast %33 : vector<1x12xf32> to vector<1x12xf32>
    %35 = vector.broadcast %34 : vector<1x12xf32> to vector<8x12xf32>
    %c12 = arith.constant 12 : index
    %c0_12 = arith.constant 0 : index
    %36 = vector.load %arg1[%c12, %c0_12] : memref<32x128xf32, #tpu.memory_space<vmem>>, vector<1x12xf32>
    %37 = vector.shape_cast %36 : vector<1x12xf32> to vector<1x12xf32>
    %38 = vector.broadcast %37 : vector<1x12xf32> to vector<8x12xf32>
    %c13 = arith.constant 13 : index
    %c0_13 = arith.constant 0 : index
    %39 = vector.load %arg1[%c13, %c0_13] : memref<32x128xf32, #tpu.memory_space<vmem>>, vector<1x12xf32>
    %40 = vector.shape_cast %39 : vector<1x12xf32> to vector<1x12xf32>
    %41 = vector.broadcast %40 : vector<1x12xf32> to vector<8x12xf32>
    %c14 = arith.constant 14 : index
    %c0_14 = arith.constant 0 : index
    %42 = vector.load %arg1[%c14, %c0_14] : memref<32x128xf32, #tpu.memory_space<vmem>>, vector<1x12xf32>
    %43 = vector.shape_cast %42 : vector<1x12xf32> to vector<1x12xf32>
    %44 = vector.broadcast %43 : vector<1x12xf32> to vector<8x12xf32>
    %c15 = arith.constant 15 : index
    %c0_15 = arith.constant 0 : index
    %45 = vector.load %arg1[%c15, %c0_15] : memref<32x128xf32, #tpu.memory_space<vmem>>, vector<1x12xf32>
    %46 = vector.shape_cast %45 : vector<1x12xf32> to vector<1x12xf32>
    %47 = vector.broadcast %46 : vector<1x12xf32> to vector<8x12xf32>
    %c16 = arith.constant 16 : index
    %c0_16 = arith.constant 0 : index
    %48 = vector.load %arg1[%c16, %c0_16] : memref<32x128xf32, #tpu.memory_space<vmem>>, vector<1x12xf32>
    %49 = vector.shape_cast %48 : vector<1x12xf32> to vector<1x12xf32>
    %50 = vector.broadcast %49 : vector<1x12xf32> to vector<8x12xf32>
    %c17 = arith.constant 17 : index
    %c0_17 = arith.constant 0 : index
    %51 = vector.load %arg1[%c17, %c0_17] : memref<32x128xf32, #tpu.memory_space<vmem>>, vector<1x12xf32>
    %52 = vector.shape_cast %51 : vector<1x12xf32> to vector<1x12xf32>
    %53 = vector.broadcast %52 : vector<1x12xf32> to vector<8x12xf32>
    %c18 = arith.constant 18 : index
    %c0_18 = arith.constant 0 : index
    %54 = vector.load %arg1[%c18, %c0_18] : memref<32x128xf32, #tpu.memory_space<vmem>>, vector<1x12xf32>
    %55 = vector.shape_cast %54 : vector<1x12xf32> to vector<1x12xf32>
    %56 = vector.broadcast %55 : vector<1x12xf32> to vector<8x12xf32>
    %c19 = arith.constant 19 : index
    %c0_19 = arith.constant 0 : index
    %57 = vector.load %arg1[%c19, %c0_19] : memref<32x128xf32, #tpu.memory_space<vmem>>, vector<1x12xf32>
    %58 = vector.shape_cast %57 : vector<1x12xf32> to vector<1x12xf32>
    %59 = vector.broadcast %58 : vector<1x12xf32> to vector<8x12xf32>
    %c0_20 = arith.constant 0 : index
    %c0_21 = arith.constant 0 : index
    %60 = vector.load %arg0[%c0_20, %c0_21] : memref<128x4xf32, #tpu.memory_space<vmem>>, vector<8x4xf32>
    %61 = vector.extract_strided_slice %60 {offsets = [0, 0], sizes = [8, 1], strides = [1, 1]} : vector<8x4xf32> to vector<8x1xf32>
    %62 = vector.extract_strided_slice %60 {offsets = [0, 1], sizes = [8, 1], strides = [1, 1]} : vector<8x4xf32> to vector<8x1xf32>
    %63 = vector.extract_strided_slice %60 {offsets = [0, 2], sizes = [8, 1], strides = [1, 1]} : vector<8x4xf32> to vector<8x1xf32>
    %64 = vector.extract_strided_slice %60 {offsets = [0, 3], sizes = [8, 1], strides = [1, 1]} : vector<8x4xf32> to vector<8x1xf32>
    %65 = vector.broadcast %61 : vector<8x1xf32> to vector<8x12xf32>
    %66 = arith.mulf %65, %2 : vector<8x12xf32>
    %67 = vector.broadcast %62 : vector<8x1xf32> to vector<8x12xf32>
    %68 = arith.mulf %67, %5 : vector<8x12xf32>
    %69 = vector.broadcast %63 : vector<8x1xf32> to vector<8x12xf32>
    %70 = arith.mulf %69, %8 : vector<8x12xf32>
    %71 = vector.broadcast %64 : vector<8x1xf32> to vector<8x12xf32>
    %72 = arith.mulf %71, %11 : vector<8x12xf32>
    %73 = arith.addf %66, %68 : vector<8x12xf32>
    %74 = arith.addf %70, %72 : vector<8x12xf32>
    %75 = arith.addf %73, %74 : vector<8x12xf32>
    %76 = arith.addf %14, %75 : vector<8x12xf32>
    %c8_22 = arith.constant 8 : index
    %c0_23 = arith.constant 0 : index
    %77 = vector.load %arg0[%c8_22, %c0_23] : memref<128x4xf32, #tpu.memory_space<vmem>>, vector<8x4xf32>
    %78 = vector.extract_strided_slice %77 {offsets = [0, 0], sizes = [8, 1], strides = [1, 1]} : vector<8x4xf32> to vector<8x1xf32>
    %79 = vector.extract_strided_slice %77 {offsets = [0, 1], sizes = [8, 1], strides = [1, 1]} : vector<8x4xf32> to vector<8x1xf32>
    %80 = vector.extract_strided_slice %77 {offsets = [0, 2], sizes = [8, 1], strides = [1, 1]} : vector<8x4xf32> to vector<8x1xf32>
    %81 = vector.extract_strided_slice %77 {offsets = [0, 3], sizes = [8, 1], strides = [1, 1]} : vector<8x4xf32> to vector<8x1xf32>
    %82 = vector.broadcast %78 : vector<8x1xf32> to vector<8x12xf32>
    %83 = arith.mulf %82, %2 : vector<8x12xf32>
    %84 = vector.broadcast %79 : vector<8x1xf32> to vector<8x12xf32>
    %85 = arith.mulf %84, %5 : vector<8x12xf32>
    %86 = vector.broadcast %80 : vector<8x1xf32> to vector<8x12xf32>
    %87 = arith.mulf %86, %8 : vector<8x12xf32>
    %88 = vector.broadcast %81 : vector<8x1xf32> to vector<8x12xf32>
    %89 = arith.mulf %88, %11 : vector<8x12xf32>
    %90 = arith.addf %83, %85 : vector<8x12xf32>
    %91 = arith.addf %87, %89 : vector<8x12xf32>
    %92 = arith.addf %90, %91 : vector<8x12xf32>
    %93 = arith.addf %14, %92 : vector<8x12xf32>
    %c16_24 = arith.constant 16 : index
    %c0_25 = arith.constant 0 : index
    %94 = vector.load %arg0[%c16_24, %c0_25] : memref<128x4xf32, #tpu.memory_space<vmem>>, vector<8x4xf32>
    %95 = vector.extract_strided_slice %94 {offsets = [0, 0], sizes = [8, 1], strides = [1, 1]} : vector<8x4xf32> to vector<8x1xf32>
    %96 = vector.extract_strided_slice %94 {offsets = [0, 1], sizes = [8, 1], strides = [1, 1]} : vector<8x4xf32> to vector<8x1xf32>
    %97 = vector.extract_strided_slice %94 {offsets = [0, 2], sizes = [8, 1], strides = [1, 1]} : vector<8x4xf32> to vector<8x1xf32>
    %98 = vector.extract_strided_slice %94 {offsets = [0, 3], sizes = [8, 1], strides = [1, 1]} : vector<8x4xf32> to vector<8x1xf32>
    %99 = vector.broadcast %95 : vector<8x1xf32> to vector<8x12xf32>
    %100 = arith.mulf %99, %2 : vector<8x12xf32>
    %101 = vector.broadcast %96 : vector<8x1xf32> to vector<8x12xf32>
    %102 = arith.mulf %101, %5 : vector<8x12xf32>
    %103 = vector.broadcast %97 : vector<8x1xf32> to vector<8x12xf32>
    %104 = arith.mulf %103, %8 : vector<8x12xf32>
    %105 = vector.broadcast %98 : vector<8x1xf32> to vector<8x12xf32>
    %106 = arith.mulf %105, %11 : vector<8x12xf32>
    %107 = arith.addf %100, %102 : vector<8x12xf32>
    %108 = arith.addf %104, %106 : vector<8x12xf32>
    %109 = arith.addf %107, %108 : vector<8x12xf32>
    %110 = arith.addf %14, %109 : vector<8x12xf32>
    %c24 = arith.constant 24 : index
    %c0_26 = arith.constant 0 : index
    %111 = vector.load %arg0[%c24, %c0_26] : memref<128x4xf32, #tpu.memory_space<vmem>>, vector<8x4xf32>
    %112 = vector.extract_strided_slice %111 {offsets = [0, 0], sizes = [8, 1], strides = [1, 1]} : vector<8x4xf32> to vector<8x1xf32>
    %113 = vector.extract_strided_slice %111 {offsets = [0, 1], sizes = [8, 1], strides = [1, 1]} : vector<8x4xf32> to vector<8x1xf32>
    %114 = vector.extract_strided_slice %111 {offsets = [0, 2], sizes = [8, 1], strides = [1, 1]} : vector<8x4xf32> to vector<8x1xf32>
    %115 = vector.extract_strided_slice %111 {offsets = [0, 3], sizes = [8, 1], strides = [1, 1]} : vector<8x4xf32> to vector<8x1xf32>
    %116 = vector.broadcast %112 : vector<8x1xf32> to vector<8x12xf32>
    %117 = arith.mulf %116, %2 : vector<8x12xf32>
    %118 = vector.broadcast %113 : vector<8x1xf32> to vector<8x12xf32>
    %119 = arith.mulf %118, %5 : vector<8x12xf32>
    %120 = vector.broadcast %114 : vector<8x1xf32> to vector<8x12xf32>
    %121 = arith.mulf %120, %8 : vector<8x12xf32>
    %122 = vector.broadcast %115 : vector<8x1xf32> to vector<8x12xf32>
    %123 = arith.mulf %122, %11 : vector<8x12xf32>
    %124 = arith.addf %117, %119 : vector<8x12xf32>
    %125 = arith.addf %121, %123 : vector<8x12xf32>
    %126 = arith.addf %124, %125 : vector<8x12xf32>
    %127 = arith.addf %14, %126 : vector<8x12xf32>
    %c32 = arith.constant 32 : index
    %c0_27 = arith.constant 0 : index
    %128 = vector.load %arg0[%c32, %c0_27] : memref<128x4xf32, #tpu.memory_space<vmem>>, vector<8x4xf32>
    %129 = vector.extract_strided_slice %128 {offsets = [0, 0], sizes = [8, 1], strides = [1, 1]} : vector<8x4xf32> to vector<8x1xf32>
    %130 = vector.extract_strided_slice %128 {offsets = [0, 1], sizes = [8, 1], strides = [1, 1]} : vector<8x4xf32> to vector<8x1xf32>
    %131 = vector.extract_strided_slice %128 {offsets = [0, 2], sizes = [8, 1], strides = [1, 1]} : vector<8x4xf32> to vector<8x1xf32>
    %132 = vector.extract_strided_slice %128 {offsets = [0, 3], sizes = [8, 1], strides = [1, 1]} : vector<8x4xf32> to vector<8x1xf32>
    %133 = vector.broadcast %129 : vector<8x1xf32> to vector<8x12xf32>
    %134 = arith.mulf %133, %2 : vector<8x12xf32>
    %135 = vector.broadcast %130 : vector<8x1xf32> to vector<8x12xf32>
    %136 = arith.mulf %135, %5 : vector<8x12xf32>
    %137 = vector.broadcast %131 : vector<8x1xf32> to vector<8x12xf32>
    %138 = arith.mulf %137, %8 : vector<8x12xf32>
    %139 = vector.broadcast %132 : vector<8x1xf32> to vector<8x12xf32>
    %140 = arith.mulf %139, %11 : vector<8x12xf32>
    %141 = arith.addf %134, %136 : vector<8x12xf32>
    %142 = arith.addf %138, %140 : vector<8x12xf32>
    %143 = arith.addf %141, %142 : vector<8x12xf32>
    %144 = arith.addf %14, %143 : vector<8x12xf32>
    %c40 = arith.constant 40 : index
    %c0_28 = arith.constant 0 : index
    %145 = vector.load %arg0[%c40, %c0_28] : memref<128x4xf32, #tpu.memory_space<vmem>>, vector<8x4xf32>
    %146 = vector.extract_strided_slice %145 {offsets = [0, 0], sizes = [8, 1], strides = [1, 1]} : vector<8x4xf32> to vector<8x1xf32>
    %147 = vector.extract_strided_slice %145 {offsets = [0, 1], sizes = [8, 1], strides = [1, 1]} : vector<8x4xf32> to vector<8x1xf32>
    %148 = vector.extract_strided_slice %145 {offsets = [0, 2], sizes = [8, 1], strides = [1, 1]} : vector<8x4xf32> to vector<8x1xf32>
    %149 = vector.extract_strided_slice %145 {offsets = [0, 3], sizes = [8, 1], strides = [1, 1]} : vector<8x4xf32> to vector<8x1xf32>
    %150 = vector.broadcast %146 : vector<8x1xf32> to vector<8x12xf32>
    %151 = arith.mulf %150, %2 : vector<8x12xf32>
    %152 = vector.broadcast %147 : vector<8x1xf32> to vector<8x12xf32>
    %153 = arith.mulf %152, %5 : vector<8x12xf32>
    %154 = vector.broadcast %148 : vector<8x1xf32> to vector<8x12xf32>
    %155 = arith.mulf %154, %8 : vector<8x12xf32>
    %156 = vector.broadcast %149 : vector<8x1xf32> to vector<8x12xf32>
    %157 = arith.mulf %156, %11 : vector<8x12xf32>
    %158 = arith.addf %151, %153 : vector<8x12xf32>
    %159 = arith.addf %155, %157 : vector<8x12xf32>
    %160 = arith.addf %158, %159 : vector<8x12xf32>
    %161 = arith.addf %14, %160 : vector<8x12xf32>
    %c48 = arith.constant 48 : index
    %c0_29 = arith.constant 0 : index
    %162 = vector.load %arg0[%c48, %c0_29] : memref<128x4xf32, #tpu.memory_space<vmem>>, vector<8x4xf32>
    %163 = vector.extract_strided_slice %162 {offsets = [0, 0], sizes = [8, 1], strides = [1, 1]} : vector<8x4xf32> to vector<8x1xf32>
    %164 = vector.extract_strided_slice %162 {offsets = [0, 1], sizes = [8, 1], strides = [1, 1]} : vector<8x4xf32> to vector<8x1xf32>
    %165 = vector.extract_strided_slice %162 {offsets = [0, 2], sizes = [8, 1], strides = [1, 1]} : vector<8x4xf32> to vector<8x1xf32>
    %166 = vector.extract_strided_slice %162 {offsets = [0, 3], sizes = [8, 1], strides = [1, 1]} : vector<8x4xf32> to vector<8x1xf32>
    %167 = vector.broadcast %163 : vector<8x1xf32> to vector<8x12xf32>
    %168 = arith.mulf %167, %2 : vector<8x12xf32>
    %169 = vector.broadcast %164 : vector<8x1xf32> to vector<8x12xf32>
    %170 = arith.mulf %169, %5 : vector<8x12xf32>
    %171 = vector.broadcast %165 : vector<8x1xf32> to vector<8x12xf32>
    %172 = arith.mulf %171, %8 : vector<8x12xf32>
    %173 = vector.broadcast %166 : vector<8x1xf32> to vector<8x12xf32>
    %174 = arith.mulf %173, %11 : vector<8x12xf32>
    %175 = arith.addf %168, %170 : vector<8x12xf32>
    %176 = arith.addf %172, %174 : vector<8x12xf32>
    %177 = arith.addf %175, %176 : vector<8x12xf32>
    %178 = arith.addf %14, %177 : vector<8x12xf32>
    %c56 = arith.constant 56 : index
    %c0_30 = arith.constant 0 : index
    %179 = vector.load %arg0[%c56, %c0_30] : memref<128x4xf32, #tpu.memory_space<vmem>>, vector<8x4xf32>
    %180 = vector.extract_strided_slice %179 {offsets = [0, 0], sizes = [8, 1], strides = [1, 1]} : vector<8x4xf32> to vector<8x1xf32>
    %181 = vector.extract_strided_slice %179 {offsets = [0, 1], sizes = [8, 1], strides = [1, 1]} : vector<8x4xf32> to vector<8x1xf32>
    %182 = vector.extract_strided_slice %179 {offsets = [0, 2], sizes = [8, 1], strides = [1, 1]} : vector<8x4xf32> to vector<8x1xf32>
    %183 = vector.extract_strided_slice %179 {offsets = [0, 3], sizes = [8, 1], strides = [1, 1]} : vector<8x4xf32> to vector<8x1xf32>
    %184 = vector.broadcast %180 : vector<8x1xf32> to vector<8x12xf32>
    %185 = arith.mulf %184, %2 : vector<8x12xf32>
    %186 = vector.broadcast %181 : vector<8x1xf32> to vector<8x12xf32>
    %187 = arith.mulf %186, %5 : vector<8x12xf32>
    %188 = vector.broadcast %182 : vector<8x1xf32> to vector<8x12xf32>
    %189 = arith.mulf %188, %8 : vector<8x12xf32>
    %190 = vector.broadcast %183 : vector<8x1xf32> to vector<8x12xf32>
    %191 = arith.mulf %190, %11 : vector<8x12xf32>
    %192 = arith.addf %185, %187 : vector<8x12xf32>
    %193 = arith.addf %189, %191 : vector<8x12xf32>
    %194 = arith.addf %192, %193 : vector<8x12xf32>
    %195 = arith.addf %14, %194 : vector<8x12xf32>
    %c64 = arith.constant 64 : index
    %c0_31 = arith.constant 0 : index
    %196 = vector.load %arg0[%c64, %c0_31] : memref<128x4xf32, #tpu.memory_space<vmem>>, vector<8x4xf32>
    %197 = vector.extract_strided_slice %196 {offsets = [0, 0], sizes = [8, 1], strides = [1, 1]} : vector<8x4xf32> to vector<8x1xf32>
    %198 = vector.extract_strided_slice %196 {offsets = [0, 1], sizes = [8, 1], strides = [1, 1]} : vector<8x4xf32> to vector<8x1xf32>
    %199 = vector.extract_strided_slice %196 {offsets = [0, 2], sizes = [8, 1], strides = [1, 1]} : vector<8x4xf32> to vector<8x1xf32>
    %200 = vector.extract_strided_slice %196 {offsets = [0, 3], sizes = [8, 1], strides = [1, 1]} : vector<8x4xf32> to vector<8x1xf32>
    %201 = vector.broadcast %197 : vector<8x1xf32> to vector<8x12xf32>
    %202 = arith.mulf %201, %2 : vector<8x12xf32>
    %203 = vector.broadcast %198 : vector<8x1xf32> to vector<8x12xf32>
    %204 = arith.mulf %203, %5 : vector<8x12xf32>
    %205 = vector.broadcast %199 : vector<8x1xf32> to vector<8x12xf32>
    %206 = arith.mulf %205, %8 : vector<8x12xf32>
    %207 = vector.broadcast %200 : vector<8x1xf32> to vector<8x12xf32>
    %208 = arith.mulf %207, %11 : vector<8x12xf32>
    %209 = arith.addf %202, %204 : vector<8x12xf32>
    %210 = arith.addf %206, %208 : vector<8x12xf32>
    %211 = arith.addf %209, %210 : vector<8x12xf32>
    %212 = arith.addf %14, %211 : vector<8x12xf32>
    %c72 = arith.constant 72 : index
    %c0_32 = arith.constant 0 : index
    %213 = vector.load %arg0[%c72, %c0_32] : memref<128x4xf32, #tpu.memory_space<vmem>>, vector<8x4xf32>
    %214 = vector.extract_strided_slice %213 {offsets = [0, 0], sizes = [8, 1], strides = [1, 1]} : vector<8x4xf32> to vector<8x1xf32>
    %215 = vector.extract_strided_slice %213 {offsets = [0, 1], sizes = [8, 1], strides = [1, 1]} : vector<8x4xf32> to vector<8x1xf32>
    %216 = vector.extract_strided_slice %213 {offsets = [0, 2], sizes = [8, 1], strides = [1, 1]} : vector<8x4xf32> to vector<8x1xf32>
    %217 = vector.extract_strided_slice %213 {offsets = [0, 3], sizes = [8, 1], strides = [1, 1]} : vector<8x4xf32> to vector<8x1xf32>
    %218 = vector.broadcast %214 : vector<8x1xf32> to vector<8x12xf32>
    %219 = arith.mulf %218, %2 : vector<8x12xf32>
    %220 = vector.broadcast %215 : vector<8x1xf32> to vector<8x12xf32>
    %221 = arith.mulf %220, %5 : vector<8x12xf32>
    %222 = vector.broadcast %216 : vector<8x1xf32> to vector<8x12xf32>
    %223 = arith.mulf %222, %8 : vector<8x12xf32>
    %224 = vector.broadcast %217 : vector<8x1xf32> to vector<8x12xf32>
    %225 = arith.mulf %224, %11 : vector<8x12xf32>
    %226 = arith.addf %219, %221 : vector<8x12xf32>
    %227 = arith.addf %223, %225 : vector<8x12xf32>
    %228 = arith.addf %226, %227 : vector<8x12xf32>
    %229 = arith.addf %14, %228 : vector<8x12xf32>
    %c80 = arith.constant 80 : index
    %c0_33 = arith.constant 0 : index
    %230 = vector.load %arg0[%c80, %c0_33] : memref<128x4xf32, #tpu.memory_space<vmem>>, vector<8x4xf32>
    %231 = vector.extract_strided_slice %230 {offsets = [0, 0], sizes = [8, 1], strides = [1, 1]} : vector<8x4xf32> to vector<8x1xf32>
    %232 = vector.extract_strided_slice %230 {offsets = [0, 1], sizes = [8, 1], strides = [1, 1]} : vector<8x4xf32> to vector<8x1xf32>
    %233 = vector.extract_strided_slice %230 {offsets = [0, 2], sizes = [8, 1], strides = [1, 1]} : vector<8x4xf32> to vector<8x1xf32>
    %234 = vector.extract_strided_slice %230 {offsets = [0, 3], sizes = [8, 1], strides = [1, 1]} : vector<8x4xf32> to vector<8x1xf32>
    %235 = vector.broadcast %231 : vector<8x1xf32> to vector<8x12xf32>
    %236 = arith.mulf %235, %2 : vector<8x12xf32>
    %237 = vector.broadcast %232 : vector<8x1xf32> to vector<8x12xf32>
    %238 = arith.mulf %237, %5 : vector<8x12xf32>
    %239 = vector.broadcast %233 : vector<8x1xf32> to vector<8x12xf32>
    %240 = arith.mulf %239, %8 : vector<8x12xf32>
    %241 = vector.broadcast %234 : vector<8x1xf32> to vector<8x12xf32>
    %242 = arith.mulf %241, %11 : vector<8x12xf32>
    %243 = arith.addf %236, %238 : vector<8x12xf32>
    %244 = arith.addf %240, %242 : vector<8x12xf32>
    %245 = arith.addf %243, %244 : vector<8x12xf32>
    %246 = arith.addf %14, %245 : vector<8x12xf32>
    %c88 = arith.constant 88 : index
    %c0_34 = arith.constant 0 : index
    %247 = vector.load %arg0[%c88, %c0_34] : memref<128x4xf32, #tpu.memory_space<vmem>>, vector<8x4xf32>
    %248 = vector.extract_strided_slice %247 {offsets = [0, 0], sizes = [8, 1], strides = [1, 1]} : vector<8x4xf32> to vector<8x1xf32>
    %249 = vector.extract_strided_slice %247 {offsets = [0, 1], sizes = [8, 1], strides = [1, 1]} : vector<8x4xf32> to vector<8x1xf32>
    %250 = vector.extract_strided_slice %247 {offsets = [0, 2], sizes = [8, 1], strides = [1, 1]} : vector<8x4xf32> to vector<8x1xf32>
    %251 = vector.extract_strided_slice %247 {offsets = [0, 3], sizes = [8, 1], strides = [1, 1]} : vector<8x4xf32> to vector<8x1xf32>
    %252 = vector.broadcast %248 : vector<8x1xf32> to vector<8x12xf32>
    %253 = arith.mulf %252, %2 : vector<8x12xf32>
    %254 = vector.broadcast %249 : vector<8x1xf32> to vector<8x12xf32>
    %255 = arith.mulf %254, %5 : vector<8x12xf32>
    %256 = vector.broadcast %250 : vector<8x1xf32> to vector<8x12xf32>
    %257 = arith.mulf %256, %8 : vector<8x12xf32>
    %258 = vector.broadcast %251 : vector<8x1xf32> to vector<8x12xf32>
    %259 = arith.mulf %258, %11 : vector<8x12xf32>
    %260 = arith.addf %253, %255 : vector<8x12xf32>
    %261 = arith.addf %257, %259 : vector<8x12xf32>
    %262 = arith.addf %260, %261 : vector<8x12xf32>
    %263 = arith.addf %14, %262 : vector<8x12xf32>
    %c96 = arith.constant 96 : index
    %c0_35 = arith.constant 0 : index
    %264 = vector.load %arg0[%c96, %c0_35] : memref<128x4xf32, #tpu.memory_space<vmem>>, vector<8x4xf32>
    %265 = vector.extract_strided_slice %264 {offsets = [0, 0], sizes = [8, 1], strides = [1, 1]} : vector<8x4xf32> to vector<8x1xf32>
    %266 = vector.extract_strided_slice %264 {offsets = [0, 1], sizes = [8, 1], strides = [1, 1]} : vector<8x4xf32> to vector<8x1xf32>
    %267 = vector.extract_strided_slice %264 {offsets = [0, 2], sizes = [8, 1], strides = [1, 1]} : vector<8x4xf32> to vector<8x1xf32>
    %268 = vector.extract_strided_slice %264 {offsets = [0, 3], sizes = [8, 1], strides = [1, 1]} : vector<8x4xf32> to vector<8x1xf32>
    %269 = vector.broadcast %265 : vector<8x1xf32> to vector<8x12xf32>
    %270 = arith.mulf %269, %2 : vector<8x12xf32>
    %271 = vector.broadcast %266 : vector<8x1xf32> to vector<8x12xf32>
    %272 = arith.mulf %271, %5 : vector<8x12xf32>
    %273 = vector.broadcast %267 : vector<8x1xf32> to vector<8x12xf32>
    %274 = arith.mulf %273, %8 : vector<8x12xf32>
    %275 = vector.broadcast %268 : vector<8x1xf32> to vector<8x12xf32>
    %276 = arith.mulf %275, %11 : vector<8x12xf32>
    %277 = arith.addf %270, %272 : vector<8x12xf32>
    %278 = arith.addf %274, %276 : vector<8x12xf32>
    %279 = arith.addf %277, %278 : vector<8x12xf32>
    %280 = arith.addf %14, %279 : vector<8x12xf32>
    %c104 = arith.constant 104 : index
    %c0_36 = arith.constant 0 : index
    %281 = vector.load %arg0[%c104, %c0_36] : memref<128x4xf32, #tpu.memory_space<vmem>>, vector<8x4xf32>
    %282 = vector.extract_strided_slice %281 {offsets = [0, 0], sizes = [8, 1], strides = [1, 1]} : vector<8x4xf32> to vector<8x1xf32>
    %283 = vector.extract_strided_slice %281 {offsets = [0, 1], sizes = [8, 1], strides = [1, 1]} : vector<8x4xf32> to vector<8x1xf32>
    %284 = vector.extract_strided_slice %281 {offsets = [0, 2], sizes = [8, 1], strides = [1, 1]} : vector<8x4xf32> to vector<8x1xf32>
    %285 = vector.extract_strided_slice %281 {offsets = [0, 3], sizes = [8, 1], strides = [1, 1]} : vector<8x4xf32> to vector<8x1xf32>
    %286 = vector.broadcast %282 : vector<8x1xf32> to vector<8x12xf32>
    %287 = arith.mulf %286, %2 : vector<8x12xf32>
    %288 = vector.broadcast %283 : vector<8x1xf32> to vector<8x12xf32>
    %289 = arith.mulf %288, %5 : vector<8x12xf32>
    %290 = vector.broadcast %284 : vector<8x1xf32> to vector<8x12xf32>
    %291 = arith.mulf %290, %8 : vector<8x12xf32>
    %292 = vector.broadcast %285 : vector<8x1xf32> to vector<8x12xf32>
    %293 = arith.mulf %292, %11 : vector<8x12xf32>
    %294 = arith.addf %287, %289 : vector<8x12xf32>
    %295 = arith.addf %291, %293 : vector<8x12xf32>
    %296 = arith.addf %294, %295 : vector<8x12xf32>
    %297 = arith.addf %14, %296 : vector<8x12xf32>
    %c112 = arith.constant 112 : index
    %c0_37 = arith.constant 0 : index
    %298 = vector.load %arg0[%c112, %c0_37] : memref<128x4xf32, #tpu.memory_space<vmem>>, vector<8x4xf32>
    %299 = vector.extract_strided_slice %298 {offsets = [0, 0], sizes = [8, 1], strides = [1, 1]} : vector<8x4xf32> to vector<8x1xf32>
    %300 = vector.extract_strided_slice %298 {offsets = [0, 1], sizes = [8, 1], strides = [1, 1]} : vector<8x4xf32> to vector<8x1xf32>
    %301 = vector.extract_strided_slice %298 {offsets = [0, 2], sizes = [8, 1], strides = [1, 1]} : vector<8x4xf32> to vector<8x1xf32>
    %302 = vector.extract_strided_slice %298 {offsets = [0, 3], sizes = [8, 1], strides = [1, 1]} : vector<8x4xf32> to vector<8x1xf32>
    %303 = vector.broadcast %299 : vector<8x1xf32> to vector<8x12xf32>
    %304 = arith.mulf %303, %2 : vector<8x12xf32>
    %305 = vector.broadcast %300 : vector<8x1xf32> to vector<8x12xf32>
    %306 = arith.mulf %305, %5 : vector<8x12xf32>
    %307 = vector.broadcast %301 : vector<8x1xf32> to vector<8x12xf32>
    %308 = arith.mulf %307, %8 : vector<8x12xf32>
    %309 = vector.broadcast %302 : vector<8x1xf32> to vector<8x12xf32>
    %310 = arith.mulf %309, %11 : vector<8x12xf32>
    %311 = arith.addf %304, %306 : vector<8x12xf32>
    %312 = arith.addf %308, %310 : vector<8x12xf32>
    %313 = arith.addf %311, %312 : vector<8x12xf32>
    %314 = arith.addf %14, %313 : vector<8x12xf32>
    %c120 = arith.constant 120 : index
    %c0_38 = arith.constant 0 : index
    %315 = vector.load %arg0[%c120, %c0_38] : memref<128x4xf32, #tpu.memory_space<vmem>>, vector<8x4xf32>
    %316 = vector.extract_strided_slice %315 {offsets = [0, 0], sizes = [8, 1], strides = [1, 1]} : vector<8x4xf32> to vector<8x1xf32>
    %317 = vector.extract_strided_slice %315 {offsets = [0, 1], sizes = [8, 1], strides = [1, 1]} : vector<8x4xf32> to vector<8x1xf32>
    %318 = vector.extract_strided_slice %315 {offsets = [0, 2], sizes = [8, 1], strides = [1, 1]} : vector<8x4xf32> to vector<8x1xf32>
    %319 = vector.extract_strided_slice %315 {offsets = [0, 3], sizes = [8, 1], strides = [1, 1]} : vector<8x4xf32> to vector<8x1xf32>
    %320 = vector.broadcast %316 : vector<8x1xf32> to vector<8x12xf32>
    %321 = arith.mulf %320, %2 : vector<8x12xf32>
    %322 = vector.broadcast %317 : vector<8x1xf32> to vector<8x12xf32>
    %323 = arith.mulf %322, %5 : vector<8x12xf32>
    %324 = vector.broadcast %318 : vector<8x1xf32> to vector<8x12xf32>
    %325 = arith.mulf %324, %8 : vector<8x12xf32>
    %326 = vector.broadcast %319 : vector<8x1xf32> to vector<8x12xf32>
    %327 = arith.mulf %326, %11 : vector<8x12xf32>
    %328 = arith.addf %321, %323 : vector<8x12xf32>
    %329 = arith.addf %325, %327 : vector<8x12xf32>
    %330 = arith.addf %328, %329 : vector<8x12xf32>
    %331 = arith.addf %14, %330 : vector<8x12xf32>
    %cst = arith.constant 0.000000e+00 : f32
    %332 = vector.broadcast %cst : f32 to vector<8x4xf32>
    %cst_39 = arith.constant 0.000000e+00 : f32
    %333 = vector.broadcast %cst_39 : f32 to vector<8x4xf32>
    %334 = vector.extract_strided_slice %332 {offsets = [0, 0], sizes = [8, 1], strides = [1, 1]} : vector<8x4xf32> to vector<8x1xf32>
    %335 = vector.extract_strided_slice %332 {offsets = [0, 1], sizes = [8, 1], strides = [1, 1]} : vector<8x4xf32> to vector<8x1xf32>
    %336 = vector.extract_strided_slice %332 {offsets = [0, 2], sizes = [8, 1], strides = [1, 1]} : vector<8x4xf32> to vector<8x1xf32>
    %337 = vector.extract_strided_slice %332 {offsets = [0, 3], sizes = [8, 1], strides = [1, 1]} : vector<8x4xf32> to vector<8x1xf32>
    %338 = vector.broadcast %334 : vector<8x1xf32> to vector<8x12xf32>
    %339 = arith.mulf %338, %17 : vector<8x12xf32>
    %340 = vector.broadcast %335 : vector<8x1xf32> to vector<8x12xf32>
    %341 = arith.mulf %340, %20 : vector<8x12xf32>
    %342 = vector.broadcast %336 : vector<8x1xf32> to vector<8x12xf32>
    %343 = arith.mulf %342, %23 : vector<8x12xf32>
    %344 = vector.broadcast %337 : vector<8x1xf32> to vector<8x12xf32>
    %345 = arith.mulf %344, %26 : vector<8x12xf32>
    %346 = arith.addf %339, %341 : vector<8x12xf32>
    %347 = arith.addf %343, %345 : vector<8x12xf32>
    %348 = arith.addf %346, %347 : vector<8x12xf32>
    %349 = arith.addf %29, %348 : vector<8x12xf32>
    %350 = vector.extract_strided_slice %76 {offsets = [0, 0], sizes = [8, 8], strides = [1, 1]} : vector<8x12xf32> to vector<8x8xf32>
    %351 = vector.extract_strided_slice %349 {offsets = [0, 0], sizes = [8, 8], strides = [1, 1]} : vector<8x12xf32> to vector<8x8xf32>
    %352 = arith.addf %350, %351 : vector<8x8xf32>
    %353 = math.tanh %352 : vector<8x8xf32>
    %354 = vector.extract_strided_slice %353 {offsets = [0, 0], sizes = [8, 4], strides = [1, 1]} : vector<8x8xf32> to vector<8x4xf32>
    %355 = vector.extract_strided_slice %353 {offsets = [0, 4], sizes = [8, 4], strides = [1, 1]} : vector<8x8xf32> to vector<8x4xf32>
    %356 = vector.extract_strided_slice %349 {offsets = [0, 8], sizes = [8, 4], strides = [1, 1]} : vector<8x12xf32> to vector<8x4xf32>
    %357 = vector.extract_strided_slice %76 {offsets = [0, 8], sizes = [8, 4], strides = [1, 1]} : vector<8x12xf32> to vector<8x4xf32>
    %358 = arith.addf %357, %356 : vector<8x4xf32>
    %359 = arith.mulf %354, %356 : vector<8x4xf32>
    %360 = arith.addf %358, %359 : vector<8x4xf32>
    %361 = math.tanh %360 : vector<8x4xf32>
    %cst_40 = arith.constant 5.000000e-01 : f32
    %362 = vector.broadcast %cst_40 : f32 to vector<8x4xf32>
    %363 = arith.mulf %362, %355 : vector<8x4xf32>
    %cst_41 = arith.constant 5.000000e-01 : f32
    %364 = vector.broadcast %cst_41 : f32 to vector<8x4xf32>
    %365 = arith.addf %363, %364 : vector<8x4xf32>
    %366 = arith.subf %332, %361 : vector<8x4xf32>
    %367 = arith.mulf %365, %366 : vector<8x4xf32>
    %368 = arith.addf %361, %367 : vector<8x4xf32>
    %369 = vector.extract_strided_slice %368 {offsets = [0, 0], sizes = [8, 1], strides = [1, 1]} : vector<8x4xf32> to vector<8x1xf32>
    %370 = vector.extract_strided_slice %368 {offsets = [0, 1], sizes = [8, 1], strides = [1, 1]} : vector<8x4xf32> to vector<8x1xf32>
    %371 = vector.extract_strided_slice %368 {offsets = [0, 2], sizes = [8, 1], strides = [1, 1]} : vector<8x4xf32> to vector<8x1xf32>
    %372 = vector.extract_strided_slice %368 {offsets = [0, 3], sizes = [8, 1], strides = [1, 1]} : vector<8x4xf32> to vector<8x1xf32>
    %373 = vector.broadcast %369 : vector<8x1xf32> to vector<8x12xf32>
    %374 = arith.mulf %373, %32 : vector<8x12xf32>
    %375 = vector.broadcast %370 : vector<8x1xf32> to vector<8x12xf32>
    %376 = arith.mulf %375, %35 : vector<8x12xf32>
    %377 = vector.broadcast %371 : vector<8x1xf32> to vector<8x12xf32>
    %378 = arith.mulf %377, %38 : vector<8x12xf32>
    %379 = vector.broadcast %372 : vector<8x1xf32> to vector<8x12xf32>
    %380 = arith.mulf %379, %41 : vector<8x12xf32>
    %381 = arith.addf %374, %376 : vector<8x12xf32>
    %382 = arith.addf %378, %380 : vector<8x12xf32>
    %383 = arith.addf %381, %382 : vector<8x12xf32>
    %384 = arith.addf %44, %383 : vector<8x12xf32>
    %385 = vector.extract_strided_slice %333 {offsets = [0, 0], sizes = [8, 1], strides = [1, 1]} : vector<8x4xf32> to vector<8x1xf32>
    %386 = vector.extract_strided_slice %333 {offsets = [0, 1], sizes = [8, 1], strides = [1, 1]} : vector<8x4xf32> to vector<8x1xf32>
    %387 = vector.extract_strided_slice %333 {offsets = [0, 2], sizes = [8, 1], strides = [1, 1]} : vector<8x4xf32> to vector<8x1xf32>
    %388 = vector.extract_strided_slice %333 {offsets = [0, 3], sizes = [8, 1], strides = [1, 1]} : vector<8x4xf32> to vector<8x1xf32>
    %389 = vector.broadcast %385 : vector<8x1xf32> to vector<8x12xf32>
    %390 = arith.mulf %389, %47 : vector<8x12xf32>
    %391 = vector.broadcast %386 : vector<8x1xf32> to vector<8x12xf32>
    %392 = arith.mulf %391, %50 : vector<8x12xf32>
    %393 = vector.broadcast %387 : vector<8x1xf32> to vector<8x12xf32>
    %394 = arith.mulf %393, %53 : vector<8x12xf32>
    %395 = vector.broadcast %388 : vector<8x1xf32> to vector<8x12xf32>
    %396 = arith.mulf %395, %56 : vector<8x12xf32>
    %397 = arith.addf %390, %392 : vector<8x12xf32>
    %398 = arith.addf %394, %396 : vector<8x12xf32>
    %399 = arith.addf %397, %398 : vector<8x12xf32>
    %400 = arith.addf %59, %399 : vector<8x12xf32>
    %401 = vector.extract_strided_slice %384 {offsets = [0, 0], sizes = [8, 8], strides = [1, 1]} : vector<8x12xf32> to vector<8x8xf32>
    %402 = vector.extract_strided_slice %400 {offsets = [0, 0], sizes = [8, 8], strides = [1, 1]} : vector<8x12xf32> to vector<8x8xf32>
    %403 = arith.addf %401, %402 : vector<8x8xf32>
    %404 = math.tanh %403 : vector<8x8xf32>
    %405 = vector.extract_strided_slice %404 {offsets = [0, 0], sizes = [8, 4], strides = [1, 1]} : vector<8x8xf32> to vector<8x4xf32>
    %406 = vector.extract_strided_slice %404 {offsets = [0, 4], sizes = [8, 4], strides = [1, 1]} : vector<8x8xf32> to vector<8x4xf32>
    %407 = vector.extract_strided_slice %400 {offsets = [0, 8], sizes = [8, 4], strides = [1, 1]} : vector<8x12xf32> to vector<8x4xf32>
    %408 = vector.extract_strided_slice %384 {offsets = [0, 8], sizes = [8, 4], strides = [1, 1]} : vector<8x12xf32> to vector<8x4xf32>
    %409 = arith.addf %408, %407 : vector<8x4xf32>
    %410 = arith.mulf %405, %407 : vector<8x4xf32>
    %411 = arith.addf %409, %410 : vector<8x4xf32>
    %412 = math.tanh %411 : vector<8x4xf32>
    %cst_42 = arith.constant 5.000000e-01 : f32
    %413 = vector.broadcast %cst_42 : f32 to vector<8x4xf32>
    %414 = arith.mulf %413, %406 : vector<8x4xf32>
    %cst_43 = arith.constant 5.000000e-01 : f32
    %415 = vector.broadcast %cst_43 : f32 to vector<8x4xf32>
    %416 = arith.addf %414, %415 : vector<8x4xf32>
    %417 = arith.subf %333, %412 : vector<8x4xf32>
    %418 = arith.mulf %416, %417 : vector<8x4xf32>
    %419 = arith.addf %412, %418 : vector<8x4xf32>
    %420 = vector.extract_strided_slice %368 {offsets = [0, 0], sizes = [8, 1], strides = [1, 1]} : vector<8x4xf32> to vector<8x1xf32>
    %421 = vector.extract_strided_slice %368 {offsets = [0, 1], sizes = [8, 1], strides = [1, 1]} : vector<8x4xf32> to vector<8x1xf32>
    %422 = vector.extract_strided_slice %368 {offsets = [0, 2], sizes = [8, 1], strides = [1, 1]} : vector<8x4xf32> to vector<8x1xf32>
    %423 = vector.extract_strided_slice %368 {offsets = [0, 3], sizes = [8, 1], strides = [1, 1]} : vector<8x4xf32> to vector<8x1xf32>
    %424 = vector.broadcast %420 : vector<8x1xf32> to vector<8x12xf32>
    %425 = arith.mulf %424, %17 : vector<8x12xf32>
    %426 = vector.broadcast %421 : vector<8x1xf32> to vector<8x12xf32>
    %427 = arith.mulf %426, %20 : vector<8x12xf32>
    %428 = vector.broadcast %422 : vector<8x1xf32> to vector<8x12xf32>
    %429 = arith.mulf %428, %23 : vector<8x12xf32>
    %430 = vector.broadcast %423 : vector<8x1xf32> to vector<8x12xf32>
    %431 = arith.mulf %430, %26 : vector<8x12xf32>
    %432 = arith.addf %425, %427 : vector<8x12xf32>
    %433 = arith.addf %429, %431 : vector<8x12xf32>
    %434 = arith.addf %432, %433 : vector<8x12xf32>
    %435 = arith.addf %29, %434 : vector<8x12xf32>
    %436 = vector.extract_strided_slice %93 {offsets = [0, 0], sizes = [8, 8], strides = [1, 1]} : vector<8x12xf32> to vector<8x8xf32>
    %437 = vector.extract_strided_slice %435 {offsets = [0, 0], sizes = [8, 8], strides = [1, 1]} : vector<8x12xf32> to vector<8x8xf32>
    %438 = arith.addf %436, %437 : vector<8x8xf32>
    %439 = math.tanh %438 : vector<8x8xf32>
    %440 = vector.extract_strided_slice %439 {offsets = [0, 0], sizes = [8, 4], strides = [1, 1]} : vector<8x8xf32> to vector<8x4xf32>
    %441 = vector.extract_strided_slice %439 {offsets = [0, 4], sizes = [8, 4], strides = [1, 1]} : vector<8x8xf32> to vector<8x4xf32>
    %442 = vector.extract_strided_slice %435 {offsets = [0, 8], sizes = [8, 4], strides = [1, 1]} : vector<8x12xf32> to vector<8x4xf32>
    %443 = vector.extract_strided_slice %93 {offsets = [0, 8], sizes = [8, 4], strides = [1, 1]} : vector<8x12xf32> to vector<8x4xf32>
    %444 = arith.addf %443, %442 : vector<8x4xf32>
    %445 = arith.mulf %440, %442 : vector<8x4xf32>
    %446 = arith.addf %444, %445 : vector<8x4xf32>
    %447 = math.tanh %446 : vector<8x4xf32>
    %cst_44 = arith.constant 5.000000e-01 : f32
    %448 = vector.broadcast %cst_44 : f32 to vector<8x4xf32>
    %449 = arith.mulf %448, %441 : vector<8x4xf32>
    %cst_45 = arith.constant 5.000000e-01 : f32
    %450 = vector.broadcast %cst_45 : f32 to vector<8x4xf32>
    %451 = arith.addf %449, %450 : vector<8x4xf32>
    %452 = arith.subf %368, %447 : vector<8x4xf32>
    %453 = arith.mulf %451, %452 : vector<8x4xf32>
    %454 = arith.addf %447, %453 : vector<8x4xf32>
    %455 = vector.extract_strided_slice %454 {offsets = [0, 0], sizes = [8, 1], strides = [1, 1]} : vector<8x4xf32> to vector<8x1xf32>
    %456 = vector.extract_strided_slice %454 {offsets = [0, 1], sizes = [8, 1], strides = [1, 1]} : vector<8x4xf32> to vector<8x1xf32>
    %457 = vector.extract_strided_slice %454 {offsets = [0, 2], sizes = [8, 1], strides = [1, 1]} : vector<8x4xf32> to vector<8x1xf32>
    %458 = vector.extract_strided_slice %454 {offsets = [0, 3], sizes = [8, 1], strides = [1, 1]} : vector<8x4xf32> to vector<8x1xf32>
    %459 = vector.broadcast %455 : vector<8x1xf32> to vector<8x12xf32>
    %460 = arith.mulf %459, %32 : vector<8x12xf32>
    %461 = vector.broadcast %456 : vector<8x1xf32> to vector<8x12xf32>
    %462 = arith.mulf %461, %35 : vector<8x12xf32>
    %463 = vector.broadcast %457 : vector<8x1xf32> to vector<8x12xf32>
    %464 = arith.mulf %463, %38 : vector<8x12xf32>
    %465 = vector.broadcast %458 : vector<8x1xf32> to vector<8x12xf32>
    %466 = arith.mulf %465, %41 : vector<8x12xf32>
    %467 = arith.addf %460, %462 : vector<8x12xf32>
    %468 = arith.addf %464, %466 : vector<8x12xf32>
    %469 = arith.addf %467, %468 : vector<8x12xf32>
    %470 = arith.addf %44, %469 : vector<8x12xf32>
    %471 = vector.extract_strided_slice %419 {offsets = [0, 0], sizes = [8, 1], strides = [1, 1]} : vector<8x4xf32> to vector<8x1xf32>
    %472 = vector.extract_strided_slice %419 {offsets = [0, 1], sizes = [8, 1], strides = [1, 1]} : vector<8x4xf32> to vector<8x1xf32>
    %473 = vector.extract_strided_slice %419 {offsets = [0, 2], sizes = [8, 1], strides = [1, 1]} : vector<8x4xf32> to vector<8x1xf32>
    %474 = vector.extract_strided_slice %419 {offsets = [0, 3], sizes = [8, 1], strides = [1, 1]} : vector<8x4xf32> to vector<8x1xf32>
    %475 = vector.broadcast %471 : vector<8x1xf32> to vector<8x12xf32>
    %476 = arith.mulf %475, %47 : vector<8x12xf32>
    %477 = vector.broadcast %472 : vector<8x1xf32> to vector<8x12xf32>
    %478 = arith.mulf %477, %50 : vector<8x12xf32>
    %479 = vector.broadcast %473 : vector<8x1xf32> to vector<8x12xf32>
    %480 = arith.mulf %479, %53 : vector<8x12xf32>
    %481 = vector.broadcast %474 : vector<8x1xf32> to vector<8x12xf32>
    %482 = arith.mulf %481, %56 : vector<8x12xf32>
    %483 = arith.addf %476, %478 : vector<8x12xf32>
    %484 = arith.addf %480, %482 : vector<8x12xf32>
    %485 = arith.addf %483, %484 : vector<8x12xf32>
    %486 = arith.addf %59, %485 : vector<8x12xf32>
    %487 = vector.extract_strided_slice %470 {offsets = [0, 0], sizes = [8, 8], strides = [1, 1]} : vector<8x12xf32> to vector<8x8xf32>
    %488 = vector.extract_strided_slice %486 {offsets = [0, 0], sizes = [8, 8], strides = [1, 1]} : vector<8x12xf32> to vector<8x8xf32>
    %489 = arith.addf %487, %488 : vector<8x8xf32>
    %490 = math.tanh %489 : vector<8x8xf32>
    %491 = vector.extract_strided_slice %490 {offsets = [0, 0], sizes = [8, 4], strides = [1, 1]} : vector<8x8xf32> to vector<8x4xf32>
    %492 = vector.extract_strided_slice %490 {offsets = [0, 4], sizes = [8, 4], strides = [1, 1]} : vector<8x8xf32> to vector<8x4xf32>
    %493 = vector.extract_strided_slice %486 {offsets = [0, 8], sizes = [8, 4], strides = [1, 1]} : vector<8x12xf32> to vector<8x4xf32>
    %494 = vector.extract_strided_slice %470 {offsets = [0, 8], sizes = [8, 4], strides = [1, 1]} : vector<8x12xf32> to vector<8x4xf32>
    %495 = arith.addf %494, %493 : vector<8x4xf32>
    %496 = arith.mulf %491, %493 : vector<8x4xf32>
    %497 = arith.addf %495, %496 : vector<8x4xf32>
    %498 = math.tanh %497 : vector<8x4xf32>
    %cst_46 = arith.constant 5.000000e-01 : f32
    %499 = vector.broadcast %cst_46 : f32 to vector<8x4xf32>
    %500 = arith.mulf %499, %492 : vector<8x4xf32>
    %cst_47 = arith.constant 5.000000e-01 : f32
    %501 = vector.broadcast %cst_47 : f32 to vector<8x4xf32>
    %502 = arith.addf %500, %501 : vector<8x4xf32>
    %503 = arith.subf %419, %498 : vector<8x4xf32>
    %504 = arith.mulf %502, %503 : vector<8x4xf32>
    %505 = arith.addf %498, %504 : vector<8x4xf32>
    %506 = vector.extract_strided_slice %454 {offsets = [0, 0], sizes = [8, 1], strides = [1, 1]} : vector<8x4xf32> to vector<8x1xf32>
    %507 = vector.extract_strided_slice %454 {offsets = [0, 1], sizes = [8, 1], strides = [1, 1]} : vector<8x4xf32> to vector<8x1xf32>
    %508 = vector.extract_strided_slice %454 {offsets = [0, 2], sizes = [8, 1], strides = [1, 1]} : vector<8x4xf32> to vector<8x1xf32>
    %509 = vector.extract_strided_slice %454 {offsets = [0, 3], sizes = [8, 1], strides = [1, 1]} : vector<8x4xf32> to vector<8x1xf32>
    %510 = vector.broadcast %506 : vector<8x1xf32> to vector<8x12xf32>
    %511 = arith.mulf %510, %17 : vector<8x12xf32>
    %512 = vector.broadcast %507 : vector<8x1xf32> to vector<8x12xf32>
    %513 = arith.mulf %512, %20 : vector<8x12xf32>
    %514 = vector.broadcast %508 : vector<8x1xf32> to vector<8x12xf32>
    %515 = arith.mulf %514, %23 : vector<8x12xf32>
    %516 = vector.broadcast %509 : vector<8x1xf32> to vector<8x12xf32>
    %517 = arith.mulf %516, %26 : vector<8x12xf32>
    %518 = arith.addf %511, %513 : vector<8x12xf32>
    %519 = arith.addf %515, %517 : vector<8x12xf32>
    %520 = arith.addf %518, %519 : vector<8x12xf32>
    %521 = arith.addf %29, %520 : vector<8x12xf32>
    %522 = vector.extract_strided_slice %110 {offsets = [0, 0], sizes = [8, 8], strides = [1, 1]} : vector<8x12xf32> to vector<8x8xf32>
    %523 = vector.extract_strided_slice %521 {offsets = [0, 0], sizes = [8, 8], strides = [1, 1]} : vector<8x12xf32> to vector<8x8xf32>
    %524 = arith.addf %522, %523 : vector<8x8xf32>
    %525 = math.tanh %524 : vector<8x8xf32>
    %526 = vector.extract_strided_slice %525 {offsets = [0, 0], sizes = [8, 4], strides = [1, 1]} : vector<8x8xf32> to vector<8x4xf32>
    %527 = vector.extract_strided_slice %525 {offsets = [0, 4], sizes = [8, 4], strides = [1, 1]} : vector<8x8xf32> to vector<8x4xf32>
    %528 = vector.extract_strided_slice %521 {offsets = [0, 8], sizes = [8, 4], strides = [1, 1]} : vector<8x12xf32> to vector<8x4xf32>
    %529 = vector.extract_strided_slice %110 {offsets = [0, 8], sizes = [8, 4], strides = [1, 1]} : vector<8x12xf32> to vector<8x4xf32>
    %530 = arith.addf %529, %528 : vector<8x4xf32>
    %531 = arith.mulf %526, %528 : vector<8x4xf32>
    %532 = arith.addf %530, %531 : vector<8x4xf32>
    %533 = math.tanh %532 : vector<8x4xf32>
    %cst_48 = arith.constant 5.000000e-01 : f32
    %534 = vector.broadcast %cst_48 : f32 to vector<8x4xf32>
    %535 = arith.mulf %534, %527 : vector<8x4xf32>
    %cst_49 = arith.constant 5.000000e-01 : f32
    %536 = vector.broadcast %cst_49 : f32 to vector<8x4xf32>
    %537 = arith.addf %535, %536 : vector<8x4xf32>
    %538 = arith.subf %454, %533 : vector<8x4xf32>
    %539 = arith.mulf %537, %538 : vector<8x4xf32>
    %540 = arith.addf %533, %539 : vector<8x4xf32>
    %541 = vector.extract_strided_slice %540 {offsets = [0, 0], sizes = [8, 1], strides = [1, 1]} : vector<8x4xf32> to vector<8x1xf32>
    %542 = vector.extract_strided_slice %540 {offsets = [0, 1], sizes = [8, 1], strides = [1, 1]} : vector<8x4xf32> to vector<8x1xf32>
    %543 = vector.extract_strided_slice %540 {offsets = [0, 2], sizes = [8, 1], strides = [1, 1]} : vector<8x4xf32> to vector<8x1xf32>
    %544 = vector.extract_strided_slice %540 {offsets = [0, 3], sizes = [8, 1], strides = [1, 1]} : vector<8x4xf32> to vector<8x1xf32>
    %545 = vector.broadcast %541 : vector<8x1xf32> to vector<8x12xf32>
    %546 = arith.mulf %545, %32 : vector<8x12xf32>
    %547 = vector.broadcast %542 : vector<8x1xf32> to vector<8x12xf32>
    %548 = arith.mulf %547, %35 : vector<8x12xf32>
    %549 = vector.broadcast %543 : vector<8x1xf32> to vector<8x12xf32>
    %550 = arith.mulf %549, %38 : vector<8x12xf32>
    %551 = vector.broadcast %544 : vector<8x1xf32> to vector<8x12xf32>
    %552 = arith.mulf %551, %41 : vector<8x12xf32>
    %553 = arith.addf %546, %548 : vector<8x12xf32>
    %554 = arith.addf %550, %552 : vector<8x12xf32>
    %555 = arith.addf %553, %554 : vector<8x12xf32>
    %556 = arith.addf %44, %555 : vector<8x12xf32>
    %557 = vector.extract_strided_slice %505 {offsets = [0, 0], sizes = [8, 1], strides = [1, 1]} : vector<8x4xf32> to vector<8x1xf32>
    %558 = vector.extract_strided_slice %505 {offsets = [0, 1], sizes = [8, 1], strides = [1, 1]} : vector<8x4xf32> to vector<8x1xf32>
    %559 = vector.extract_strided_slice %505 {offsets = [0, 2], sizes = [8, 1], strides = [1, 1]} : vector<8x4xf32> to vector<8x1xf32>
    %560 = vector.extract_strided_slice %505 {offsets = [0, 3], sizes = [8, 1], strides = [1, 1]} : vector<8x4xf32> to vector<8x1xf32>
    %561 = vector.broadcast %557 : vector<8x1xf32> to vector<8x12xf32>
    %562 = arith.mulf %561, %47 : vector<8x12xf32>
    %563 = vector.broadcast %558 : vector<8x1xf32> to vector<8x12xf32>
    %564 = arith.mulf %563, %50 : vector<8x12xf32>
    %565 = vector.broadcast %559 : vector<8x1xf32> to vector<8x12xf32>
    %566 = arith.mulf %565, %53 : vector<8x12xf32>
    %567 = vector.broadcast %560 : vector<8x1xf32> to vector<8x12xf32>
    %568 = arith.mulf %567, %56 : vector<8x12xf32>
    %569 = arith.addf %562, %564 : vector<8x12xf32>
    %570 = arith.addf %566, %568 : vector<8x12xf32>
    %571 = arith.addf %569, %570 : vector<8x12xf32>
    %572 = arith.addf %59, %571 : vector<8x12xf32>
    %573 = vector.extract_strided_slice %556 {offsets = [0, 0], sizes = [8, 8], strides = [1, 1]} : vector<8x12xf32> to vector<8x8xf32>
    %574 = vector.extract_strided_slice %572 {offsets = [0, 0], sizes = [8, 8], strides = [1, 1]} : vector<8x12xf32> to vector<8x8xf32>
    %575 = arith.addf %573, %574 : vector<8x8xf32>
    %576 = math.tanh %575 : vector<8x8xf32>
    %577 = vector.extract_strided_slice %576 {offsets = [0, 0], sizes = [8, 4], strides = [1, 1]} : vector<8x8xf32> to vector<8x4xf32>
    %578 = vector.extract_strided_slice %576 {offsets = [0, 4], sizes = [8, 4], strides = [1, 1]} : vector<8x8xf32> to vector<8x4xf32>
    %579 = vector.extract_strided_slice %572 {offsets = [0, 8], sizes = [8, 4], strides = [1, 1]} : vector<8x12xf32> to vector<8x4xf32>
    %580 = vector.extract_strided_slice %556 {offsets = [0, 8], sizes = [8, 4], strides = [1, 1]} : vector<8x12xf32> to vector<8x4xf32>
    %581 = arith.addf %580, %579 : vector<8x4xf32>
    %582 = arith.mulf %577, %579 : vector<8x4xf32>
    %583 = arith.addf %581, %582 : vector<8x4xf32>
    %584 = math.tanh %583 : vector<8x4xf32>
    %cst_50 = arith.constant 5.000000e-01 : f32
    %585 = vector.broadcast %cst_50 : f32 to vector<8x4xf32>
    %586 = arith.mulf %585, %578 : vector<8x4xf32>
    %cst_51 = arith.constant 5.000000e-01 : f32
    %587 = vector.broadcast %cst_51 : f32 to vector<8x4xf32>
    %588 = arith.addf %586, %587 : vector<8x4xf32>
    %589 = arith.subf %505, %584 : vector<8x4xf32>
    %590 = arith.mulf %588, %589 : vector<8x4xf32>
    %591 = arith.addf %584, %590 : vector<8x4xf32>
    %592 = vector.extract_strided_slice %540 {offsets = [0, 0], sizes = [8, 1], strides = [1, 1]} : vector<8x4xf32> to vector<8x1xf32>
    %593 = vector.extract_strided_slice %540 {offsets = [0, 1], sizes = [8, 1], strides = [1, 1]} : vector<8x4xf32> to vector<8x1xf32>
    %594 = vector.extract_strided_slice %540 {offsets = [0, 2], sizes = [8, 1], strides = [1, 1]} : vector<8x4xf32> to vector<8x1xf32>
    %595 = vector.extract_strided_slice %540 {offsets = [0, 3], sizes = [8, 1], strides = [1, 1]} : vector<8x4xf32> to vector<8x1xf32>
    %596 = vector.broadcast %592 : vector<8x1xf32> to vector<8x12xf32>
    %597 = arith.mulf %596, %17 : vector<8x12xf32>
    %598 = vector.broadcast %593 : vector<8x1xf32> to vector<8x12xf32>
    %599 = arith.mulf %598, %20 : vector<8x12xf32>
    %600 = vector.broadcast %594 : vector<8x1xf32> to vector<8x12xf32>
    %601 = arith.mulf %600, %23 : vector<8x12xf32>
    %602 = vector.broadcast %595 : vector<8x1xf32> to vector<8x12xf32>
    %603 = arith.mulf %602, %26 : vector<8x12xf32>
    %604 = arith.addf %597, %599 : vector<8x12xf32>
    %605 = arith.addf %601, %603 : vector<8x12xf32>
    %606 = arith.addf %604, %605 : vector<8x12xf32>
    %607 = arith.addf %29, %606 : vector<8x12xf32>
    %608 = vector.extract_strided_slice %127 {offsets = [0, 0], sizes = [8, 8], strides = [1, 1]} : vector<8x12xf32> to vector<8x8xf32>
    %609 = vector.extract_strided_slice %607 {offsets = [0, 0], sizes = [8, 8], strides = [1, 1]} : vector<8x12xf32> to vector<8x8xf32>
    %610 = arith.addf %608, %609 : vector<8x8xf32>
    %611 = math.tanh %610 : vector<8x8xf32>
    %612 = vector.extract_strided_slice %611 {offsets = [0, 0], sizes = [8, 4], strides = [1, 1]} : vector<8x8xf32> to vector<8x4xf32>
    %613 = vector.extract_strided_slice %611 {offsets = [0, 4], sizes = [8, 4], strides = [1, 1]} : vector<8x8xf32> to vector<8x4xf32>
    %614 = vector.extract_strided_slice %607 {offsets = [0, 8], sizes = [8, 4], strides = [1, 1]} : vector<8x12xf32> to vector<8x4xf32>
    %615 = vector.extract_strided_slice %127 {offsets = [0, 8], sizes = [8, 4], strides = [1, 1]} : vector<8x12xf32> to vector<8x4xf32>
    %616 = arith.addf %615, %614 : vector<8x4xf32>
    %617 = arith.mulf %612, %614 : vector<8x4xf32>
    %618 = arith.addf %616, %617 : vector<8x4xf32>
    %619 = math.tanh %618 : vector<8x4xf32>
    %cst_52 = arith.constant 5.000000e-01 : f32
    %620 = vector.broadcast %cst_52 : f32 to vector<8x4xf32>
    %621 = arith.mulf %620, %613 : vector<8x4xf32>
    %cst_53 = arith.constant 5.000000e-01 : f32
    %622 = vector.broadcast %cst_53 : f32 to vector<8x4xf32>
    %623 = arith.addf %621, %622 : vector<8x4xf32>
    %624 = arith.subf %540, %619 : vector<8x4xf32>
    %625 = arith.mulf %623, %624 : vector<8x4xf32>
    %626 = arith.addf %619, %625 : vector<8x4xf32>
    %627 = vector.extract_strided_slice %626 {offsets = [0, 0], sizes = [8, 1], strides = [1, 1]} : vector<8x4xf32> to vector<8x1xf32>
    %628 = vector.extract_strided_slice %626 {offsets = [0, 1], sizes = [8, 1], strides = [1, 1]} : vector<8x4xf32> to vector<8x1xf32>
    %629 = vector.extract_strided_slice %626 {offsets = [0, 2], sizes = [8, 1], strides = [1, 1]} : vector<8x4xf32> to vector<8x1xf32>
    %630 = vector.extract_strided_slice %626 {offsets = [0, 3], sizes = [8, 1], strides = [1, 1]} : vector<8x4xf32> to vector<8x1xf32>
    %631 = vector.broadcast %627 : vector<8x1xf32> to vector<8x12xf32>
    %632 = arith.mulf %631, %32 : vector<8x12xf32>
    %633 = vector.broadcast %628 : vector<8x1xf32> to vector<8x12xf32>
    %634 = arith.mulf %633, %35 : vector<8x12xf32>
    %635 = vector.broadcast %629 : vector<8x1xf32> to vector<8x12xf32>
    %636 = arith.mulf %635, %38 : vector<8x12xf32>
    %637 = vector.broadcast %630 : vector<8x1xf32> to vector<8x12xf32>
    %638 = arith.mulf %637, %41 : vector<8x12xf32>
    %639 = arith.addf %632, %634 : vector<8x12xf32>
    %640 = arith.addf %636, %638 : vector<8x12xf32>
    %641 = arith.addf %639, %640 : vector<8x12xf32>
    %642 = arith.addf %44, %641 : vector<8x12xf32>
    %643 = vector.extract_strided_slice %591 {offsets = [0, 0], sizes = [8, 1], strides = [1, 1]} : vector<8x4xf32> to vector<8x1xf32>
    %644 = vector.extract_strided_slice %591 {offsets = [0, 1], sizes = [8, 1], strides = [1, 1]} : vector<8x4xf32> to vector<8x1xf32>
    %645 = vector.extract_strided_slice %591 {offsets = [0, 2], sizes = [8, 1], strides = [1, 1]} : vector<8x4xf32> to vector<8x1xf32>
    %646 = vector.extract_strided_slice %591 {offsets = [0, 3], sizes = [8, 1], strides = [1, 1]} : vector<8x4xf32> to vector<8x1xf32>
    %647 = vector.broadcast %643 : vector<8x1xf32> to vector<8x12xf32>
    %648 = arith.mulf %647, %47 : vector<8x12xf32>
    %649 = vector.broadcast %644 : vector<8x1xf32> to vector<8x12xf32>
    %650 = arith.mulf %649, %50 : vector<8x12xf32>
    %651 = vector.broadcast %645 : vector<8x1xf32> to vector<8x12xf32>
    %652 = arith.mulf %651, %53 : vector<8x12xf32>
    %653 = vector.broadcast %646 : vector<8x1xf32> to vector<8x12xf32>
    %654 = arith.mulf %653, %56 : vector<8x12xf32>
    %655 = arith.addf %648, %650 : vector<8x12xf32>
    %656 = arith.addf %652, %654 : vector<8x12xf32>
    %657 = arith.addf %655, %656 : vector<8x12xf32>
    %658 = arith.addf %59, %657 : vector<8x12xf32>
    %659 = vector.extract_strided_slice %642 {offsets = [0, 0], sizes = [8, 8], strides = [1, 1]} : vector<8x12xf32> to vector<8x8xf32>
    %660 = vector.extract_strided_slice %658 {offsets = [0, 0], sizes = [8, 8], strides = [1, 1]} : vector<8x12xf32> to vector<8x8xf32>
    %661 = arith.addf %659, %660 : vector<8x8xf32>
    %662 = math.tanh %661 : vector<8x8xf32>
    %663 = vector.extract_strided_slice %662 {offsets = [0, 0], sizes = [8, 4], strides = [1, 1]} : vector<8x8xf32> to vector<8x4xf32>
    %664 = vector.extract_strided_slice %662 {offsets = [0, 4], sizes = [8, 4], strides = [1, 1]} : vector<8x8xf32> to vector<8x4xf32>
    %665 = vector.extract_strided_slice %658 {offsets = [0, 8], sizes = [8, 4], strides = [1, 1]} : vector<8x12xf32> to vector<8x4xf32>
    %666 = vector.extract_strided_slice %642 {offsets = [0, 8], sizes = [8, 4], strides = [1, 1]} : vector<8x12xf32> to vector<8x4xf32>
    %667 = arith.addf %666, %665 : vector<8x4xf32>
    %668 = arith.mulf %663, %665 : vector<8x4xf32>
    %669 = arith.addf %667, %668 : vector<8x4xf32>
    %670 = math.tanh %669 : vector<8x4xf32>
    %cst_54 = arith.constant 5.000000e-01 : f32
    %671 = vector.broadcast %cst_54 : f32 to vector<8x4xf32>
    %672 = arith.mulf %671, %664 : vector<8x4xf32>
    %cst_55 = arith.constant 5.000000e-01 : f32
    %673 = vector.broadcast %cst_55 : f32 to vector<8x4xf32>
    %674 = arith.addf %672, %673 : vector<8x4xf32>
    %675 = arith.subf %591, %670 : vector<8x4xf32>
    %676 = arith.mulf %674, %675 : vector<8x4xf32>
    %677 = arith.addf %670, %676 : vector<8x4xf32>
    %678 = vector.extract_strided_slice %626 {offsets = [0, 0], sizes = [8, 1], strides = [1, 1]} : vector<8x4xf32> to vector<8x1xf32>
    %679 = vector.extract_strided_slice %626 {offsets = [0, 1], sizes = [8, 1], strides = [1, 1]} : vector<8x4xf32> to vector<8x1xf32>
    %680 = vector.extract_strided_slice %626 {offsets = [0, 2], sizes = [8, 1], strides = [1, 1]} : vector<8x4xf32> to vector<8x1xf32>
    %681 = vector.extract_strided_slice %626 {offsets = [0, 3], sizes = [8, 1], strides = [1, 1]} : vector<8x4xf32> to vector<8x1xf32>
    %682 = vector.broadcast %678 : vector<8x1xf32> to vector<8x12xf32>
    %683 = arith.mulf %682, %17 : vector<8x12xf32>
    %684 = vector.broadcast %679 : vector<8x1xf32> to vector<8x12xf32>
    %685 = arith.mulf %684, %20 : vector<8x12xf32>
    %686 = vector.broadcast %680 : vector<8x1xf32> to vector<8x12xf32>
    %687 = arith.mulf %686, %23 : vector<8x12xf32>
    %688 = vector.broadcast %681 : vector<8x1xf32> to vector<8x12xf32>
    %689 = arith.mulf %688, %26 : vector<8x12xf32>
    %690 = arith.addf %683, %685 : vector<8x12xf32>
    %691 = arith.addf %687, %689 : vector<8x12xf32>
    %692 = arith.addf %690, %691 : vector<8x12xf32>
    %693 = arith.addf %29, %692 : vector<8x12xf32>
    %694 = vector.extract_strided_slice %144 {offsets = [0, 0], sizes = [8, 8], strides = [1, 1]} : vector<8x12xf32> to vector<8x8xf32>
    %695 = vector.extract_strided_slice %693 {offsets = [0, 0], sizes = [8, 8], strides = [1, 1]} : vector<8x12xf32> to vector<8x8xf32>
    %696 = arith.addf %694, %695 : vector<8x8xf32>
    %697 = math.tanh %696 : vector<8x8xf32>
    %698 = vector.extract_strided_slice %697 {offsets = [0, 0], sizes = [8, 4], strides = [1, 1]} : vector<8x8xf32> to vector<8x4xf32>
    %699 = vector.extract_strided_slice %697 {offsets = [0, 4], sizes = [8, 4], strides = [1, 1]} : vector<8x8xf32> to vector<8x4xf32>
    %700 = vector.extract_strided_slice %693 {offsets = [0, 8], sizes = [8, 4], strides = [1, 1]} : vector<8x12xf32> to vector<8x4xf32>
    %701 = vector.extract_strided_slice %144 {offsets = [0, 8], sizes = [8, 4], strides = [1, 1]} : vector<8x12xf32> to vector<8x4xf32>
    %702 = arith.addf %701, %700 : vector<8x4xf32>
    %703 = arith.mulf %698, %700 : vector<8x4xf32>
    %704 = arith.addf %702, %703 : vector<8x4xf32>
    %705 = math.tanh %704 : vector<8x4xf32>
    %cst_56 = arith.constant 5.000000e-01 : f32
    %706 = vector.broadcast %cst_56 : f32 to vector<8x4xf32>
    %707 = arith.mulf %706, %699 : vector<8x4xf32>
    %cst_57 = arith.constant 5.000000e-01 : f32
    %708 = vector.broadcast %cst_57 : f32 to vector<8x4xf32>
    %709 = arith.addf %707, %708 : vector<8x4xf32>
    %710 = arith.subf %626, %705 : vector<8x4xf32>
    %711 = arith.mulf %709, %710 : vector<8x4xf32>
    %712 = arith.addf %705, %711 : vector<8x4xf32>
    %713 = vector.extract_strided_slice %712 {offsets = [0, 0], sizes = [8, 1], strides = [1, 1]} : vector<8x4xf32> to vector<8x1xf32>
    %714 = vector.extract_strided_slice %712 {offsets = [0, 1], sizes = [8, 1], strides = [1, 1]} : vector<8x4xf32> to vector<8x1xf32>
    %715 = vector.extract_strided_slice %712 {offsets = [0, 2], sizes = [8, 1], strides = [1, 1]} : vector<8x4xf32> to vector<8x1xf32>
    %716 = vector.extract_strided_slice %712 {offsets = [0, 3], sizes = [8, 1], strides = [1, 1]} : vector<8x4xf32> to vector<8x1xf32>
    %717 = vector.broadcast %713 : vector<8x1xf32> to vector<8x12xf32>
    %718 = arith.mulf %717, %32 : vector<8x12xf32>
    %719 = vector.broadcast %714 : vector<8x1xf32> to vector<8x12xf32>
    %720 = arith.mulf %719, %35 : vector<8x12xf32>
    %721 = vector.broadcast %715 : vector<8x1xf32> to vector<8x12xf32>
    %722 = arith.mulf %721, %38 : vector<8x12xf32>
    %723 = vector.broadcast %716 : vector<8x1xf32> to vector<8x12xf32>
    %724 = arith.mulf %723, %41 : vector<8x12xf32>
    %725 = arith.addf %718, %720 : vector<8x12xf32>
    %726 = arith.addf %722, %724 : vector<8x12xf32>
    %727 = arith.addf %725, %726 : vector<8x12xf32>
    %728 = arith.addf %44, %727 : vector<8x12xf32>
    %729 = vector.extract_strided_slice %677 {offsets = [0, 0], sizes = [8, 1], strides = [1, 1]} : vector<8x4xf32> to vector<8x1xf32>
    %730 = vector.extract_strided_slice %677 {offsets = [0, 1], sizes = [8, 1], strides = [1, 1]} : vector<8x4xf32> to vector<8x1xf32>
    %731 = vector.extract_strided_slice %677 {offsets = [0, 2], sizes = [8, 1], strides = [1, 1]} : vector<8x4xf32> to vector<8x1xf32>
    %732 = vector.extract_strided_slice %677 {offsets = [0, 3], sizes = [8, 1], strides = [1, 1]} : vector<8x4xf32> to vector<8x1xf32>
    %733 = vector.broadcast %729 : vector<8x1xf32> to vector<8x12xf32>
    %734 = arith.mulf %733, %47 : vector<8x12xf32>
    %735 = vector.broadcast %730 : vector<8x1xf32> to vector<8x12xf32>
    %736 = arith.mulf %735, %50 : vector<8x12xf32>
    %737 = vector.broadcast %731 : vector<8x1xf32> to vector<8x12xf32>
    %738 = arith.mulf %737, %53 : vector<8x12xf32>
    %739 = vector.broadcast %732 : vector<8x1xf32> to vector<8x12xf32>
    %740 = arith.mulf %739, %56 : vector<8x12xf32>
    %741 = arith.addf %734, %736 : vector<8x12xf32>
    %742 = arith.addf %738, %740 : vector<8x12xf32>
    %743 = arith.addf %741, %742 : vector<8x12xf32>
    %744 = arith.addf %59, %743 : vector<8x12xf32>
    %745 = vector.extract_strided_slice %728 {offsets = [0, 0], sizes = [8, 8], strides = [1, 1]} : vector<8x12xf32> to vector<8x8xf32>
    %746 = vector.extract_strided_slice %744 {offsets = [0, 0], sizes = [8, 8], strides = [1, 1]} : vector<8x12xf32> to vector<8x8xf32>
    %747 = arith.addf %745, %746 : vector<8x8xf32>
    %748 = math.tanh %747 : vector<8x8xf32>
    %749 = vector.extract_strided_slice %748 {offsets = [0, 0], sizes = [8, 4], strides = [1, 1]} : vector<8x8xf32> to vector<8x4xf32>
    %750 = vector.extract_strided_slice %748 {offsets = [0, 4], sizes = [8, 4], strides = [1, 1]} : vector<8x8xf32> to vector<8x4xf32>
    %751 = vector.extract_strided_slice %744 {offsets = [0, 8], sizes = [8, 4], strides = [1, 1]} : vector<8x12xf32> to vector<8x4xf32>
    %752 = vector.extract_strided_slice %728 {offsets = [0, 8], sizes = [8, 4], strides = [1, 1]} : vector<8x12xf32> to vector<8x4xf32>
    %753 = arith.addf %752, %751 : vector<8x4xf32>
    %754 = arith.mulf %749, %751 : vector<8x4xf32>
    %755 = arith.addf %753, %754 : vector<8x4xf32>
    %756 = math.tanh %755 : vector<8x4xf32>
    %cst_58 = arith.constant 5.000000e-01 : f32
    %757 = vector.broadcast %cst_58 : f32 to vector<8x4xf32>
    %758 = arith.mulf %757, %750 : vector<8x4xf32>
    %cst_59 = arith.constant 5.000000e-01 : f32
    %759 = vector.broadcast %cst_59 : f32 to vector<8x4xf32>
    %760 = arith.addf %758, %759 : vector<8x4xf32>
    %761 = arith.subf %677, %756 : vector<8x4xf32>
    %762 = arith.mulf %760, %761 : vector<8x4xf32>
    %763 = arith.addf %756, %762 : vector<8x4xf32>
    %764 = vector.extract_strided_slice %712 {offsets = [0, 0], sizes = [8, 1], strides = [1, 1]} : vector<8x4xf32> to vector<8x1xf32>
    %765 = vector.extract_strided_slice %712 {offsets = [0, 1], sizes = [8, 1], strides = [1, 1]} : vector<8x4xf32> to vector<8x1xf32>
    %766 = vector.extract_strided_slice %712 {offsets = [0, 2], sizes = [8, 1], strides = [1, 1]} : vector<8x4xf32> to vector<8x1xf32>
    %767 = vector.extract_strided_slice %712 {offsets = [0, 3], sizes = [8, 1], strides = [1, 1]} : vector<8x4xf32> to vector<8x1xf32>
    %768 = vector.broadcast %764 : vector<8x1xf32> to vector<8x12xf32>
    %769 = arith.mulf %768, %17 : vector<8x12xf32>
    %770 = vector.broadcast %765 : vector<8x1xf32> to vector<8x12xf32>
    %771 = arith.mulf %770, %20 : vector<8x12xf32>
    %772 = vector.broadcast %766 : vector<8x1xf32> to vector<8x12xf32>
    %773 = arith.mulf %772, %23 : vector<8x12xf32>
    %774 = vector.broadcast %767 : vector<8x1xf32> to vector<8x12xf32>
    %775 = arith.mulf %774, %26 : vector<8x12xf32>
    %776 = arith.addf %769, %771 : vector<8x12xf32>
    %777 = arith.addf %773, %775 : vector<8x12xf32>
    %778 = arith.addf %776, %777 : vector<8x12xf32>
    %779 = arith.addf %29, %778 : vector<8x12xf32>
    %780 = vector.extract_strided_slice %161 {offsets = [0, 0], sizes = [8, 8], strides = [1, 1]} : vector<8x12xf32> to vector<8x8xf32>
    %781 = vector.extract_strided_slice %779 {offsets = [0, 0], sizes = [8, 8], strides = [1, 1]} : vector<8x12xf32> to vector<8x8xf32>
    %782 = arith.addf %780, %781 : vector<8x8xf32>
    %783 = math.tanh %782 : vector<8x8xf32>
    %784 = vector.extract_strided_slice %783 {offsets = [0, 0], sizes = [8, 4], strides = [1, 1]} : vector<8x8xf32> to vector<8x4xf32>
    %785 = vector.extract_strided_slice %783 {offsets = [0, 4], sizes = [8, 4], strides = [1, 1]} : vector<8x8xf32> to vector<8x4xf32>
    %786 = vector.extract_strided_slice %779 {offsets = [0, 8], sizes = [8, 4], strides = [1, 1]} : vector<8x12xf32> to vector<8x4xf32>
    %787 = vector.extract_strided_slice %161 {offsets = [0, 8], sizes = [8, 4], strides = [1, 1]} : vector<8x12xf32> to vector<8x4xf32>
    %788 = arith.addf %787, %786 : vector<8x4xf32>
    %789 = arith.mulf %784, %786 : vector<8x4xf32>
    %790 = arith.addf %788, %789 : vector<8x4xf32>
    %791 = math.tanh %790 : vector<8x4xf32>
    %cst_60 = arith.constant 5.000000e-01 : f32
    %792 = vector.broadcast %cst_60 : f32 to vector<8x4xf32>
    %793 = arith.mulf %792, %785 : vector<8x4xf32>
    %cst_61 = arith.constant 5.000000e-01 : f32
    %794 = vector.broadcast %cst_61 : f32 to vector<8x4xf32>
    %795 = arith.addf %793, %794 : vector<8x4xf32>
    %796 = arith.subf %712, %791 : vector<8x4xf32>
    %797 = arith.mulf %795, %796 : vector<8x4xf32>
    %798 = arith.addf %791, %797 : vector<8x4xf32>
    %799 = vector.extract_strided_slice %798 {offsets = [0, 0], sizes = [8, 1], strides = [1, 1]} : vector<8x4xf32> to vector<8x1xf32>
    %800 = vector.extract_strided_slice %798 {offsets = [0, 1], sizes = [8, 1], strides = [1, 1]} : vector<8x4xf32> to vector<8x1xf32>
    %801 = vector.extract_strided_slice %798 {offsets = [0, 2], sizes = [8, 1], strides = [1, 1]} : vector<8x4xf32> to vector<8x1xf32>
    %802 = vector.extract_strided_slice %798 {offsets = [0, 3], sizes = [8, 1], strides = [1, 1]} : vector<8x4xf32> to vector<8x1xf32>
    %803 = vector.broadcast %799 : vector<8x1xf32> to vector<8x12xf32>
    %804 = arith.mulf %803, %32 : vector<8x12xf32>
    %805 = vector.broadcast %800 : vector<8x1xf32> to vector<8x12xf32>
    %806 = arith.mulf %805, %35 : vector<8x12xf32>
    %807 = vector.broadcast %801 : vector<8x1xf32> to vector<8x12xf32>
    %808 = arith.mulf %807, %38 : vector<8x12xf32>
    %809 = vector.broadcast %802 : vector<8x1xf32> to vector<8x12xf32>
    %810 = arith.mulf %809, %41 : vector<8x12xf32>
    %811 = arith.addf %804, %806 : vector<8x12xf32>
    %812 = arith.addf %808, %810 : vector<8x12xf32>
    %813 = arith.addf %811, %812 : vector<8x12xf32>
    %814 = arith.addf %44, %813 : vector<8x12xf32>
    %815 = vector.extract_strided_slice %763 {offsets = [0, 0], sizes = [8, 1], strides = [1, 1]} : vector<8x4xf32> to vector<8x1xf32>
    %816 = vector.extract_strided_slice %763 {offsets = [0, 1], sizes = [8, 1], strides = [1, 1]} : vector<8x4xf32> to vector<8x1xf32>
    %817 = vector.extract_strided_slice %763 {offsets = [0, 2], sizes = [8, 1], strides = [1, 1]} : vector<8x4xf32> to vector<8x1xf32>
    %818 = vector.extract_strided_slice %763 {offsets = [0, 3], sizes = [8, 1], strides = [1, 1]} : vector<8x4xf32> to vector<8x1xf32>
    %819 = vector.broadcast %815 : vector<8x1xf32> to vector<8x12xf32>
    %820 = arith.mulf %819, %47 : vector<8x12xf32>
    %821 = vector.broadcast %816 : vector<8x1xf32> to vector<8x12xf32>
    %822 = arith.mulf %821, %50 : vector<8x12xf32>
    %823 = vector.broadcast %817 : vector<8x1xf32> to vector<8x12xf32>
    %824 = arith.mulf %823, %53 : vector<8x12xf32>
    %825 = vector.broadcast %818 : vector<8x1xf32> to vector<8x12xf32>
    %826 = arith.mulf %825, %56 : vector<8x12xf32>
    %827 = arith.addf %820, %822 : vector<8x12xf32>
    %828 = arith.addf %824, %826 : vector<8x12xf32>
    %829 = arith.addf %827, %828 : vector<8x12xf32>
    %830 = arith.addf %59, %829 : vector<8x12xf32>
    %831 = vector.extract_strided_slice %814 {offsets = [0, 0], sizes = [8, 8], strides = [1, 1]} : vector<8x12xf32> to vector<8x8xf32>
    %832 = vector.extract_strided_slice %830 {offsets = [0, 0], sizes = [8, 8], strides = [1, 1]} : vector<8x12xf32> to vector<8x8xf32>
    %833 = arith.addf %831, %832 : vector<8x8xf32>
    %834 = math.tanh %833 : vector<8x8xf32>
    %835 = vector.extract_strided_slice %834 {offsets = [0, 0], sizes = [8, 4], strides = [1, 1]} : vector<8x8xf32> to vector<8x4xf32>
    %836 = vector.extract_strided_slice %834 {offsets = [0, 4], sizes = [8, 4], strides = [1, 1]} : vector<8x8xf32> to vector<8x4xf32>
    %837 = vector.extract_strided_slice %830 {offsets = [0, 8], sizes = [8, 4], strides = [1, 1]} : vector<8x12xf32> to vector<8x4xf32>
    %838 = vector.extract_strided_slice %814 {offsets = [0, 8], sizes = [8, 4], strides = [1, 1]} : vector<8x12xf32> to vector<8x4xf32>
    %839 = arith.addf %838, %837 : vector<8x4xf32>
    %840 = arith.mulf %835, %837 : vector<8x4xf32>
    %841 = arith.addf %839, %840 : vector<8x4xf32>
    %842 = math.tanh %841 : vector<8x4xf32>
    %cst_62 = arith.constant 5.000000e-01 : f32
    %843 = vector.broadcast %cst_62 : f32 to vector<8x4xf32>
    %844 = arith.mulf %843, %836 : vector<8x4xf32>
    %cst_63 = arith.constant 5.000000e-01 : f32
    %845 = vector.broadcast %cst_63 : f32 to vector<8x4xf32>
    %846 = arith.addf %844, %845 : vector<8x4xf32>
    %847 = arith.subf %763, %842 : vector<8x4xf32>
    %848 = arith.mulf %846, %847 : vector<8x4xf32>
    %849 = arith.addf %842, %848 : vector<8x4xf32>
    %850 = vector.extract_strided_slice %798 {offsets = [0, 0], sizes = [8, 1], strides = [1, 1]} : vector<8x4xf32> to vector<8x1xf32>
    %851 = vector.extract_strided_slice %798 {offsets = [0, 1], sizes = [8, 1], strides = [1, 1]} : vector<8x4xf32> to vector<8x1xf32>
    %852 = vector.extract_strided_slice %798 {offsets = [0, 2], sizes = [8, 1], strides = [1, 1]} : vector<8x4xf32> to vector<8x1xf32>
    %853 = vector.extract_strided_slice %798 {offsets = [0, 3], sizes = [8, 1], strides = [1, 1]} : vector<8x4xf32> to vector<8x1xf32>
    %854 = vector.broadcast %850 : vector<8x1xf32> to vector<8x12xf32>
    %855 = arith.mulf %854, %17 : vector<8x12xf32>
    %856 = vector.broadcast %851 : vector<8x1xf32> to vector<8x12xf32>
    %857 = arith.mulf %856, %20 : vector<8x12xf32>
    %858 = vector.broadcast %852 : vector<8x1xf32> to vector<8x12xf32>
    %859 = arith.mulf %858, %23 : vector<8x12xf32>
    %860 = vector.broadcast %853 : vector<8x1xf32> to vector<8x12xf32>
    %861 = arith.mulf %860, %26 : vector<8x12xf32>
    %862 = arith.addf %855, %857 : vector<8x12xf32>
    %863 = arith.addf %859, %861 : vector<8x12xf32>
    %864 = arith.addf %862, %863 : vector<8x12xf32>
    %865 = arith.addf %29, %864 : vector<8x12xf32>
    %866 = vector.extract_strided_slice %178 {offsets = [0, 0], sizes = [8, 8], strides = [1, 1]} : vector<8x12xf32> to vector<8x8xf32>
    %867 = vector.extract_strided_slice %865 {offsets = [0, 0], sizes = [8, 8], strides = [1, 1]} : vector<8x12xf32> to vector<8x8xf32>
    %868 = arith.addf %866, %867 : vector<8x8xf32>
    %869 = math.tanh %868 : vector<8x8xf32>
    %870 = vector.extract_strided_slice %869 {offsets = [0, 0], sizes = [8, 4], strides = [1, 1]} : vector<8x8xf32> to vector<8x4xf32>
    %871 = vector.extract_strided_slice %869 {offsets = [0, 4], sizes = [8, 4], strides = [1, 1]} : vector<8x8xf32> to vector<8x4xf32>
    %872 = vector.extract_strided_slice %865 {offsets = [0, 8], sizes = [8, 4], strides = [1, 1]} : vector<8x12xf32> to vector<8x4xf32>
    %873 = vector.extract_strided_slice %178 {offsets = [0, 8], sizes = [8, 4], strides = [1, 1]} : vector<8x12xf32> to vector<8x4xf32>
    %874 = arith.addf %873, %872 : vector<8x4xf32>
    %875 = arith.mulf %870, %872 : vector<8x4xf32>
    %876 = arith.addf %874, %875 : vector<8x4xf32>
    %877 = math.tanh %876 : vector<8x4xf32>
    %cst_64 = arith.constant 5.000000e-01 : f32
    %878 = vector.broadcast %cst_64 : f32 to vector<8x4xf32>
    %879 = arith.mulf %878, %871 : vector<8x4xf32>
    %cst_65 = arith.constant 5.000000e-01 : f32
    %880 = vector.broadcast %cst_65 : f32 to vector<8x4xf32>
    %881 = arith.addf %879, %880 : vector<8x4xf32>
    %882 = arith.subf %798, %877 : vector<8x4xf32>
    %883 = arith.mulf %881, %882 : vector<8x4xf32>
    %884 = arith.addf %877, %883 : vector<8x4xf32>
    %885 = vector.extract_strided_slice %884 {offsets = [0, 0], sizes = [8, 1], strides = [1, 1]} : vector<8x4xf32> to vector<8x1xf32>
    %886 = vector.extract_strided_slice %884 {offsets = [0, 1], sizes = [8, 1], strides = [1, 1]} : vector<8x4xf32> to vector<8x1xf32>
    %887 = vector.extract_strided_slice %884 {offsets = [0, 2], sizes = [8, 1], strides = [1, 1]} : vector<8x4xf32> to vector<8x1xf32>
    %888 = vector.extract_strided_slice %884 {offsets = [0, 3], sizes = [8, 1], strides = [1, 1]} : vector<8x4xf32> to vector<8x1xf32>
    %889 = vector.broadcast %885 : vector<8x1xf32> to vector<8x12xf32>
    %890 = arith.mulf %889, %32 : vector<8x12xf32>
    %891 = vector.broadcast %886 : vector<8x1xf32> to vector<8x12xf32>
    %892 = arith.mulf %891, %35 : vector<8x12xf32>
    %893 = vector.broadcast %887 : vector<8x1xf32> to vector<8x12xf32>
    %894 = arith.mulf %893, %38 : vector<8x12xf32>
    %895 = vector.broadcast %888 : vector<8x1xf32> to vector<8x12xf32>
    %896 = arith.mulf %895, %41 : vector<8x12xf32>
    %897 = arith.addf %890, %892 : vector<8x12xf32>
    %898 = arith.addf %894, %896 : vector<8x12xf32>
    %899 = arith.addf %897, %898 : vector<8x12xf32>
    %900 = arith.addf %44, %899 : vector<8x12xf32>
    %901 = vector.extract_strided_slice %849 {offsets = [0, 0], sizes = [8, 1], strides = [1, 1]} : vector<8x4xf32> to vector<8x1xf32>
    %902 = vector.extract_strided_slice %849 {offsets = [0, 1], sizes = [8, 1], strides = [1, 1]} : vector<8x4xf32> to vector<8x1xf32>
    %903 = vector.extract_strided_slice %849 {offsets = [0, 2], sizes = [8, 1], strides = [1, 1]} : vector<8x4xf32> to vector<8x1xf32>
    %904 = vector.extract_strided_slice %849 {offsets = [0, 3], sizes = [8, 1], strides = [1, 1]} : vector<8x4xf32> to vector<8x1xf32>
    %905 = vector.broadcast %901 : vector<8x1xf32> to vector<8x12xf32>
    %906 = arith.mulf %905, %47 : vector<8x12xf32>
    %907 = vector.broadcast %902 : vector<8x1xf32> to vector<8x12xf32>
    %908 = arith.mulf %907, %50 : vector<8x12xf32>
    %909 = vector.broadcast %903 : vector<8x1xf32> to vector<8x12xf32>
    %910 = arith.mulf %909, %53 : vector<8x12xf32>
    %911 = vector.broadcast %904 : vector<8x1xf32> to vector<8x12xf32>
    %912 = arith.mulf %911, %56 : vector<8x12xf32>
    %913 = arith.addf %906, %908 : vector<8x12xf32>
    %914 = arith.addf %910, %912 : vector<8x12xf32>
    %915 = arith.addf %913, %914 : vector<8x12xf32>
    %916 = arith.addf %59, %915 : vector<8x12xf32>
    %917 = vector.extract_strided_slice %900 {offsets = [0, 0], sizes = [8, 8], strides = [1, 1]} : vector<8x12xf32> to vector<8x8xf32>
    %918 = vector.extract_strided_slice %916 {offsets = [0, 0], sizes = [8, 8], strides = [1, 1]} : vector<8x12xf32> to vector<8x8xf32>
    %919 = arith.addf %917, %918 : vector<8x8xf32>
    %920 = math.tanh %919 : vector<8x8xf32>
    %921 = vector.extract_strided_slice %920 {offsets = [0, 0], sizes = [8, 4], strides = [1, 1]} : vector<8x8xf32> to vector<8x4xf32>
    %922 = vector.extract_strided_slice %920 {offsets = [0, 4], sizes = [8, 4], strides = [1, 1]} : vector<8x8xf32> to vector<8x4xf32>
    %923 = vector.extract_strided_slice %916 {offsets = [0, 8], sizes = [8, 4], strides = [1, 1]} : vector<8x12xf32> to vector<8x4xf32>
    %924 = vector.extract_strided_slice %900 {offsets = [0, 8], sizes = [8, 4], strides = [1, 1]} : vector<8x12xf32> to vector<8x4xf32>
    %925 = arith.addf %924, %923 : vector<8x4xf32>
    %926 = arith.mulf %921, %923 : vector<8x4xf32>
    %927 = arith.addf %925, %926 : vector<8x4xf32>
    %928 = math.tanh %927 : vector<8x4xf32>
    %cst_66 = arith.constant 5.000000e-01 : f32
    %929 = vector.broadcast %cst_66 : f32 to vector<8x4xf32>
    %930 = arith.mulf %929, %922 : vector<8x4xf32>
    %cst_67 = arith.constant 5.000000e-01 : f32
    %931 = vector.broadcast %cst_67 : f32 to vector<8x4xf32>
    %932 = arith.addf %930, %931 : vector<8x4xf32>
    %933 = arith.subf %849, %928 : vector<8x4xf32>
    %934 = arith.mulf %932, %933 : vector<8x4xf32>
    %935 = arith.addf %928, %934 : vector<8x4xf32>
    %936 = vector.extract_strided_slice %884 {offsets = [0, 0], sizes = [8, 1], strides = [1, 1]} : vector<8x4xf32> to vector<8x1xf32>
    %937 = vector.extract_strided_slice %884 {offsets = [0, 1], sizes = [8, 1], strides = [1, 1]} : vector<8x4xf32> to vector<8x1xf32>
    %938 = vector.extract_strided_slice %884 {offsets = [0, 2], sizes = [8, 1], strides = [1, 1]} : vector<8x4xf32> to vector<8x1xf32>
    %939 = vector.extract_strided_slice %884 {offsets = [0, 3], sizes = [8, 1], strides = [1, 1]} : vector<8x4xf32> to vector<8x1xf32>
    %940 = vector.broadcast %936 : vector<8x1xf32> to vector<8x12xf32>
    %941 = arith.mulf %940, %17 : vector<8x12xf32>
    %942 = vector.broadcast %937 : vector<8x1xf32> to vector<8x12xf32>
    %943 = arith.mulf %942, %20 : vector<8x12xf32>
    %944 = vector.broadcast %938 : vector<8x1xf32> to vector<8x12xf32>
    %945 = arith.mulf %944, %23 : vector<8x12xf32>
    %946 = vector.broadcast %939 : vector<8x1xf32> to vector<8x12xf32>
    %947 = arith.mulf %946, %26 : vector<8x12xf32>
    %948 = arith.addf %941, %943 : vector<8x12xf32>
    %949 = arith.addf %945, %947 : vector<8x12xf32>
    %950 = arith.addf %948, %949 : vector<8x12xf32>
    %951 = arith.addf %29, %950 : vector<8x12xf32>
    %952 = vector.extract_strided_slice %195 {offsets = [0, 0], sizes = [8, 8], strides = [1, 1]} : vector<8x12xf32> to vector<8x8xf32>
    %953 = vector.extract_strided_slice %951 {offsets = [0, 0], sizes = [8, 8], strides = [1, 1]} : vector<8x12xf32> to vector<8x8xf32>
    %954 = arith.addf %952, %953 : vector<8x8xf32>
    %955 = math.tanh %954 : vector<8x8xf32>
    %956 = vector.extract_strided_slice %955 {offsets = [0, 0], sizes = [8, 4], strides = [1, 1]} : vector<8x8xf32> to vector<8x4xf32>
    %957 = vector.extract_strided_slice %955 {offsets = [0, 4], sizes = [8, 4], strides = [1, 1]} : vector<8x8xf32> to vector<8x4xf32>
    %958 = vector.extract_strided_slice %951 {offsets = [0, 8], sizes = [8, 4], strides = [1, 1]} : vector<8x12xf32> to vector<8x4xf32>
    %959 = vector.extract_strided_slice %195 {offsets = [0, 8], sizes = [8, 4], strides = [1, 1]} : vector<8x12xf32> to vector<8x4xf32>
    %960 = arith.addf %959, %958 : vector<8x4xf32>
    %961 = arith.mulf %956, %958 : vector<8x4xf32>
    %962 = arith.addf %960, %961 : vector<8x4xf32>
    %963 = math.tanh %962 : vector<8x4xf32>
    %cst_68 = arith.constant 5.000000e-01 : f32
    %964 = vector.broadcast %cst_68 : f32 to vector<8x4xf32>
    %965 = arith.mulf %964, %957 : vector<8x4xf32>
    %cst_69 = arith.constant 5.000000e-01 : f32
    %966 = vector.broadcast %cst_69 : f32 to vector<8x4xf32>
    %967 = arith.addf %965, %966 : vector<8x4xf32>
    %968 = arith.subf %884, %963 : vector<8x4xf32>
    %969 = arith.mulf %967, %968 : vector<8x4xf32>
    %970 = arith.addf %963, %969 : vector<8x4xf32>
    %971 = vector.extract_strided_slice %970 {offsets = [0, 0], sizes = [8, 1], strides = [1, 1]} : vector<8x4xf32> to vector<8x1xf32>
    %972 = vector.extract_strided_slice %970 {offsets = [0, 1], sizes = [8, 1], strides = [1, 1]} : vector<8x4xf32> to vector<8x1xf32>
    %973 = vector.extract_strided_slice %970 {offsets = [0, 2], sizes = [8, 1], strides = [1, 1]} : vector<8x4xf32> to vector<8x1xf32>
    %974 = vector.extract_strided_slice %970 {offsets = [0, 3], sizes = [8, 1], strides = [1, 1]} : vector<8x4xf32> to vector<8x1xf32>
    %975 = vector.broadcast %971 : vector<8x1xf32> to vector<8x12xf32>
    %976 = arith.mulf %975, %32 : vector<8x12xf32>
    %977 = vector.broadcast %972 : vector<8x1xf32> to vector<8x12xf32>
    %978 = arith.mulf %977, %35 : vector<8x12xf32>
    %979 = vector.broadcast %973 : vector<8x1xf32> to vector<8x12xf32>
    %980 = arith.mulf %979, %38 : vector<8x12xf32>
    %981 = vector.broadcast %974 : vector<8x1xf32> to vector<8x12xf32>
    %982 = arith.mulf %981, %41 : vector<8x12xf32>
    %983 = arith.addf %976, %978 : vector<8x12xf32>
    %984 = arith.addf %980, %982 : vector<8x12xf32>
    %985 = arith.addf %983, %984 : vector<8x12xf32>
    %986 = arith.addf %44, %985 : vector<8x12xf32>
    %987 = vector.extract_strided_slice %935 {offsets = [0, 0], sizes = [8, 1], strides = [1, 1]} : vector<8x4xf32> to vector<8x1xf32>
    %988 = vector.extract_strided_slice %935 {offsets = [0, 1], sizes = [8, 1], strides = [1, 1]} : vector<8x4xf32> to vector<8x1xf32>
    %989 = vector.extract_strided_slice %935 {offsets = [0, 2], sizes = [8, 1], strides = [1, 1]} : vector<8x4xf32> to vector<8x1xf32>
    %990 = vector.extract_strided_slice %935 {offsets = [0, 3], sizes = [8, 1], strides = [1, 1]} : vector<8x4xf32> to vector<8x1xf32>
    %991 = vector.broadcast %987 : vector<8x1xf32> to vector<8x12xf32>
    %992 = arith.mulf %991, %47 : vector<8x12xf32>
    %993 = vector.broadcast %988 : vector<8x1xf32> to vector<8x12xf32>
    %994 = arith.mulf %993, %50 : vector<8x12xf32>
    %995 = vector.broadcast %989 : vector<8x1xf32> to vector<8x12xf32>
    %996 = arith.mulf %995, %53 : vector<8x12xf32>
    %997 = vector.broadcast %990 : vector<8x1xf32> to vector<8x12xf32>
    %998 = arith.mulf %997, %56 : vector<8x12xf32>
    %999 = arith.addf %992, %994 : vector<8x12xf32>
    %1000 = arith.addf %996, %998 : vector<8x12xf32>
    %1001 = arith.addf %999, %1000 : vector<8x12xf32>
    %1002 = arith.addf %59, %1001 : vector<8x12xf32>
    %1003 = vector.extract_strided_slice %986 {offsets = [0, 0], sizes = [8, 8], strides = [1, 1]} : vector<8x12xf32> to vector<8x8xf32>
    %1004 = vector.extract_strided_slice %1002 {offsets = [0, 0], sizes = [8, 8], strides = [1, 1]} : vector<8x12xf32> to vector<8x8xf32>
    %1005 = arith.addf %1003, %1004 : vector<8x8xf32>
    %1006 = math.tanh %1005 : vector<8x8xf32>
    %1007 = vector.extract_strided_slice %1006 {offsets = [0, 0], sizes = [8, 4], strides = [1, 1]} : vector<8x8xf32> to vector<8x4xf32>
    %1008 = vector.extract_strided_slice %1006 {offsets = [0, 4], sizes = [8, 4], strides = [1, 1]} : vector<8x8xf32> to vector<8x4xf32>
    %1009 = vector.extract_strided_slice %1002 {offsets = [0, 8], sizes = [8, 4], strides = [1, 1]} : vector<8x12xf32> to vector<8x4xf32>
    %1010 = vector.extract_strided_slice %986 {offsets = [0, 8], sizes = [8, 4], strides = [1, 1]} : vector<8x12xf32> to vector<8x4xf32>
    %1011 = arith.addf %1010, %1009 : vector<8x4xf32>
    %1012 = arith.mulf %1007, %1009 : vector<8x4xf32>
    %1013 = arith.addf %1011, %1012 : vector<8x4xf32>
    %1014 = math.tanh %1013 : vector<8x4xf32>
    %cst_70 = arith.constant 5.000000e-01 : f32
    %1015 = vector.broadcast %cst_70 : f32 to vector<8x4xf32>
    %1016 = arith.mulf %1015, %1008 : vector<8x4xf32>
    %cst_71 = arith.constant 5.000000e-01 : f32
    %1017 = vector.broadcast %cst_71 : f32 to vector<8x4xf32>
    %1018 = arith.addf %1016, %1017 : vector<8x4xf32>
    %1019 = arith.subf %935, %1014 : vector<8x4xf32>
    %1020 = arith.mulf %1018, %1019 : vector<8x4xf32>
    %1021 = arith.addf %1014, %1020 : vector<8x4xf32>
    %1022 = vector.extract_strided_slice %970 {offsets = [0, 0], sizes = [8, 1], strides = [1, 1]} : vector<8x4xf32> to vector<8x1xf32>
    %1023 = vector.extract_strided_slice %970 {offsets = [0, 1], sizes = [8, 1], strides = [1, 1]} : vector<8x4xf32> to vector<8x1xf32>
    %1024 = vector.extract_strided_slice %970 {offsets = [0, 2], sizes = [8, 1], strides = [1, 1]} : vector<8x4xf32> to vector<8x1xf32>
    %1025 = vector.extract_strided_slice %970 {offsets = [0, 3], sizes = [8, 1], strides = [1, 1]} : vector<8x4xf32> to vector<8x1xf32>
    %1026 = vector.broadcast %1022 : vector<8x1xf32> to vector<8x12xf32>
    %1027 = arith.mulf %1026, %17 : vector<8x12xf32>
    %1028 = vector.broadcast %1023 : vector<8x1xf32> to vector<8x12xf32>
    %1029 = arith.mulf %1028, %20 : vector<8x12xf32>
    %1030 = vector.broadcast %1024 : vector<8x1xf32> to vector<8x12xf32>
    %1031 = arith.mulf %1030, %23 : vector<8x12xf32>
    %1032 = vector.broadcast %1025 : vector<8x1xf32> to vector<8x12xf32>
    %1033 = arith.mulf %1032, %26 : vector<8x12xf32>
    %1034 = arith.addf %1027, %1029 : vector<8x12xf32>
    %1035 = arith.addf %1031, %1033 : vector<8x12xf32>
    %1036 = arith.addf %1034, %1035 : vector<8x12xf32>
    %1037 = arith.addf %29, %1036 : vector<8x12xf32>
    %1038 = vector.extract_strided_slice %212 {offsets = [0, 0], sizes = [8, 8], strides = [1, 1]} : vector<8x12xf32> to vector<8x8xf32>
    %1039 = vector.extract_strided_slice %1037 {offsets = [0, 0], sizes = [8, 8], strides = [1, 1]} : vector<8x12xf32> to vector<8x8xf32>
    %1040 = arith.addf %1038, %1039 : vector<8x8xf32>
    %1041 = math.tanh %1040 : vector<8x8xf32>
    %1042 = vector.extract_strided_slice %1041 {offsets = [0, 0], sizes = [8, 4], strides = [1, 1]} : vector<8x8xf32> to vector<8x4xf32>
    %1043 = vector.extract_strided_slice %1041 {offsets = [0, 4], sizes = [8, 4], strides = [1, 1]} : vector<8x8xf32> to vector<8x4xf32>
    %1044 = vector.extract_strided_slice %1037 {offsets = [0, 8], sizes = [8, 4], strides = [1, 1]} : vector<8x12xf32> to vector<8x4xf32>
    %1045 = vector.extract_strided_slice %212 {offsets = [0, 8], sizes = [8, 4], strides = [1, 1]} : vector<8x12xf32> to vector<8x4xf32>
    %1046 = arith.addf %1045, %1044 : vector<8x4xf32>
    %1047 = arith.mulf %1042, %1044 : vector<8x4xf32>
    %1048 = arith.addf %1046, %1047 : vector<8x4xf32>
    %1049 = math.tanh %1048 : vector<8x4xf32>
    %cst_72 = arith.constant 5.000000e-01 : f32
    %1050 = vector.broadcast %cst_72 : f32 to vector<8x4xf32>
    %1051 = arith.mulf %1050, %1043 : vector<8x4xf32>
    %cst_73 = arith.constant 5.000000e-01 : f32
    %1052 = vector.broadcast %cst_73 : f32 to vector<8x4xf32>
    %1053 = arith.addf %1051, %1052 : vector<8x4xf32>
    %1054 = arith.subf %970, %1049 : vector<8x4xf32>
    %1055 = arith.mulf %1053, %1054 : vector<8x4xf32>
    %1056 = arith.addf %1049, %1055 : vector<8x4xf32>
    %1057 = vector.extract_strided_slice %1056 {offsets = [0, 0], sizes = [8, 1], strides = [1, 1]} : vector<8x4xf32> to vector<8x1xf32>
    %1058 = vector.extract_strided_slice %1056 {offsets = [0, 1], sizes = [8, 1], strides = [1, 1]} : vector<8x4xf32> to vector<8x1xf32>
    %1059 = vector.extract_strided_slice %1056 {offsets = [0, 2], sizes = [8, 1], strides = [1, 1]} : vector<8x4xf32> to vector<8x1xf32>
    %1060 = vector.extract_strided_slice %1056 {offsets = [0, 3], sizes = [8, 1], strides = [1, 1]} : vector<8x4xf32> to vector<8x1xf32>
    %1061 = vector.broadcast %1057 : vector<8x1xf32> to vector<8x12xf32>
    %1062 = arith.mulf %1061, %32 : vector<8x12xf32>
    %1063 = vector.broadcast %1058 : vector<8x1xf32> to vector<8x12xf32>
    %1064 = arith.mulf %1063, %35 : vector<8x12xf32>
    %1065 = vector.broadcast %1059 : vector<8x1xf32> to vector<8x12xf32>
    %1066 = arith.mulf %1065, %38 : vector<8x12xf32>
    %1067 = vector.broadcast %1060 : vector<8x1xf32> to vector<8x12xf32>
    %1068 = arith.mulf %1067, %41 : vector<8x12xf32>
    %1069 = arith.addf %1062, %1064 : vector<8x12xf32>
    %1070 = arith.addf %1066, %1068 : vector<8x12xf32>
    %1071 = arith.addf %1069, %1070 : vector<8x12xf32>
    %1072 = arith.addf %44, %1071 : vector<8x12xf32>
    %1073 = vector.extract_strided_slice %1021 {offsets = [0, 0], sizes = [8, 1], strides = [1, 1]} : vector<8x4xf32> to vector<8x1xf32>
    %1074 = vector.extract_strided_slice %1021 {offsets = [0, 1], sizes = [8, 1], strides = [1, 1]} : vector<8x4xf32> to vector<8x1xf32>
    %1075 = vector.extract_strided_slice %1021 {offsets = [0, 2], sizes = [8, 1], strides = [1, 1]} : vector<8x4xf32> to vector<8x1xf32>
    %1076 = vector.extract_strided_slice %1021 {offsets = [0, 3], sizes = [8, 1], strides = [1, 1]} : vector<8x4xf32> to vector<8x1xf32>
    %1077 = vector.broadcast %1073 : vector<8x1xf32> to vector<8x12xf32>
    %1078 = arith.mulf %1077, %47 : vector<8x12xf32>
    %1079 = vector.broadcast %1074 : vector<8x1xf32> to vector<8x12xf32>
    %1080 = arith.mulf %1079, %50 : vector<8x12xf32>
    %1081 = vector.broadcast %1075 : vector<8x1xf32> to vector<8x12xf32>
    %1082 = arith.mulf %1081, %53 : vector<8x12xf32>
    %1083 = vector.broadcast %1076 : vector<8x1xf32> to vector<8x12xf32>
    %1084 = arith.mulf %1083, %56 : vector<8x12xf32>
    %1085 = arith.addf %1078, %1080 : vector<8x12xf32>
    %1086 = arith.addf %1082, %1084 : vector<8x12xf32>
    %1087 = arith.addf %1085, %1086 : vector<8x12xf32>
    %1088 = arith.addf %59, %1087 : vector<8x12xf32>
    %1089 = vector.extract_strided_slice %1072 {offsets = [0, 0], sizes = [8, 8], strides = [1, 1]} : vector<8x12xf32> to vector<8x8xf32>
    %1090 = vector.extract_strided_slice %1088 {offsets = [0, 0], sizes = [8, 8], strides = [1, 1]} : vector<8x12xf32> to vector<8x8xf32>
    %1091 = arith.addf %1089, %1090 : vector<8x8xf32>
    %1092 = math.tanh %1091 : vector<8x8xf32>
    %1093 = vector.extract_strided_slice %1092 {offsets = [0, 0], sizes = [8, 4], strides = [1, 1]} : vector<8x8xf32> to vector<8x4xf32>
    %1094 = vector.extract_strided_slice %1092 {offsets = [0, 4], sizes = [8, 4], strides = [1, 1]} : vector<8x8xf32> to vector<8x4xf32>
    %1095 = vector.extract_strided_slice %1088 {offsets = [0, 8], sizes = [8, 4], strides = [1, 1]} : vector<8x12xf32> to vector<8x4xf32>
    %1096 = vector.extract_strided_slice %1072 {offsets = [0, 8], sizes = [8, 4], strides = [1, 1]} : vector<8x12xf32> to vector<8x4xf32>
    %1097 = arith.addf %1096, %1095 : vector<8x4xf32>
    %1098 = arith.mulf %1093, %1095 : vector<8x4xf32>
    %1099 = arith.addf %1097, %1098 : vector<8x4xf32>
    %1100 = math.tanh %1099 : vector<8x4xf32>
    %cst_74 = arith.constant 5.000000e-01 : f32
    %1101 = vector.broadcast %cst_74 : f32 to vector<8x4xf32>
    %1102 = arith.mulf %1101, %1094 : vector<8x4xf32>
    %cst_75 = arith.constant 5.000000e-01 : f32
    %1103 = vector.broadcast %cst_75 : f32 to vector<8x4xf32>
    %1104 = arith.addf %1102, %1103 : vector<8x4xf32>
    %1105 = arith.subf %1021, %1100 : vector<8x4xf32>
    %1106 = arith.mulf %1104, %1105 : vector<8x4xf32>
    %1107 = arith.addf %1100, %1106 : vector<8x4xf32>
    %1108 = vector.extract_strided_slice %1056 {offsets = [0, 0], sizes = [8, 1], strides = [1, 1]} : vector<8x4xf32> to vector<8x1xf32>
    %1109 = vector.extract_strided_slice %1056 {offsets = [0, 1], sizes = [8, 1], strides = [1, 1]} : vector<8x4xf32> to vector<8x1xf32>
    %1110 = vector.extract_strided_slice %1056 {offsets = [0, 2], sizes = [8, 1], strides = [1, 1]} : vector<8x4xf32> to vector<8x1xf32>
    %1111 = vector.extract_strided_slice %1056 {offsets = [0, 3], sizes = [8, 1], strides = [1, 1]} : vector<8x4xf32> to vector<8x1xf32>
    %1112 = vector.broadcast %1108 : vector<8x1xf32> to vector<8x12xf32>
    %1113 = arith.mulf %1112, %17 : vector<8x12xf32>
    %1114 = vector.broadcast %1109 : vector<8x1xf32> to vector<8x12xf32>
    %1115 = arith.mulf %1114, %20 : vector<8x12xf32>
    %1116 = vector.broadcast %1110 : vector<8x1xf32> to vector<8x12xf32>
    %1117 = arith.mulf %1116, %23 : vector<8x12xf32>
    %1118 = vector.broadcast %1111 : vector<8x1xf32> to vector<8x12xf32>
    %1119 = arith.mulf %1118, %26 : vector<8x12xf32>
    %1120 = arith.addf %1113, %1115 : vector<8x12xf32>
    %1121 = arith.addf %1117, %1119 : vector<8x12xf32>
    %1122 = arith.addf %1120, %1121 : vector<8x12xf32>
    %1123 = arith.addf %29, %1122 : vector<8x12xf32>
    %1124 = vector.extract_strided_slice %229 {offsets = [0, 0], sizes = [8, 8], strides = [1, 1]} : vector<8x12xf32> to vector<8x8xf32>
    %1125 = vector.extract_strided_slice %1123 {offsets = [0, 0], sizes = [8, 8], strides = [1, 1]} : vector<8x12xf32> to vector<8x8xf32>
    %1126 = arith.addf %1124, %1125 : vector<8x8xf32>
    %1127 = math.tanh %1126 : vector<8x8xf32>
    %1128 = vector.extract_strided_slice %1127 {offsets = [0, 0], sizes = [8, 4], strides = [1, 1]} : vector<8x8xf32> to vector<8x4xf32>
    %1129 = vector.extract_strided_slice %1127 {offsets = [0, 4], sizes = [8, 4], strides = [1, 1]} : vector<8x8xf32> to vector<8x4xf32>
    %1130 = vector.extract_strided_slice %1123 {offsets = [0, 8], sizes = [8, 4], strides = [1, 1]} : vector<8x12xf32> to vector<8x4xf32>
    %1131 = vector.extract_strided_slice %229 {offsets = [0, 8], sizes = [8, 4], strides = [1, 1]} : vector<8x12xf32> to vector<8x4xf32>
    %1132 = arith.addf %1131, %1130 : vector<8x4xf32>
    %1133 = arith.mulf %1128, %1130 : vector<8x4xf32>
    %1134 = arith.addf %1132, %1133 : vector<8x4xf32>
    %1135 = math.tanh %1134 : vector<8x4xf32>
    %cst_76 = arith.constant 5.000000e-01 : f32
    %1136 = vector.broadcast %cst_76 : f32 to vector<8x4xf32>
    %1137 = arith.mulf %1136, %1129 : vector<8x4xf32>
    %cst_77 = arith.constant 5.000000e-01 : f32
    %1138 = vector.broadcast %cst_77 : f32 to vector<8x4xf32>
    %1139 = arith.addf %1137, %1138 : vector<8x4xf32>
    %1140 = arith.subf %1056, %1135 : vector<8x4xf32>
    %1141 = arith.mulf %1139, %1140 : vector<8x4xf32>
    %1142 = arith.addf %1135, %1141 : vector<8x4xf32>
    %1143 = vector.extract_strided_slice %1142 {offsets = [0, 0], sizes = [8, 1], strides = [1, 1]} : vector<8x4xf32> to vector<8x1xf32>
    %1144 = vector.extract_strided_slice %1142 {offsets = [0, 1], sizes = [8, 1], strides = [1, 1]} : vector<8x4xf32> to vector<8x1xf32>
    %1145 = vector.extract_strided_slice %1142 {offsets = [0, 2], sizes = [8, 1], strides = [1, 1]} : vector<8x4xf32> to vector<8x1xf32>
    %1146 = vector.extract_strided_slice %1142 {offsets = [0, 3], sizes = [8, 1], strides = [1, 1]} : vector<8x4xf32> to vector<8x1xf32>
    %1147 = vector.broadcast %1143 : vector<8x1xf32> to vector<8x12xf32>
    %1148 = arith.mulf %1147, %32 : vector<8x12xf32>
    %1149 = vector.broadcast %1144 : vector<8x1xf32> to vector<8x12xf32>
    %1150 = arith.mulf %1149, %35 : vector<8x12xf32>
    %1151 = vector.broadcast %1145 : vector<8x1xf32> to vector<8x12xf32>
    %1152 = arith.mulf %1151, %38 : vector<8x12xf32>
    %1153 = vector.broadcast %1146 : vector<8x1xf32> to vector<8x12xf32>
    %1154 = arith.mulf %1153, %41 : vector<8x12xf32>
    %1155 = arith.addf %1148, %1150 : vector<8x12xf32>
    %1156 = arith.addf %1152, %1154 : vector<8x12xf32>
    %1157 = arith.addf %1155, %1156 : vector<8x12xf32>
    %1158 = arith.addf %44, %1157 : vector<8x12xf32>
    %1159 = vector.extract_strided_slice %1107 {offsets = [0, 0], sizes = [8, 1], strides = [1, 1]} : vector<8x4xf32> to vector<8x1xf32>
    %1160 = vector.extract_strided_slice %1107 {offsets = [0, 1], sizes = [8, 1], strides = [1, 1]} : vector<8x4xf32> to vector<8x1xf32>
    %1161 = vector.extract_strided_slice %1107 {offsets = [0, 2], sizes = [8, 1], strides = [1, 1]} : vector<8x4xf32> to vector<8x1xf32>
    %1162 = vector.extract_strided_slice %1107 {offsets = [0, 3], sizes = [8, 1], strides = [1, 1]} : vector<8x4xf32> to vector<8x1xf32>
    %1163 = vector.broadcast %1159 : vector<8x1xf32> to vector<8x12xf32>
    %1164 = arith.mulf %1163, %47 : vector<8x12xf32>
    %1165 = vector.broadcast %1160 : vector<8x1xf32> to vector<8x12xf32>
    %1166 = arith.mulf %1165, %50 : vector<8x12xf32>
    %1167 = vector.broadcast %1161 : vector<8x1xf32> to vector<8x12xf32>
    %1168 = arith.mulf %1167, %53 : vector<8x12xf32>
    %1169 = vector.broadcast %1162 : vector<8x1xf32> to vector<8x12xf32>
    %1170 = arith.mulf %1169, %56 : vector<8x12xf32>
    %1171 = arith.addf %1164, %1166 : vector<8x12xf32>
    %1172 = arith.addf %1168, %1170 : vector<8x12xf32>
    %1173 = arith.addf %1171, %1172 : vector<8x12xf32>
    %1174 = arith.addf %59, %1173 : vector<8x12xf32>
    %1175 = vector.extract_strided_slice %1158 {offsets = [0, 0], sizes = [8, 8], strides = [1, 1]} : vector<8x12xf32> to vector<8x8xf32>
    %1176 = vector.extract_strided_slice %1174 {offsets = [0, 0], sizes = [8, 8], strides = [1, 1]} : vector<8x12xf32> to vector<8x8xf32>
    %1177 = arith.addf %1175, %1176 : vector<8x8xf32>
    %1178 = math.tanh %1177 : vector<8x8xf32>
    %1179 = vector.extract_strided_slice %1178 {offsets = [0, 0], sizes = [8, 4], strides = [1, 1]} : vector<8x8xf32> to vector<8x4xf32>
    %1180 = vector.extract_strided_slice %1178 {offsets = [0, 4], sizes = [8, 4], strides = [1, 1]} : vector<8x8xf32> to vector<8x4xf32>
    %1181 = vector.extract_strided_slice %1174 {offsets = [0, 8], sizes = [8, 4], strides = [1, 1]} : vector<8x12xf32> to vector<8x4xf32>
    %1182 = vector.extract_strided_slice %1158 {offsets = [0, 8], sizes = [8, 4], strides = [1, 1]} : vector<8x12xf32> to vector<8x4xf32>
    %1183 = arith.addf %1182, %1181 : vector<8x4xf32>
    %1184 = arith.mulf %1179, %1181 : vector<8x4xf32>
    %1185 = arith.addf %1183, %1184 : vector<8x4xf32>
    %1186 = math.tanh %1185 : vector<8x4xf32>
    %cst_78 = arith.constant 5.000000e-01 : f32
    %1187 = vector.broadcast %cst_78 : f32 to vector<8x4xf32>
    %1188 = arith.mulf %1187, %1180 : vector<8x4xf32>
    %cst_79 = arith.constant 5.000000e-01 : f32
    %1189 = vector.broadcast %cst_79 : f32 to vector<8x4xf32>
    %1190 = arith.addf %1188, %1189 : vector<8x4xf32>
    %1191 = arith.subf %1107, %1186 : vector<8x4xf32>
    %1192 = arith.mulf %1190, %1191 : vector<8x4xf32>
    %1193 = arith.addf %1186, %1192 : vector<8x4xf32>
    %1194 = vector.extract_strided_slice %1142 {offsets = [0, 0], sizes = [8, 1], strides = [1, 1]} : vector<8x4xf32> to vector<8x1xf32>
    %1195 = vector.extract_strided_slice %1142 {offsets = [0, 1], sizes = [8, 1], strides = [1, 1]} : vector<8x4xf32> to vector<8x1xf32>
    %1196 = vector.extract_strided_slice %1142 {offsets = [0, 2], sizes = [8, 1], strides = [1, 1]} : vector<8x4xf32> to vector<8x1xf32>
    %1197 = vector.extract_strided_slice %1142 {offsets = [0, 3], sizes = [8, 1], strides = [1, 1]} : vector<8x4xf32> to vector<8x1xf32>
    %1198 = vector.broadcast %1194 : vector<8x1xf32> to vector<8x12xf32>
    %1199 = arith.mulf %1198, %17 : vector<8x12xf32>
    %1200 = vector.broadcast %1195 : vector<8x1xf32> to vector<8x12xf32>
    %1201 = arith.mulf %1200, %20 : vector<8x12xf32>
    %1202 = vector.broadcast %1196 : vector<8x1xf32> to vector<8x12xf32>
    %1203 = arith.mulf %1202, %23 : vector<8x12xf32>
    %1204 = vector.broadcast %1197 : vector<8x1xf32> to vector<8x12xf32>
    %1205 = arith.mulf %1204, %26 : vector<8x12xf32>
    %1206 = arith.addf %1199, %1201 : vector<8x12xf32>
    %1207 = arith.addf %1203, %1205 : vector<8x12xf32>
    %1208 = arith.addf %1206, %1207 : vector<8x12xf32>
    %1209 = arith.addf %29, %1208 : vector<8x12xf32>
    %1210 = vector.extract_strided_slice %246 {offsets = [0, 0], sizes = [8, 8], strides = [1, 1]} : vector<8x12xf32> to vector<8x8xf32>
    %1211 = vector.extract_strided_slice %1209 {offsets = [0, 0], sizes = [8, 8], strides = [1, 1]} : vector<8x12xf32> to vector<8x8xf32>
    %1212 = arith.addf %1210, %1211 : vector<8x8xf32>
    %1213 = math.tanh %1212 : vector<8x8xf32>
    %1214 = vector.extract_strided_slice %1213 {offsets = [0, 0], sizes = [8, 4], strides = [1, 1]} : vector<8x8xf32> to vector<8x4xf32>
    %1215 = vector.extract_strided_slice %1213 {offsets = [0, 4], sizes = [8, 4], strides = [1, 1]} : vector<8x8xf32> to vector<8x4xf32>
    %1216 = vector.extract_strided_slice %1209 {offsets = [0, 8], sizes = [8, 4], strides = [1, 1]} : vector<8x12xf32> to vector<8x4xf32>
    %1217 = vector.extract_strided_slice %246 {offsets = [0, 8], sizes = [8, 4], strides = [1, 1]} : vector<8x12xf32> to vector<8x4xf32>
    %1218 = arith.addf %1217, %1216 : vector<8x4xf32>
    %1219 = arith.mulf %1214, %1216 : vector<8x4xf32>
    %1220 = arith.addf %1218, %1219 : vector<8x4xf32>
    %1221 = math.tanh %1220 : vector<8x4xf32>
    %cst_80 = arith.constant 5.000000e-01 : f32
    %1222 = vector.broadcast %cst_80 : f32 to vector<8x4xf32>
    %1223 = arith.mulf %1222, %1215 : vector<8x4xf32>
    %cst_81 = arith.constant 5.000000e-01 : f32
    %1224 = vector.broadcast %cst_81 : f32 to vector<8x4xf32>
    %1225 = arith.addf %1223, %1224 : vector<8x4xf32>
    %1226 = arith.subf %1142, %1221 : vector<8x4xf32>
    %1227 = arith.mulf %1225, %1226 : vector<8x4xf32>
    %1228 = arith.addf %1221, %1227 : vector<8x4xf32>
    %1229 = vector.extract_strided_slice %1228 {offsets = [0, 0], sizes = [8, 1], strides = [1, 1]} : vector<8x4xf32> to vector<8x1xf32>
    %1230 = vector.extract_strided_slice %1228 {offsets = [0, 1], sizes = [8, 1], strides = [1, 1]} : vector<8x4xf32> to vector<8x1xf32>
    %1231 = vector.extract_strided_slice %1228 {offsets = [0, 2], sizes = [8, 1], strides = [1, 1]} : vector<8x4xf32> to vector<8x1xf32>
    %1232 = vector.extract_strided_slice %1228 {offsets = [0, 3], sizes = [8, 1], strides = [1, 1]} : vector<8x4xf32> to vector<8x1xf32>
    %1233 = vector.broadcast %1229 : vector<8x1xf32> to vector<8x12xf32>
    %1234 = arith.mulf %1233, %32 : vector<8x12xf32>
    %1235 = vector.broadcast %1230 : vector<8x1xf32> to vector<8x12xf32>
    %1236 = arith.mulf %1235, %35 : vector<8x12xf32>
    %1237 = vector.broadcast %1231 : vector<8x1xf32> to vector<8x12xf32>
    %1238 = arith.mulf %1237, %38 : vector<8x12xf32>
    %1239 = vector.broadcast %1232 : vector<8x1xf32> to vector<8x12xf32>
    %1240 = arith.mulf %1239, %41 : vector<8x12xf32>
    %1241 = arith.addf %1234, %1236 : vector<8x12xf32>
    %1242 = arith.addf %1238, %1240 : vector<8x12xf32>
    %1243 = arith.addf %1241, %1242 : vector<8x12xf32>
    %1244 = arith.addf %44, %1243 : vector<8x12xf32>
    %1245 = vector.extract_strided_slice %1193 {offsets = [0, 0], sizes = [8, 1], strides = [1, 1]} : vector<8x4xf32> to vector<8x1xf32>
    %1246 = vector.extract_strided_slice %1193 {offsets = [0, 1], sizes = [8, 1], strides = [1, 1]} : vector<8x4xf32> to vector<8x1xf32>
    %1247 = vector.extract_strided_slice %1193 {offsets = [0, 2], sizes = [8, 1], strides = [1, 1]} : vector<8x4xf32> to vector<8x1xf32>
    %1248 = vector.extract_strided_slice %1193 {offsets = [0, 3], sizes = [8, 1], strides = [1, 1]} : vector<8x4xf32> to vector<8x1xf32>
    %1249 = vector.broadcast %1245 : vector<8x1xf32> to vector<8x12xf32>
    %1250 = arith.mulf %1249, %47 : vector<8x12xf32>
    %1251 = vector.broadcast %1246 : vector<8x1xf32> to vector<8x12xf32>
    %1252 = arith.mulf %1251, %50 : vector<8x12xf32>
    %1253 = vector.broadcast %1247 : vector<8x1xf32> to vector<8x12xf32>
    %1254 = arith.mulf %1253, %53 : vector<8x12xf32>
    %1255 = vector.broadcast %1248 : vector<8x1xf32> to vector<8x12xf32>
    %1256 = arith.mulf %1255, %56 : vector<8x12xf32>
    %1257 = arith.addf %1250, %1252 : vector<8x12xf32>
    %1258 = arith.addf %1254, %1256 : vector<8x12xf32>
    %1259 = arith.addf %1257, %1258 : vector<8x12xf32>
    %1260 = arith.addf %59, %1259 : vector<8x12xf32>
    %1261 = vector.extract_strided_slice %1244 {offsets = [0, 0], sizes = [8, 8], strides = [1, 1]} : vector<8x12xf32> to vector<8x8xf32>
    %1262 = vector.extract_strided_slice %1260 {offsets = [0, 0], sizes = [8, 8], strides = [1, 1]} : vector<8x12xf32> to vector<8x8xf32>
    %1263 = arith.addf %1261, %1262 : vector<8x8xf32>
    %1264 = math.tanh %1263 : vector<8x8xf32>
    %1265 = vector.extract_strided_slice %1264 {offsets = [0, 0], sizes = [8, 4], strides = [1, 1]} : vector<8x8xf32> to vector<8x4xf32>
    %1266 = vector.extract_strided_slice %1264 {offsets = [0, 4], sizes = [8, 4], strides = [1, 1]} : vector<8x8xf32> to vector<8x4xf32>
    %1267 = vector.extract_strided_slice %1260 {offsets = [0, 8], sizes = [8, 4], strides = [1, 1]} : vector<8x12xf32> to vector<8x4xf32>
    %1268 = vector.extract_strided_slice %1244 {offsets = [0, 8], sizes = [8, 4], strides = [1, 1]} : vector<8x12xf32> to vector<8x4xf32>
    %1269 = arith.addf %1268, %1267 : vector<8x4xf32>
    %1270 = arith.mulf %1265, %1267 : vector<8x4xf32>
    %1271 = arith.addf %1269, %1270 : vector<8x4xf32>
    %1272 = math.tanh %1271 : vector<8x4xf32>
    %cst_82 = arith.constant 5.000000e-01 : f32
    %1273 = vector.broadcast %cst_82 : f32 to vector<8x4xf32>
    %1274 = arith.mulf %1273, %1266 : vector<8x4xf32>
    %cst_83 = arith.constant 5.000000e-01 : f32
    %1275 = vector.broadcast %cst_83 : f32 to vector<8x4xf32>
    %1276 = arith.addf %1274, %1275 : vector<8x4xf32>
    %1277 = arith.subf %1193, %1272 : vector<8x4xf32>
    %1278 = arith.mulf %1276, %1277 : vector<8x4xf32>
    %1279 = arith.addf %1272, %1278 : vector<8x4xf32>
    %1280 = vector.extract_strided_slice %1228 {offsets = [0, 0], sizes = [8, 1], strides = [1, 1]} : vector<8x4xf32> to vector<8x1xf32>
    %1281 = vector.extract_strided_slice %1228 {offsets = [0, 1], sizes = [8, 1], strides = [1, 1]} : vector<8x4xf32> to vector<8x1xf32>
    %1282 = vector.extract_strided_slice %1228 {offsets = [0, 2], sizes = [8, 1], strides = [1, 1]} : vector<8x4xf32> to vector<8x1xf32>
    %1283 = vector.extract_strided_slice %1228 {offsets = [0, 3], sizes = [8, 1], strides = [1, 1]} : vector<8x4xf32> to vector<8x1xf32>
    %1284 = vector.broadcast %1280 : vector<8x1xf32> to vector<8x12xf32>
    %1285 = arith.mulf %1284, %17 : vector<8x12xf32>
    %1286 = vector.broadcast %1281 : vector<8x1xf32> to vector<8x12xf32>
    %1287 = arith.mulf %1286, %20 : vector<8x12xf32>
    %1288 = vector.broadcast %1282 : vector<8x1xf32> to vector<8x12xf32>
    %1289 = arith.mulf %1288, %23 : vector<8x12xf32>
    %1290 = vector.broadcast %1283 : vector<8x1xf32> to vector<8x12xf32>
    %1291 = arith.mulf %1290, %26 : vector<8x12xf32>
    %1292 = arith.addf %1285, %1287 : vector<8x12xf32>
    %1293 = arith.addf %1289, %1291 : vector<8x12xf32>
    %1294 = arith.addf %1292, %1293 : vector<8x12xf32>
    %1295 = arith.addf %29, %1294 : vector<8x12xf32>
    %1296 = vector.extract_strided_slice %263 {offsets = [0, 0], sizes = [8, 8], strides = [1, 1]} : vector<8x12xf32> to vector<8x8xf32>
    %1297 = vector.extract_strided_slice %1295 {offsets = [0, 0], sizes = [8, 8], strides = [1, 1]} : vector<8x12xf32> to vector<8x8xf32>
    %1298 = arith.addf %1296, %1297 : vector<8x8xf32>
    %1299 = math.tanh %1298 : vector<8x8xf32>
    %1300 = vector.extract_strided_slice %1299 {offsets = [0, 0], sizes = [8, 4], strides = [1, 1]} : vector<8x8xf32> to vector<8x4xf32>
    %1301 = vector.extract_strided_slice %1299 {offsets = [0, 4], sizes = [8, 4], strides = [1, 1]} : vector<8x8xf32> to vector<8x4xf32>
    %1302 = vector.extract_strided_slice %1295 {offsets = [0, 8], sizes = [8, 4], strides = [1, 1]} : vector<8x12xf32> to vector<8x4xf32>
    %1303 = vector.extract_strided_slice %263 {offsets = [0, 8], sizes = [8, 4], strides = [1, 1]} : vector<8x12xf32> to vector<8x4xf32>
    %1304 = arith.addf %1303, %1302 : vector<8x4xf32>
    %1305 = arith.mulf %1300, %1302 : vector<8x4xf32>
    %1306 = arith.addf %1304, %1305 : vector<8x4xf32>
    %1307 = math.tanh %1306 : vector<8x4xf32>
    %cst_84 = arith.constant 5.000000e-01 : f32
    %1308 = vector.broadcast %cst_84 : f32 to vector<8x4xf32>
    %1309 = arith.mulf %1308, %1301 : vector<8x4xf32>
    %cst_85 = arith.constant 5.000000e-01 : f32
    %1310 = vector.broadcast %cst_85 : f32 to vector<8x4xf32>
    %1311 = arith.addf %1309, %1310 : vector<8x4xf32>
    %1312 = arith.subf %1228, %1307 : vector<8x4xf32>
    %1313 = arith.mulf %1311, %1312 : vector<8x4xf32>
    %1314 = arith.addf %1307, %1313 : vector<8x4xf32>
    %1315 = vector.extract_strided_slice %1314 {offsets = [0, 0], sizes = [8, 1], strides = [1, 1]} : vector<8x4xf32> to vector<8x1xf32>
    %1316 = vector.extract_strided_slice %1314 {offsets = [0, 1], sizes = [8, 1], strides = [1, 1]} : vector<8x4xf32> to vector<8x1xf32>
    %1317 = vector.extract_strided_slice %1314 {offsets = [0, 2], sizes = [8, 1], strides = [1, 1]} : vector<8x4xf32> to vector<8x1xf32>
    %1318 = vector.extract_strided_slice %1314 {offsets = [0, 3], sizes = [8, 1], strides = [1, 1]} : vector<8x4xf32> to vector<8x1xf32>
    %1319 = vector.broadcast %1315 : vector<8x1xf32> to vector<8x12xf32>
    %1320 = arith.mulf %1319, %32 : vector<8x12xf32>
    %1321 = vector.broadcast %1316 : vector<8x1xf32> to vector<8x12xf32>
    %1322 = arith.mulf %1321, %35 : vector<8x12xf32>
    %1323 = vector.broadcast %1317 : vector<8x1xf32> to vector<8x12xf32>
    %1324 = arith.mulf %1323, %38 : vector<8x12xf32>
    %1325 = vector.broadcast %1318 : vector<8x1xf32> to vector<8x12xf32>
    %1326 = arith.mulf %1325, %41 : vector<8x12xf32>
    %1327 = arith.addf %1320, %1322 : vector<8x12xf32>
    %1328 = arith.addf %1324, %1326 : vector<8x12xf32>
    %1329 = arith.addf %1327, %1328 : vector<8x12xf32>
    %1330 = arith.addf %44, %1329 : vector<8x12xf32>
    %1331 = vector.extract_strided_slice %1279 {offsets = [0, 0], sizes = [8, 1], strides = [1, 1]} : vector<8x4xf32> to vector<8x1xf32>
    %1332 = vector.extract_strided_slice %1279 {offsets = [0, 1], sizes = [8, 1], strides = [1, 1]} : vector<8x4xf32> to vector<8x1xf32>
    %1333 = vector.extract_strided_slice %1279 {offsets = [0, 2], sizes = [8, 1], strides = [1, 1]} : vector<8x4xf32> to vector<8x1xf32>
    %1334 = vector.extract_strided_slice %1279 {offsets = [0, 3], sizes = [8, 1], strides = [1, 1]} : vector<8x4xf32> to vector<8x1xf32>
    %1335 = vector.broadcast %1331 : vector<8x1xf32> to vector<8x12xf32>
    %1336 = arith.mulf %1335, %47 : vector<8x12xf32>
    %1337 = vector.broadcast %1332 : vector<8x1xf32> to vector<8x12xf32>
    %1338 = arith.mulf %1337, %50 : vector<8x12xf32>
    %1339 = vector.broadcast %1333 : vector<8x1xf32> to vector<8x12xf32>
    %1340 = arith.mulf %1339, %53 : vector<8x12xf32>
    %1341 = vector.broadcast %1334 : vector<8x1xf32> to vector<8x12xf32>
    %1342 = arith.mulf %1341, %56 : vector<8x12xf32>
    %1343 = arith.addf %1336, %1338 : vector<8x12xf32>
    %1344 = arith.addf %1340, %1342 : vector<8x12xf32>
    %1345 = arith.addf %1343, %1344 : vector<8x12xf32>
    %1346 = arith.addf %59, %1345 : vector<8x12xf32>
    %1347 = vector.extract_strided_slice %1330 {offsets = [0, 0], sizes = [8, 8], strides = [1, 1]} : vector<8x12xf32> to vector<8x8xf32>
    %1348 = vector.extract_strided_slice %1346 {offsets = [0, 0], sizes = [8, 8], strides = [1, 1]} : vector<8x12xf32> to vector<8x8xf32>
    %1349 = arith.addf %1347, %1348 : vector<8x8xf32>
    %1350 = math.tanh %1349 : vector<8x8xf32>
    %1351 = vector.extract_strided_slice %1350 {offsets = [0, 0], sizes = [8, 4], strides = [1, 1]} : vector<8x8xf32> to vector<8x4xf32>
    %1352 = vector.extract_strided_slice %1350 {offsets = [0, 4], sizes = [8, 4], strides = [1, 1]} : vector<8x8xf32> to vector<8x4xf32>
    %1353 = vector.extract_strided_slice %1346 {offsets = [0, 8], sizes = [8, 4], strides = [1, 1]} : vector<8x12xf32> to vector<8x4xf32>
    %1354 = vector.extract_strided_slice %1330 {offsets = [0, 8], sizes = [8, 4], strides = [1, 1]} : vector<8x12xf32> to vector<8x4xf32>
    %1355 = arith.addf %1354, %1353 : vector<8x4xf32>
    %1356 = arith.mulf %1351, %1353 : vector<8x4xf32>
    %1357 = arith.addf %1355, %1356 : vector<8x4xf32>
    %1358 = math.tanh %1357 : vector<8x4xf32>
    %cst_86 = arith.constant 5.000000e-01 : f32
    %1359 = vector.broadcast %cst_86 : f32 to vector<8x4xf32>
    %1360 = arith.mulf %1359, %1352 : vector<8x4xf32>
    %cst_87 = arith.constant 5.000000e-01 : f32
    %1361 = vector.broadcast %cst_87 : f32 to vector<8x4xf32>
    %1362 = arith.addf %1360, %1361 : vector<8x4xf32>
    %1363 = arith.subf %1279, %1358 : vector<8x4xf32>
    %1364 = arith.mulf %1362, %1363 : vector<8x4xf32>
    %1365 = arith.addf %1358, %1364 : vector<8x4xf32>
    %1366 = vector.extract_strided_slice %1314 {offsets = [0, 0], sizes = [8, 1], strides = [1, 1]} : vector<8x4xf32> to vector<8x1xf32>
    %1367 = vector.extract_strided_slice %1314 {offsets = [0, 1], sizes = [8, 1], strides = [1, 1]} : vector<8x4xf32> to vector<8x1xf32>
    %1368 = vector.extract_strided_slice %1314 {offsets = [0, 2], sizes = [8, 1], strides = [1, 1]} : vector<8x4xf32> to vector<8x1xf32>
    %1369 = vector.extract_strided_slice %1314 {offsets = [0, 3], sizes = [8, 1], strides = [1, 1]} : vector<8x4xf32> to vector<8x1xf32>
    %1370 = vector.broadcast %1366 : vector<8x1xf32> to vector<8x12xf32>
    %1371 = arith.mulf %1370, %17 : vector<8x12xf32>
    %1372 = vector.broadcast %1367 : vector<8x1xf32> to vector<8x12xf32>
    %1373 = arith.mulf %1372, %20 : vector<8x12xf32>
    %1374 = vector.broadcast %1368 : vector<8x1xf32> to vector<8x12xf32>
    %1375 = arith.mulf %1374, %23 : vector<8x12xf32>
    %1376 = vector.broadcast %1369 : vector<8x1xf32> to vector<8x12xf32>
    %1377 = arith.mulf %1376, %26 : vector<8x12xf32>
    %1378 = arith.addf %1371, %1373 : vector<8x12xf32>
    %1379 = arith.addf %1375, %1377 : vector<8x12xf32>
    %1380 = arith.addf %1378, %1379 : vector<8x12xf32>
    %1381 = arith.addf %29, %1380 : vector<8x12xf32>
    %1382 = vector.extract_strided_slice %280 {offsets = [0, 0], sizes = [8, 8], strides = [1, 1]} : vector<8x12xf32> to vector<8x8xf32>
    %1383 = vector.extract_strided_slice %1381 {offsets = [0, 0], sizes = [8, 8], strides = [1, 1]} : vector<8x12xf32> to vector<8x8xf32>
    %1384 = arith.addf %1382, %1383 : vector<8x8xf32>
    %1385 = math.tanh %1384 : vector<8x8xf32>
    %1386 = vector.extract_strided_slice %1385 {offsets = [0, 0], sizes = [8, 4], strides = [1, 1]} : vector<8x8xf32> to vector<8x4xf32>
    %1387 = vector.extract_strided_slice %1385 {offsets = [0, 4], sizes = [8, 4], strides = [1, 1]} : vector<8x8xf32> to vector<8x4xf32>
    %1388 = vector.extract_strided_slice %1381 {offsets = [0, 8], sizes = [8, 4], strides = [1, 1]} : vector<8x12xf32> to vector<8x4xf32>
    %1389 = vector.extract_strided_slice %280 {offsets = [0, 8], sizes = [8, 4], strides = [1, 1]} : vector<8x12xf32> to vector<8x4xf32>
    %1390 = arith.addf %1389, %1388 : vector<8x4xf32>
    %1391 = arith.mulf %1386, %1388 : vector<8x4xf32>
    %1392 = arith.addf %1390, %1391 : vector<8x4xf32>
    %1393 = math.tanh %1392 : vector<8x4xf32>
    %cst_88 = arith.constant 5.000000e-01 : f32
    %1394 = vector.broadcast %cst_88 : f32 to vector<8x4xf32>
    %1395 = arith.mulf %1394, %1387 : vector<8x4xf32>
    %cst_89 = arith.constant 5.000000e-01 : f32
    %1396 = vector.broadcast %cst_89 : f32 to vector<8x4xf32>
    %1397 = arith.addf %1395, %1396 : vector<8x4xf32>
    %1398 = arith.subf %1314, %1393 : vector<8x4xf32>
    %1399 = arith.mulf %1397, %1398 : vector<8x4xf32>
    %1400 = arith.addf %1393, %1399 : vector<8x4xf32>
    %1401 = vector.extract_strided_slice %1400 {offsets = [0, 0], sizes = [8, 1], strides = [1, 1]} : vector<8x4xf32> to vector<8x1xf32>
    %1402 = vector.extract_strided_slice %1400 {offsets = [0, 1], sizes = [8, 1], strides = [1, 1]} : vector<8x4xf32> to vector<8x1xf32>
    %1403 = vector.extract_strided_slice %1400 {offsets = [0, 2], sizes = [8, 1], strides = [1, 1]} : vector<8x4xf32> to vector<8x1xf32>
    %1404 = vector.extract_strided_slice %1400 {offsets = [0, 3], sizes = [8, 1], strides = [1, 1]} : vector<8x4xf32> to vector<8x1xf32>
    %1405 = vector.broadcast %1401 : vector<8x1xf32> to vector<8x12xf32>
    %1406 = arith.mulf %1405, %32 : vector<8x12xf32>
    %1407 = vector.broadcast %1402 : vector<8x1xf32> to vector<8x12xf32>
    %1408 = arith.mulf %1407, %35 : vector<8x12xf32>
    %1409 = vector.broadcast %1403 : vector<8x1xf32> to vector<8x12xf32>
    %1410 = arith.mulf %1409, %38 : vector<8x12xf32>
    %1411 = vector.broadcast %1404 : vector<8x1xf32> to vector<8x12xf32>
    %1412 = arith.mulf %1411, %41 : vector<8x12xf32>
    %1413 = arith.addf %1406, %1408 : vector<8x12xf32>
    %1414 = arith.addf %1410, %1412 : vector<8x12xf32>
    %1415 = arith.addf %1413, %1414 : vector<8x12xf32>
    %1416 = arith.addf %44, %1415 : vector<8x12xf32>
    %1417 = vector.extract_strided_slice %1365 {offsets = [0, 0], sizes = [8, 1], strides = [1, 1]} : vector<8x4xf32> to vector<8x1xf32>
    %1418 = vector.extract_strided_slice %1365 {offsets = [0, 1], sizes = [8, 1], strides = [1, 1]} : vector<8x4xf32> to vector<8x1xf32>
    %1419 = vector.extract_strided_slice %1365 {offsets = [0, 2], sizes = [8, 1], strides = [1, 1]} : vector<8x4xf32> to vector<8x1xf32>
    %1420 = vector.extract_strided_slice %1365 {offsets = [0, 3], sizes = [8, 1], strides = [1, 1]} : vector<8x4xf32> to vector<8x1xf32>
    %1421 = vector.broadcast %1417 : vector<8x1xf32> to vector<8x12xf32>
    %1422 = arith.mulf %1421, %47 : vector<8x12xf32>
    %1423 = vector.broadcast %1418 : vector<8x1xf32> to vector<8x12xf32>
    %1424 = arith.mulf %1423, %50 : vector<8x12xf32>
    %1425 = vector.broadcast %1419 : vector<8x1xf32> to vector<8x12xf32>
    %1426 = arith.mulf %1425, %53 : vector<8x12xf32>
    %1427 = vector.broadcast %1420 : vector<8x1xf32> to vector<8x12xf32>
    %1428 = arith.mulf %1427, %56 : vector<8x12xf32>
    %1429 = arith.addf %1422, %1424 : vector<8x12xf32>
    %1430 = arith.addf %1426, %1428 : vector<8x12xf32>
    %1431 = arith.addf %1429, %1430 : vector<8x12xf32>
    %1432 = arith.addf %59, %1431 : vector<8x12xf32>
    %1433 = vector.extract_strided_slice %1416 {offsets = [0, 0], sizes = [8, 8], strides = [1, 1]} : vector<8x12xf32> to vector<8x8xf32>
    %1434 = vector.extract_strided_slice %1432 {offsets = [0, 0], sizes = [8, 8], strides = [1, 1]} : vector<8x12xf32> to vector<8x8xf32>
    %1435 = arith.addf %1433, %1434 : vector<8x8xf32>
    %1436 = math.tanh %1435 : vector<8x8xf32>
    %1437 = vector.extract_strided_slice %1436 {offsets = [0, 0], sizes = [8, 4], strides = [1, 1]} : vector<8x8xf32> to vector<8x4xf32>
    %1438 = vector.extract_strided_slice %1436 {offsets = [0, 4], sizes = [8, 4], strides = [1, 1]} : vector<8x8xf32> to vector<8x4xf32>
    %1439 = vector.extract_strided_slice %1432 {offsets = [0, 8], sizes = [8, 4], strides = [1, 1]} : vector<8x12xf32> to vector<8x4xf32>
    %1440 = vector.extract_strided_slice %1416 {offsets = [0, 8], sizes = [8, 4], strides = [1, 1]} : vector<8x12xf32> to vector<8x4xf32>
    %1441 = arith.addf %1440, %1439 : vector<8x4xf32>
    %1442 = arith.mulf %1437, %1439 : vector<8x4xf32>
    %1443 = arith.addf %1441, %1442 : vector<8x4xf32>
    %1444 = math.tanh %1443 : vector<8x4xf32>
    %cst_90 = arith.constant 5.000000e-01 : f32
    %1445 = vector.broadcast %cst_90 : f32 to vector<8x4xf32>
    %1446 = arith.mulf %1445, %1438 : vector<8x4xf32>
    %cst_91 = arith.constant 5.000000e-01 : f32
    %1447 = vector.broadcast %cst_91 : f32 to vector<8x4xf32>
    %1448 = arith.addf %1446, %1447 : vector<8x4xf32>
    %1449 = arith.subf %1365, %1444 : vector<8x4xf32>
    %1450 = arith.mulf %1448, %1449 : vector<8x4xf32>
    %1451 = arith.addf %1444, %1450 : vector<8x4xf32>
    %1452 = vector.extract_strided_slice %1400 {offsets = [0, 0], sizes = [8, 1], strides = [1, 1]} : vector<8x4xf32> to vector<8x1xf32>
    %1453 = vector.extract_strided_slice %1400 {offsets = [0, 1], sizes = [8, 1], strides = [1, 1]} : vector<8x4xf32> to vector<8x1xf32>
    %1454 = vector.extract_strided_slice %1400 {offsets = [0, 2], sizes = [8, 1], strides = [1, 1]} : vector<8x4xf32> to vector<8x1xf32>
    %1455 = vector.extract_strided_slice %1400 {offsets = [0, 3], sizes = [8, 1], strides = [1, 1]} : vector<8x4xf32> to vector<8x1xf32>
    %1456 = vector.broadcast %1452 : vector<8x1xf32> to vector<8x12xf32>
    %1457 = arith.mulf %1456, %17 : vector<8x12xf32>
    %1458 = vector.broadcast %1453 : vector<8x1xf32> to vector<8x12xf32>
    %1459 = arith.mulf %1458, %20 : vector<8x12xf32>
    %1460 = vector.broadcast %1454 : vector<8x1xf32> to vector<8x12xf32>
    %1461 = arith.mulf %1460, %23 : vector<8x12xf32>
    %1462 = vector.broadcast %1455 : vector<8x1xf32> to vector<8x12xf32>
    %1463 = arith.mulf %1462, %26 : vector<8x12xf32>
    %1464 = arith.addf %1457, %1459 : vector<8x12xf32>
    %1465 = arith.addf %1461, %1463 : vector<8x12xf32>
    %1466 = arith.addf %1464, %1465 : vector<8x12xf32>
    %1467 = arith.addf %29, %1466 : vector<8x12xf32>
    %1468 = vector.extract_strided_slice %297 {offsets = [0, 0], sizes = [8, 8], strides = [1, 1]} : vector<8x12xf32> to vector<8x8xf32>
    %1469 = vector.extract_strided_slice %1467 {offsets = [0, 0], sizes = [8, 8], strides = [1, 1]} : vector<8x12xf32> to vector<8x8xf32>
    %1470 = arith.addf %1468, %1469 : vector<8x8xf32>
    %1471 = math.tanh %1470 : vector<8x8xf32>
    %1472 = vector.extract_strided_slice %1471 {offsets = [0, 0], sizes = [8, 4], strides = [1, 1]} : vector<8x8xf32> to vector<8x4xf32>
    %1473 = vector.extract_strided_slice %1471 {offsets = [0, 4], sizes = [8, 4], strides = [1, 1]} : vector<8x8xf32> to vector<8x4xf32>
    %1474 = vector.extract_strided_slice %1467 {offsets = [0, 8], sizes = [8, 4], strides = [1, 1]} : vector<8x12xf32> to vector<8x4xf32>
    %1475 = vector.extract_strided_slice %297 {offsets = [0, 8], sizes = [8, 4], strides = [1, 1]} : vector<8x12xf32> to vector<8x4xf32>
    %1476 = arith.addf %1475, %1474 : vector<8x4xf32>
    %1477 = arith.mulf %1472, %1474 : vector<8x4xf32>
    %1478 = arith.addf %1476, %1477 : vector<8x4xf32>
    %1479 = math.tanh %1478 : vector<8x4xf32>
    %cst_92 = arith.constant 5.000000e-01 : f32
    %1480 = vector.broadcast %cst_92 : f32 to vector<8x4xf32>
    %1481 = arith.mulf %1480, %1473 : vector<8x4xf32>
    %cst_93 = arith.constant 5.000000e-01 : f32
    %1482 = vector.broadcast %cst_93 : f32 to vector<8x4xf32>
    %1483 = arith.addf %1481, %1482 : vector<8x4xf32>
    %1484 = arith.subf %1400, %1479 : vector<8x4xf32>
    %1485 = arith.mulf %1483, %1484 : vector<8x4xf32>
    %1486 = arith.addf %1479, %1485 : vector<8x4xf32>
    %1487 = vector.extract_strided_slice %1486 {offsets = [0, 0], sizes = [8, 1], strides = [1, 1]} : vector<8x4xf32> to vector<8x1xf32>
    %1488 = vector.extract_strided_slice %1486 {offsets = [0, 1], sizes = [8, 1], strides = [1, 1]} : vector<8x4xf32> to vector<8x1xf32>
    %1489 = vector.extract_strided_slice %1486 {offsets = [0, 2], sizes = [8, 1], strides = [1, 1]} : vector<8x4xf32> to vector<8x1xf32>
    %1490 = vector.extract_strided_slice %1486 {offsets = [0, 3], sizes = [8, 1], strides = [1, 1]} : vector<8x4xf32> to vector<8x1xf32>
    %1491 = vector.broadcast %1487 : vector<8x1xf32> to vector<8x12xf32>
    %1492 = arith.mulf %1491, %32 : vector<8x12xf32>
    %1493 = vector.broadcast %1488 : vector<8x1xf32> to vector<8x12xf32>
    %1494 = arith.mulf %1493, %35 : vector<8x12xf32>
    %1495 = vector.broadcast %1489 : vector<8x1xf32> to vector<8x12xf32>
    %1496 = arith.mulf %1495, %38 : vector<8x12xf32>
    %1497 = vector.broadcast %1490 : vector<8x1xf32> to vector<8x12xf32>
    %1498 = arith.mulf %1497, %41 : vector<8x12xf32>
    %1499 = arith.addf %1492, %1494 : vector<8x12xf32>
    %1500 = arith.addf %1496, %1498 : vector<8x12xf32>
    %1501 = arith.addf %1499, %1500 : vector<8x12xf32>
    %1502 = arith.addf %44, %1501 : vector<8x12xf32>
    %1503 = vector.extract_strided_slice %1451 {offsets = [0, 0], sizes = [8, 1], strides = [1, 1]} : vector<8x4xf32> to vector<8x1xf32>
    %1504 = vector.extract_strided_slice %1451 {offsets = [0, 1], sizes = [8, 1], strides = [1, 1]} : vector<8x4xf32> to vector<8x1xf32>
    %1505 = vector.extract_strided_slice %1451 {offsets = [0, 2], sizes = [8, 1], strides = [1, 1]} : vector<8x4xf32> to vector<8x1xf32>
    %1506 = vector.extract_strided_slice %1451 {offsets = [0, 3], sizes = [8, 1], strides = [1, 1]} : vector<8x4xf32> to vector<8x1xf32>
    %1507 = vector.broadcast %1503 : vector<8x1xf32> to vector<8x12xf32>
    %1508 = arith.mulf %1507, %47 : vector<8x12xf32>
    %1509 = vector.broadcast %1504 : vector<8x1xf32> to vector<8x12xf32>
    %1510 = arith.mulf %1509, %50 : vector<8x12xf32>
    %1511 = vector.broadcast %1505 : vector<8x1xf32> to vector<8x12xf32>
    %1512 = arith.mulf %1511, %53 : vector<8x12xf32>
    %1513 = vector.broadcast %1506 : vector<8x1xf32> to vector<8x12xf32>
    %1514 = arith.mulf %1513, %56 : vector<8x12xf32>
    %1515 = arith.addf %1508, %1510 : vector<8x12xf32>
    %1516 = arith.addf %1512, %1514 : vector<8x12xf32>
    %1517 = arith.addf %1515, %1516 : vector<8x12xf32>
    %1518 = arith.addf %59, %1517 : vector<8x12xf32>
    %1519 = vector.extract_strided_slice %1502 {offsets = [0, 0], sizes = [8, 8], strides = [1, 1]} : vector<8x12xf32> to vector<8x8xf32>
    %1520 = vector.extract_strided_slice %1518 {offsets = [0, 0], sizes = [8, 8], strides = [1, 1]} : vector<8x12xf32> to vector<8x8xf32>
    %1521 = arith.addf %1519, %1520 : vector<8x8xf32>
    %1522 = math.tanh %1521 : vector<8x8xf32>
    %1523 = vector.extract_strided_slice %1522 {offsets = [0, 0], sizes = [8, 4], strides = [1, 1]} : vector<8x8xf32> to vector<8x4xf32>
    %1524 = vector.extract_strided_slice %1522 {offsets = [0, 4], sizes = [8, 4], strides = [1, 1]} : vector<8x8xf32> to vector<8x4xf32>
    %1525 = vector.extract_strided_slice %1518 {offsets = [0, 8], sizes = [8, 4], strides = [1, 1]} : vector<8x12xf32> to vector<8x4xf32>
    %1526 = vector.extract_strided_slice %1502 {offsets = [0, 8], sizes = [8, 4], strides = [1, 1]} : vector<8x12xf32> to vector<8x4xf32>
    %1527 = arith.addf %1526, %1525 : vector<8x4xf32>
    %1528 = arith.mulf %1523, %1525 : vector<8x4xf32>
    %1529 = arith.addf %1527, %1528 : vector<8x4xf32>
    %1530 = math.tanh %1529 : vector<8x4xf32>
    %cst_94 = arith.constant 5.000000e-01 : f32
    %1531 = vector.broadcast %cst_94 : f32 to vector<8x4xf32>
    %1532 = arith.mulf %1531, %1524 : vector<8x4xf32>
    %cst_95 = arith.constant 5.000000e-01 : f32
    %1533 = vector.broadcast %cst_95 : f32 to vector<8x4xf32>
    %1534 = arith.addf %1532, %1533 : vector<8x4xf32>
    %1535 = arith.subf %1451, %1530 : vector<8x4xf32>
    %1536 = arith.mulf %1534, %1535 : vector<8x4xf32>
    %1537 = arith.addf %1530, %1536 : vector<8x4xf32>
    %1538 = vector.extract_strided_slice %1486 {offsets = [0, 0], sizes = [8, 1], strides = [1, 1]} : vector<8x4xf32> to vector<8x1xf32>
    %1539 = vector.extract_strided_slice %1486 {offsets = [0, 1], sizes = [8, 1], strides = [1, 1]} : vector<8x4xf32> to vector<8x1xf32>
    %1540 = vector.extract_strided_slice %1486 {offsets = [0, 2], sizes = [8, 1], strides = [1, 1]} : vector<8x4xf32> to vector<8x1xf32>
    %1541 = vector.extract_strided_slice %1486 {offsets = [0, 3], sizes = [8, 1], strides = [1, 1]} : vector<8x4xf32> to vector<8x1xf32>
    %1542 = vector.broadcast %1538 : vector<8x1xf32> to vector<8x12xf32>
    %1543 = arith.mulf %1542, %17 : vector<8x12xf32>
    %1544 = vector.broadcast %1539 : vector<8x1xf32> to vector<8x12xf32>
    %1545 = arith.mulf %1544, %20 : vector<8x12xf32>
    %1546 = vector.broadcast %1540 : vector<8x1xf32> to vector<8x12xf32>
    %1547 = arith.mulf %1546, %23 : vector<8x12xf32>
    %1548 = vector.broadcast %1541 : vector<8x1xf32> to vector<8x12xf32>
    %1549 = arith.mulf %1548, %26 : vector<8x12xf32>
    %1550 = arith.addf %1543, %1545 : vector<8x12xf32>
    %1551 = arith.addf %1547, %1549 : vector<8x12xf32>
    %1552 = arith.addf %1550, %1551 : vector<8x12xf32>
    %1553 = arith.addf %29, %1552 : vector<8x12xf32>
    %1554 = vector.extract_strided_slice %314 {offsets = [0, 0], sizes = [8, 8], strides = [1, 1]} : vector<8x12xf32> to vector<8x8xf32>
    %1555 = vector.extract_strided_slice %1553 {offsets = [0, 0], sizes = [8, 8], strides = [1, 1]} : vector<8x12xf32> to vector<8x8xf32>
    %1556 = arith.addf %1554, %1555 : vector<8x8xf32>
    %1557 = math.tanh %1556 : vector<8x8xf32>
    %1558 = vector.extract_strided_slice %1557 {offsets = [0, 0], sizes = [8, 4], strides = [1, 1]} : vector<8x8xf32> to vector<8x4xf32>
    %1559 = vector.extract_strided_slice %1557 {offsets = [0, 4], sizes = [8, 4], strides = [1, 1]} : vector<8x8xf32> to vector<8x4xf32>
    %1560 = vector.extract_strided_slice %1553 {offsets = [0, 8], sizes = [8, 4], strides = [1, 1]} : vector<8x12xf32> to vector<8x4xf32>
    %1561 = vector.extract_strided_slice %314 {offsets = [0, 8], sizes = [8, 4], strides = [1, 1]} : vector<8x12xf32> to vector<8x4xf32>
    %1562 = arith.addf %1561, %1560 : vector<8x4xf32>
    %1563 = arith.mulf %1558, %1560 : vector<8x4xf32>
    %1564 = arith.addf %1562, %1563 : vector<8x4xf32>
    %1565 = math.tanh %1564 : vector<8x4xf32>
    %cst_96 = arith.constant 5.000000e-01 : f32
    %1566 = vector.broadcast %cst_96 : f32 to vector<8x4xf32>
    %1567 = arith.mulf %1566, %1559 : vector<8x4xf32>
    %cst_97 = arith.constant 5.000000e-01 : f32
    %1568 = vector.broadcast %cst_97 : f32 to vector<8x4xf32>
    %1569 = arith.addf %1567, %1568 : vector<8x4xf32>
    %1570 = arith.subf %1486, %1565 : vector<8x4xf32>
    %1571 = arith.mulf %1569, %1570 : vector<8x4xf32>
    %1572 = arith.addf %1565, %1571 : vector<8x4xf32>
    %1573 = vector.extract_strided_slice %1572 {offsets = [0, 0], sizes = [8, 1], strides = [1, 1]} : vector<8x4xf32> to vector<8x1xf32>
    %1574 = vector.extract_strided_slice %1572 {offsets = [0, 1], sizes = [8, 1], strides = [1, 1]} : vector<8x4xf32> to vector<8x1xf32>
    %1575 = vector.extract_strided_slice %1572 {offsets = [0, 2], sizes = [8, 1], strides = [1, 1]} : vector<8x4xf32> to vector<8x1xf32>
    %1576 = vector.extract_strided_slice %1572 {offsets = [0, 3], sizes = [8, 1], strides = [1, 1]} : vector<8x4xf32> to vector<8x1xf32>
    %1577 = vector.broadcast %1573 : vector<8x1xf32> to vector<8x12xf32>
    %1578 = arith.mulf %1577, %32 : vector<8x12xf32>
    %1579 = vector.broadcast %1574 : vector<8x1xf32> to vector<8x12xf32>
    %1580 = arith.mulf %1579, %35 : vector<8x12xf32>
    %1581 = vector.broadcast %1575 : vector<8x1xf32> to vector<8x12xf32>
    %1582 = arith.mulf %1581, %38 : vector<8x12xf32>
    %1583 = vector.broadcast %1576 : vector<8x1xf32> to vector<8x12xf32>
    %1584 = arith.mulf %1583, %41 : vector<8x12xf32>
    %1585 = arith.addf %1578, %1580 : vector<8x12xf32>
    %1586 = arith.addf %1582, %1584 : vector<8x12xf32>
    %1587 = arith.addf %1585, %1586 : vector<8x12xf32>
    %1588 = arith.addf %44, %1587 : vector<8x12xf32>
    %1589 = vector.extract_strided_slice %1537 {offsets = [0, 0], sizes = [8, 1], strides = [1, 1]} : vector<8x4xf32> to vector<8x1xf32>
    %1590 = vector.extract_strided_slice %1537 {offsets = [0, 1], sizes = [8, 1], strides = [1, 1]} : vector<8x4xf32> to vector<8x1xf32>
    %1591 = vector.extract_strided_slice %1537 {offsets = [0, 2], sizes = [8, 1], strides = [1, 1]} : vector<8x4xf32> to vector<8x1xf32>
    %1592 = vector.extract_strided_slice %1537 {offsets = [0, 3], sizes = [8, 1], strides = [1, 1]} : vector<8x4xf32> to vector<8x1xf32>
    %1593 = vector.broadcast %1589 : vector<8x1xf32> to vector<8x12xf32>
    %1594 = arith.mulf %1593, %47 : vector<8x12xf32>
    %1595 = vector.broadcast %1590 : vector<8x1xf32> to vector<8x12xf32>
    %1596 = arith.mulf %1595, %50 : vector<8x12xf32>
    %1597 = vector.broadcast %1591 : vector<8x1xf32> to vector<8x12xf32>
    %1598 = arith.mulf %1597, %53 : vector<8x12xf32>
    %1599 = vector.broadcast %1592 : vector<8x1xf32> to vector<8x12xf32>
    %1600 = arith.mulf %1599, %56 : vector<8x12xf32>
    %1601 = arith.addf %1594, %1596 : vector<8x12xf32>
    %1602 = arith.addf %1598, %1600 : vector<8x12xf32>
    %1603 = arith.addf %1601, %1602 : vector<8x12xf32>
    %1604 = arith.addf %59, %1603 : vector<8x12xf32>
    %1605 = vector.extract_strided_slice %1588 {offsets = [0, 0], sizes = [8, 8], strides = [1, 1]} : vector<8x12xf32> to vector<8x8xf32>
    %1606 = vector.extract_strided_slice %1604 {offsets = [0, 0], sizes = [8, 8], strides = [1, 1]} : vector<8x12xf32> to vector<8x8xf32>
    %1607 = arith.addf %1605, %1606 : vector<8x8xf32>
    %1608 = math.tanh %1607 : vector<8x8xf32>
    %1609 = vector.extract_strided_slice %1608 {offsets = [0, 0], sizes = [8, 4], strides = [1, 1]} : vector<8x8xf32> to vector<8x4xf32>
    %1610 = vector.extract_strided_slice %1608 {offsets = [0, 4], sizes = [8, 4], strides = [1, 1]} : vector<8x8xf32> to vector<8x4xf32>
    %1611 = vector.extract_strided_slice %1604 {offsets = [0, 8], sizes = [8, 4], strides = [1, 1]} : vector<8x12xf32> to vector<8x4xf32>
    %1612 = vector.extract_strided_slice %1588 {offsets = [0, 8], sizes = [8, 4], strides = [1, 1]} : vector<8x12xf32> to vector<8x4xf32>
    %1613 = arith.addf %1612, %1611 : vector<8x4xf32>
    %1614 = arith.mulf %1609, %1611 : vector<8x4xf32>
    %1615 = arith.addf %1613, %1614 : vector<8x4xf32>
    %1616 = math.tanh %1615 : vector<8x4xf32>
    %cst_98 = arith.constant 5.000000e-01 : f32
    %1617 = vector.broadcast %cst_98 : f32 to vector<8x4xf32>
    %1618 = arith.mulf %1617, %1610 : vector<8x4xf32>
    %cst_99 = arith.constant 5.000000e-01 : f32
    %1619 = vector.broadcast %cst_99 : f32 to vector<8x4xf32>
    %1620 = arith.addf %1618, %1619 : vector<8x4xf32>
    %1621 = arith.subf %1537, %1616 : vector<8x4xf32>
    %1622 = arith.mulf %1620, %1621 : vector<8x4xf32>
    %1623 = arith.addf %1616, %1622 : vector<8x4xf32>
    %1624 = vector.extract_strided_slice %1572 {offsets = [0, 0], sizes = [8, 1], strides = [1, 1]} : vector<8x4xf32> to vector<8x1xf32>
    %1625 = vector.extract_strided_slice %1572 {offsets = [0, 1], sizes = [8, 1], strides = [1, 1]} : vector<8x4xf32> to vector<8x1xf32>
    %1626 = vector.extract_strided_slice %1572 {offsets = [0, 2], sizes = [8, 1], strides = [1, 1]} : vector<8x4xf32> to vector<8x1xf32>
    %1627 = vector.extract_strided_slice %1572 {offsets = [0, 3], sizes = [8, 1], strides = [1, 1]} : vector<8x4xf32> to vector<8x1xf32>
    %1628 = vector.broadcast %1624 : vector<8x1xf32> to vector<8x12xf32>
    %1629 = arith.mulf %1628, %17 : vector<8x12xf32>
    %1630 = vector.broadcast %1625 : vector<8x1xf32> to vector<8x12xf32>
    %1631 = arith.mulf %1630, %20 : vector<8x12xf32>
    %1632 = vector.broadcast %1626 : vector<8x1xf32> to vector<8x12xf32>
    %1633 = arith.mulf %1632, %23 : vector<8x12xf32>
    %1634 = vector.broadcast %1627 : vector<8x1xf32> to vector<8x12xf32>
    %1635 = arith.mulf %1634, %26 : vector<8x12xf32>
    %1636 = arith.addf %1629, %1631 : vector<8x12xf32>
    %1637 = arith.addf %1633, %1635 : vector<8x12xf32>
    %1638 = arith.addf %1636, %1637 : vector<8x12xf32>
    %1639 = arith.addf %29, %1638 : vector<8x12xf32>
    %1640 = vector.extract_strided_slice %331 {offsets = [0, 0], sizes = [8, 8], strides = [1, 1]} : vector<8x12xf32> to vector<8x8xf32>
    %1641 = vector.extract_strided_slice %1639 {offsets = [0, 0], sizes = [8, 8], strides = [1, 1]} : vector<8x12xf32> to vector<8x8xf32>
    %1642 = arith.addf %1640, %1641 : vector<8x8xf32>
    %1643 = math.tanh %1642 : vector<8x8xf32>
    %1644 = vector.extract_strided_slice %1643 {offsets = [0, 0], sizes = [8, 4], strides = [1, 1]} : vector<8x8xf32> to vector<8x4xf32>
    %1645 = vector.extract_strided_slice %1643 {offsets = [0, 4], sizes = [8, 4], strides = [1, 1]} : vector<8x8xf32> to vector<8x4xf32>
    %1646 = vector.extract_strided_slice %1639 {offsets = [0, 8], sizes = [8, 4], strides = [1, 1]} : vector<8x12xf32> to vector<8x4xf32>
    %1647 = vector.extract_strided_slice %331 {offsets = [0, 8], sizes = [8, 4], strides = [1, 1]} : vector<8x12xf32> to vector<8x4xf32>
    %1648 = arith.addf %1647, %1646 : vector<8x4xf32>
    %1649 = arith.mulf %1644, %1646 : vector<8x4xf32>
    %1650 = arith.addf %1648, %1649 : vector<8x4xf32>
    %1651 = math.tanh %1650 : vector<8x4xf32>
    %cst_100 = arith.constant 5.000000e-01 : f32
    %1652 = vector.broadcast %cst_100 : f32 to vector<8x4xf32>
    %1653 = arith.mulf %1652, %1645 : vector<8x4xf32>
    %cst_101 = arith.constant 5.000000e-01 : f32
    %1654 = vector.broadcast %cst_101 : f32 to vector<8x4xf32>
    %1655 = arith.addf %1653, %1654 : vector<8x4xf32>
    %1656 = arith.subf %1572, %1651 : vector<8x4xf32>
    %1657 = arith.mulf %1655, %1656 : vector<8x4xf32>
    %1658 = arith.addf %1651, %1657 : vector<8x4xf32>
    %1659 = vector.extract_strided_slice %1658 {offsets = [0, 0], sizes = [8, 1], strides = [1, 1]} : vector<8x4xf32> to vector<8x1xf32>
    %1660 = vector.extract_strided_slice %1658 {offsets = [0, 1], sizes = [8, 1], strides = [1, 1]} : vector<8x4xf32> to vector<8x1xf32>
    %1661 = vector.extract_strided_slice %1658 {offsets = [0, 2], sizes = [8, 1], strides = [1, 1]} : vector<8x4xf32> to vector<8x1xf32>
    %1662 = vector.extract_strided_slice %1658 {offsets = [0, 3], sizes = [8, 1], strides = [1, 1]} : vector<8x4xf32> to vector<8x1xf32>
    %1663 = vector.broadcast %1659 : vector<8x1xf32> to vector<8x12xf32>
    %1664 = arith.mulf %1663, %32 : vector<8x12xf32>
    %1665 = vector.broadcast %1660 : vector<8x1xf32> to vector<8x12xf32>
    %1666 = arith.mulf %1665, %35 : vector<8x12xf32>
    %1667 = vector.broadcast %1661 : vector<8x1xf32> to vector<8x12xf32>
    %1668 = arith.mulf %1667, %38 : vector<8x12xf32>
    %1669 = vector.broadcast %1662 : vector<8x1xf32> to vector<8x12xf32>
    %1670 = arith.mulf %1669, %41 : vector<8x12xf32>
    %1671 = arith.addf %1664, %1666 : vector<8x12xf32>
    %1672 = arith.addf %1668, %1670 : vector<8x12xf32>
    %1673 = arith.addf %1671, %1672 : vector<8x12xf32>
    %1674 = arith.addf %44, %1673 : vector<8x12xf32>
    %1675 = vector.extract_strided_slice %1623 {offsets = [0, 0], sizes = [8, 1], strides = [1, 1]} : vector<8x4xf32> to vector<8x1xf32>
    %1676 = vector.extract_strided_slice %1623 {offsets = [0, 1], sizes = [8, 1], strides = [1, 1]} : vector<8x4xf32> to vector<8x1xf32>
    %1677 = vector.extract_strided_slice %1623 {offsets = [0, 2], sizes = [8, 1], strides = [1, 1]} : vector<8x4xf32> to vector<8x1xf32>
    %1678 = vector.extract_strided_slice %1623 {offsets = [0, 3], sizes = [8, 1], strides = [1, 1]} : vector<8x4xf32> to vector<8x1xf32>
    %1679 = vector.broadcast %1675 : vector<8x1xf32> to vector<8x12xf32>
    %1680 = arith.mulf %1679, %47 : vector<8x12xf32>
    %1681 = vector.broadcast %1676 : vector<8x1xf32> to vector<8x12xf32>
    %1682 = arith.mulf %1681, %50 : vector<8x12xf32>
    %1683 = vector.broadcast %1677 : vector<8x1xf32> to vector<8x12xf32>
    %1684 = arith.mulf %1683, %53 : vector<8x12xf32>
    %1685 = vector.broadcast %1678 : vector<8x1xf32> to vector<8x12xf32>
    %1686 = arith.mulf %1685, %56 : vector<8x12xf32>
    %1687 = arith.addf %1680, %1682 : vector<8x12xf32>
    %1688 = arith.addf %1684, %1686 : vector<8x12xf32>
    %1689 = arith.addf %1687, %1688 : vector<8x12xf32>
    %1690 = arith.addf %59, %1689 : vector<8x12xf32>
    %1691 = vector.extract_strided_slice %1674 {offsets = [0, 0], sizes = [8, 8], strides = [1, 1]} : vector<8x12xf32> to vector<8x8xf32>
    %1692 = vector.extract_strided_slice %1690 {offsets = [0, 0], sizes = [8, 8], strides = [1, 1]} : vector<8x12xf32> to vector<8x8xf32>
    %1693 = arith.addf %1691, %1692 : vector<8x8xf32>
    %1694 = math.tanh %1693 : vector<8x8xf32>
    %1695 = vector.extract_strided_slice %1694 {offsets = [0, 0], sizes = [8, 4], strides = [1, 1]} : vector<8x8xf32> to vector<8x4xf32>
    %1696 = vector.extract_strided_slice %1694 {offsets = [0, 4], sizes = [8, 4], strides = [1, 1]} : vector<8x8xf32> to vector<8x4xf32>
    %1697 = vector.extract_strided_slice %1690 {offsets = [0, 8], sizes = [8, 4], strides = [1, 1]} : vector<8x12xf32> to vector<8x4xf32>
    %1698 = vector.extract_strided_slice %1674 {offsets = [0, 8], sizes = [8, 4], strides = [1, 1]} : vector<8x12xf32> to vector<8x4xf32>
    %1699 = arith.addf %1698, %1697 : vector<8x4xf32>
    %1700 = arith.mulf %1695, %1697 : vector<8x4xf32>
    %1701 = arith.addf %1699, %1700 : vector<8x4xf32>
    %1702 = math.tanh %1701 : vector<8x4xf32>
    %cst_102 = arith.constant 5.000000e-01 : f32
    %1703 = vector.broadcast %cst_102 : f32 to vector<8x4xf32>
    %1704 = arith.mulf %1703, %1696 : vector<8x4xf32>
    %cst_103 = arith.constant 5.000000e-01 : f32
    %1705 = vector.broadcast %cst_103 : f32 to vector<8x4xf32>
    %1706 = arith.addf %1704, %1705 : vector<8x4xf32>
    %1707 = arith.subf %1623, %1702 : vector<8x4xf32>
    %1708 = arith.mulf %1706, %1707 : vector<8x4xf32>
    %1709 = arith.addf %1702, %1708 : vector<8x4xf32>
    %c24_104 = arith.constant 24 : index
    %c0_105 = arith.constant 0 : index
    %1710 = vector.load %arg1[%c24_104, %c0_105] : memref<32x128xf32, #tpu.memory_space<vmem>>, vector<1x128xf32>
    %1711 = vector.shape_cast %1710 : vector<1x128xf32> to vector<1x128xf32>
    %1712 = vector.broadcast %1711 : vector<1x128xf32> to vector<8x128xf32>
    %c20 = arith.constant 20 : index
    %c0_106 = arith.constant 0 : index
    %1713 = vector.load %arg1[%c20, %c0_106] : memref<32x128xf32, #tpu.memory_space<vmem>>, vector<1x128xf32>
    %1714 = vector.shape_cast %1713 : vector<1x128xf32> to vector<1x128xf32>
    %1715 = vector.broadcast %1714 : vector<1x128xf32> to vector<8x128xf32>
    %c21 = arith.constant 21 : index
    %c0_107 = arith.constant 0 : index
    %1716 = vector.load %arg1[%c21, %c0_107] : memref<32x128xf32, #tpu.memory_space<vmem>>, vector<1x128xf32>
    %1717 = vector.shape_cast %1716 : vector<1x128xf32> to vector<1x128xf32>
    %1718 = vector.broadcast %1717 : vector<1x128xf32> to vector<8x128xf32>
    %c22 = arith.constant 22 : index
    %c0_108 = arith.constant 0 : index
    %1719 = vector.load %arg1[%c22, %c0_108] : memref<32x128xf32, #tpu.memory_space<vmem>>, vector<1x128xf32>
    %1720 = vector.shape_cast %1719 : vector<1x128xf32> to vector<1x128xf32>
    %1721 = vector.broadcast %1720 : vector<1x128xf32> to vector<8x128xf32>
    %c23 = arith.constant 23 : index
    %c0_109 = arith.constant 0 : index
    %1722 = vector.load %arg1[%c23, %c0_109] : memref<32x128xf32, #tpu.memory_space<vmem>>, vector<1x128xf32>
    %1723 = vector.shape_cast %1722 : vector<1x128xf32> to vector<1x128xf32>
    %1724 = vector.broadcast %1723 : vector<1x128xf32> to vector<8x128xf32>
    %1725 = vector.extract_strided_slice %1709 {offsets = [0, 0], sizes = [8, 1], strides = [1, 1]} : vector<8x4xf32> to vector<8x1xf32>
    %1726 = vector.extract_strided_slice %1709 {offsets = [0, 1], sizes = [8, 1], strides = [1, 1]} : vector<8x4xf32> to vector<8x1xf32>
    %1727 = vector.extract_strided_slice %1709 {offsets = [0, 2], sizes = [8, 1], strides = [1, 1]} : vector<8x4xf32> to vector<8x1xf32>
    %1728 = vector.extract_strided_slice %1709 {offsets = [0, 3], sizes = [8, 1], strides = [1, 1]} : vector<8x4xf32> to vector<8x1xf32>
    %1729 = vector.broadcast %1725 : vector<8x1xf32> to vector<8x128xf32>
    %1730 = arith.mulf %1729, %1715 : vector<8x128xf32>
    %1731 = vector.broadcast %1726 : vector<8x1xf32> to vector<8x128xf32>
    %1732 = arith.mulf %1731, %1718 : vector<8x128xf32>
    %1733 = vector.broadcast %1727 : vector<8x1xf32> to vector<8x128xf32>
    %1734 = arith.mulf %1733, %1721 : vector<8x128xf32>
    %1735 = vector.broadcast %1728 : vector<8x1xf32> to vector<8x128xf32>
    %1736 = arith.mulf %1735, %1724 : vector<8x128xf32>
    %1737 = arith.addf %1730, %1732 : vector<8x128xf32>
    %1738 = arith.addf %1734, %1736 : vector<8x128xf32>
    %1739 = arith.addf %1737, %1738 : vector<8x128xf32>
    %1740 = arith.addf %1712, %1739 : vector<8x128xf32>
    %c0_110 = arith.constant 0 : index
    %c0_111 = arith.constant 0 : index
    %1741 = vector.load %arg2[%c0_110, %c0_111] : memref<8x128xf32, #tpu.memory_space<vmem>>, vector<8x128xf32>
    tpu.vector_store %arg2[%c0_110, %c0_111], %1740 {strides = array<i32>} : memref<8x128xf32, #tpu.memory_space<vmem>>, vector<8x128xf32>,
    return
  }
}

</mosaic_0001>

<bundles_post_ra>
// kernel: tpu_custom_call.1
= control target key start
LH: loop header
LB: loop body
LE: loop exit
PB: predicated region body
PF: predicated region fallthrough
CT: control target
= control target key end

     0   :  { %v2776_v1 = vmov 2   ;;  %v2777_v2 = vmov 0   ;;  %s4060_s0 = inlined_call_operand.vmem [shape: f32[128,4], index: 0, kind: input, shape index: {}]   ;;  %s4061_s1 = inlined_call_operand.vmem [shape: f32[32,128], index: 1, kind: input, shape index: {}]   ;;  %s4062_s2 = inlined_call_operand.hbm [shape: f32[8,128], index: 2, kind: output, shape index: {}]  }
   0x1   :  { %v112_v0 = vld [vmem:[%s4060_s0] sm:$0xff]  ;;  %2376 = vset.pattern.permute.xlu1 %v2776_v1  ;;  %2374 = vset.pattern.permute.xlu0 %v2777_v2  ;;  %v2827_v6 = vld [vmem:[%s4061_s1 + $0x8] ss:$0 sm:$0xff] }
   0x2   :  { %v2812_v3 = vld [vmem:[%s4061_s1 + $0x5] ss:$0 sm:$0xff]  ;;  %v2817_v4 = vld [vmem:[%s4061_s1 + $0x6] ss:$0 sm:$0xff]  ;;  %v2822_v5 = vld [vmem:[%s4061_s1 + $0x7] ss:$0 sm:$0xff]  ;;  %125 = vperm.xlu1 %2376, %v112_v0   ;;  %115 = vperm.xlu0 %2374, %v112_v0  }
   0x3   :  { %v528_v7 = vmul.f32 0.0, %v2812_v3  ;;  %v529_v8 = vmul.f32 0.0, %v2817_v4  ;;  %v530_v9 = vmul.f32 0.0, %v2822_v5  ;;  %v531_v10 = vmul.f32 0.0, %v2827_v6 }
   0x5   :  { %v532_v11 = vadd.f32 %v529_v8, %v528_v7 }
   0x6   :  { %7 = vsyncpa [#allocation3], 0  ;;  %v533_v12 = vadd.f32 %v531_v10, %v530_v9  ;;  %v2778_v13 = vmov 3   ;;  %v2779_v14 = vmov 1   ;;  %v2838_v15 = vld [vmem:[%s4061_s1 + $0x9] ss:$0 sm:$0xff] }
   0x7   :  { %2377 = vset.pattern.permute.xlu1 %v2778_v13  ;;  %2375 = vset.pattern.permute.xlu0 %v2779_v14  ;;  %s2780_s21 = smov 120   ;;  %v2845_v20 = vld [vmem:[%s4061_s1 + $0x2] ss:$0 sm:$0xff]  ;;  %v2850_v21 = vld [vmem:[%s4061_s1] ss:$0 sm:$0xff]  ;;  %s2781_s4 = smov 8  }
   0x8   :  { %130 = vperm.xlu1 %2377, %v112_v0   ;;  %120 = vperm.xlu0 %2375, %v112_v0   ;;  %v534_v16 = vadd.f32 %v533_v12, %v532_v11  ;;  %v2855_v22 = vld [vmem:[%s4061_s1 + $0x3] ss:$0 sm:$0xff]  ;;  %v2860_v23 = vld [vmem:[%s4061_s1 + $0x1] ss:$0 sm:$0xff]  ;;  %v2869_v32 = vld [vmem:[%s4061_s1 + $0x4] ss:$0 sm:$0xff] }
   0x9   :  { %s2782_s5 = smov 124   ;;  %v2783_v43 = vmov 8   ;;  %v2784_v44 = vmov 9   ;;  %s2785_s6 = smov 4   ;;  %v2880_v49 = vld [vmem:[%s4061_s1 + $0xf] ss:$0 sm:$0xff] }
   0xa   :  { %v535_v17 = vadd.f32 %v2838_v15, %v534_v16  ;;  %v2885_v50 = vld [vmem:[%s4061_s1 + $0x10] ss:$0 sm:$0xff]  ;;  %v2890_v51 = vld [vmem:[%s4061_s1 + $0x11] ss:$0 sm:$0xff]  ;;  %v2895_v52 = vld [vmem:[%s4061_s1 + $0x12] ss:$0 sm:$0xff] }
   0xb   :  { %v587_v53 = vmul.f32 0.0, %v2880_v49  ;;  %v588_v54 = vmul.f32 0.0, %v2885_v50  ;;  %v589_v55 = vmul.f32 0.0, %v2890_v51  ;;  %v590_v56 = vmul.f32 0.0, %v2895_v52  ;;  %v2904_v61 = vld [vmem:[%s4061_s1 + $0x13] ss:$0 sm:$0xff] }
   0xc   :  { %539 = vrot.lane.b32.xlu1 %v535_v17, %s2780_s21  ;;  %2379 = vset.pattern.permute.xlu0 %v2784_v44  ;;  %v2786_v0 = vmov 10   ;;  %v138_v7 = vld [vmem:[%s4060_s0 + $0x8] sm:$0xff]  ;;  %v2787_v8 = vmov 11   ;;  %s2788_s13 = smov [#allocation2]  }
   0xd   :  { %2378 = vset.pattern.permute.xlu1 %v2783_v43  ;;  %v591_v57 = vadd.f32 %v588_v54, %v587_v53  ;;  %v592_v58 = vadd.f32 %v590_v56, %v589_v55  ;;  %v2928_v11 = vld [vmem:[%s4061_s1 + $0xb] ss:$0 sm:$0xff]  ;;  %v2933_v16 = vld [vmem:[%s4061_s1 + $0xa] ss:$0 sm:$0xff]  ;;  %s2328_s14 = sshll.u32 %s2788_s13, 4  ;;  %s2329_s14 = int_to_ptr.vmem [resolvable:$true] %s2328_s14 }
   0xe   :  { %s2754_s15 = scalar_lea.vmem %s2329_s14, 128  ;;  %p2759_p1 = scmp.lt.s32.totalorder %s2329_s14, %s2329_s14 }
   0xf   :  { %v593_v59 = vadd.f32 %v592_v58, %v591_v57  ;;  %p2755_p0 = scmp.ne.s32.totalorder %s2329_s14, %s2754_s15  ;;  %p2760_p2 = scmp.lt.s32.totalorder %s2754_s15, %s2754_s15 }
  0x11   :  { %v594_v63 = vadd.f32 %v2904_v61, %v593_v59  ;;  %p2761_p3 = por %p2760_p2, %p2759_p1 }
  0x13   :  { %p2762_p4 = pnand %p2761_p3, %p2755_p0 }
  0x7d   :  { %v126_v18 = vpop.permute.xlu1 %125  ;;  %v116_v19 = vpop.permute.xlu0 %115 }
  0x7e   :  { %v128_v26 = vmul.f32 %v2845_v20, %v126_v18  ;;  %v118_v27 = vmul.f32 %v2850_v21, %v116_v19  ;;  %v2943_v18 = vld [vmem:[%s4061_s1 + $0xd] ss:$0 sm:$0xff] }
  0x83   :  { %v131_v24 = vpop.permute.xlu1 %130  ;;  %v121_v25 = vpop.permute.xlu0 %120 }
  0x84   :  { %v133_v28 = vmul.f32 %v2855_v22, %v131_v24  ;;  %v123_v29 = vmul.f32 %v2860_v23, %v121_v25 }
  0x86   :  { %v135_v30 = vadd.f32 %v133_v28, %v128_v26  ;;  %v134_v31 = vadd.f32 %v123_v29, %v118_v27 }
  0x87   :  { %v540_v36 = vpop.permute.xlu1 %539 }
  0x88   :  { %v136_v33 = vadd.f32 %v135_v30, %v134_v31 }
  0x8a   :  { %v137_v34 = vadd.f32 %v2869_v32, %v136_v33 }
  0x8c   :  { %v536_v35 = vadd.f32 %v535_v17, %v137_v34  ;;  %v2938_v17 = vld [vmem:[%s4061_s1 + $0xc] ss:$0 sm:$0xff] }
  0x8e   :  { %2566 = vtanh.f32 %v536_v35 }
  0x9b   :  { %v2567_v37 = vpop.eup %2566 }
  0x9c   :  { %v542_v38 = vmul.f32 %v2567_v37, %v540_v36  ;;  %v549_v45 = vmul.f32 0.5, %v2567_v37  ;;  %v2956_v37 = vld [vmem:[%s4061_s1 + $0xe] ss:$0 sm:$0xff] }
  0x9e   :  { %544 = vrot.lane.b32.xlu0 %v542_v38, %s2781_s4  ;;  %v550_v46 = vadd.f32 0.5, %v549_v45 }
 0x110   :  { %v545_v39 = vpop.permute.xlu0 %544 }
 0x111   :  { %v547_v40 = vadd.f32 %v545_v39, %v536_v35 }
 0x113   :  { %2568 = vtanh.f32 %v547_v40 }
 0x120   :  { %v2569_v41 = vpop.eup %2568 }
 0x121   :  { %v551_v42 = vsub.f32 0.0, %v2569_v41 }
 0x123   :  { %553 = vrot.lane.b32.xlu1 %v551_v42, %s2782_s5 }
 0x195   :  { %v554_v47 = vpop.permute.xlu1 %553 }
 0x196   :  { %v556_v48 = vmul.f32 %v554_v47, %v550_v46 }
 0x198   :  { %558 = vrot.lane.b32.xlu0 %v556_v48, %s2785_s6 }
 0x20a   :  { %v559_v60 = vpop.permute.xlu0 %558 }
 0x20b   :  { %v2906_v62 = vadd.f32 %v2569_v41, %v559_v60 }
 0x20d   :  { %569 = vperm.xlu0 %2379, %v2906_v62   ;;  %564 = vperm.xlu1 %2378, %v2906_v62  }
 0x211   :  { %2380 = vset.pattern.permute.xlu1 %v2786_v0  ;;  %598 = vrot.lane.b32.xlu0 %v594_v63, %s2780_s21 }
 0x212   :  { %574 = vperm.xlu1 %2380, %v2906_v62   ;;  %2383 = vset.pattern.permute.xlu0 %v2779_v14 }
 0x215   :  { %146 = vperm.xlu0 %2383, %v138_v7  }
 0x216   :  { %2381 = vset.pattern.permute.xlu1 %v2787_v8 }
 0x217   :  { %579 = vperm.xlu1 %2381, %v2906_v62  }
 0x219   :  { %2387 = vset.pattern.permute.xlu0 %v2784_v44 }
 0x21b   :  { %2382 = vset.pattern.permute.xlu1 %v2777_v2 }
 0x21c   :  { %141 = vperm.xlu1 %2382, %v138_v7  }
 0x220   :  { %2384 = vset.pattern.permute.xlu1 %v2776_v1 }
 0x221   :  { %151 = vperm.xlu1 %2384, %v138_v7  }
 0x225   :  { %2385 = vset.pattern.permute.xlu1 %v2778_v13 }
 0x226   :  { %156 = vperm.xlu1 %2385, %v138_v7  }
 0x22a   :  { %2386 = vset.pattern.permute.xlu1 %v2783_v43 }
 0x288   :  { %v565_v9 = vpop.permute.xlu1 %564  ;;  %v570_v12 = vpop.permute.xlu0 %569 }
 0x289   :  { %v572_v19 = vmul.f32 %v2928_v11, %v570_v12  ;;  %v622_v24 = vmul.f32 %v2817_v4, %v570_v12  ;;  %v567_v25 = vmul.f32 %v2933_v16, %v565_v9  ;;  %v621_v26 = vmul.f32 %v2812_v3, %v565_v9 }
 0x28b   :  { %v583_v33 = vadd.f32 %v572_v19, %v567_v25  ;;  %v625_v34 = vadd.f32 %v622_v24, %v621_v26 }
 0x28c   :  { %v599_v46 = vpop.permute.xlu0 %598 }
 0x28d   :  { %v575_v10 = vpop.permute.xlu1 %574 }
 0x28e   :  { %v577_v28 = vmul.f32 %v2938_v17, %v575_v10  ;;  %v623_v29 = vmul.f32 %v2822_v5, %v575_v10 }
 0x290   :  { %v147_v54 = vpop.permute.xlu0 %146 }
 0x291   :  { %v149_v58 = vmul.f32 %v2860_v23, %v147_v54 }
 0x292   :  { %v580_v27 = vpop.permute.xlu1 %579 }
 0x293   :  { %v582_v30 = vmul.f32 %v2943_v18, %v580_v27  ;;  %v624_v31 = vmul.f32 %v2827_v6, %v580_v27 }
 0x295   :  { %v584_v35 = vadd.f32 %v582_v30, %v577_v28  ;;  %v626_v36 = vadd.f32 %v624_v31, %v623_v29 }
 0x297   :  { %v585_v38 = vadd.f32 %v584_v35, %v583_v33  ;;  %v627_v39 = vadd.f32 %v626_v36, %v625_v34  ;;  %v142_v48 = vpop.permute.xlu1 %141 }
 0x298   :  { %v144_v56 = vmul.f32 %v2850_v21, %v142_v48  ;;  %v164_v48 = vld [vmem:[%s4060_s0 + $0x10] sm:$0xff] }
 0x299   :  { %v586_v40 = vadd.f32 %v2956_v37, %v585_v38  ;;  %v628_v41 = vadd.f32 %v2838_v15, %v627_v39 }
 0x29a   :  { %v160_v60 = vadd.f32 %v149_v58, %v144_v56 }
 0x29b   :  { %v595_v42 = vadd.f32 %v594_v63, %v586_v40  ;;  %632 = vrot.lane.b32.xlu0 %v628_v41, %s2780_s21 }
 0x29c   :  { %v152_v53 = vpop.permute.xlu1 %151 }
 0x29d   :  { %2570 = vtanh.f32 %v595_v42  ;;  %v154_v57 = vmul.f32 %v2845_v20, %v152_v53 }
 0x2a1   :  { %v157_v55 = vpop.permute.xlu1 %156 }
 0x2a2   :  { %v159_v59 = vmul.f32 %v2855_v22, %v157_v55 }
 0x2a4   :  { %v161_v63 = vadd.f32 %v159_v59, %v154_v57 }
 0x2a6   :  { %v162_v7 = vadd.f32 %v161_v63, %v160_v60 }
 0x2a8   :  { %v163_v9 = vadd.f32 %v2869_v32, %v162_v7 }
 0x2aa   :  { %v2571_v45 = vpop.eup %2570  ;;  %v629_v10 = vadd.f32 %v628_v41, %v163_v9 }
 0x2ab   :  { %v601_v47 = vmul.f32 %v2571_v45, %v599_v46  ;;  %v608_v34 = vmul.f32 0.5, %v2571_v45 }
 0x2ac   :  { %2572 = vtanh.f32 %v629_v10 }
 0x2ad   :  { %603 = vrot.lane.b32.xlu1 %v601_v47, %s2781_s4  ;;  %v609_v35 = vadd.f32 0.5, %v608_v34 }
 0x2b9   :  { %v2573_v12 = vpop.eup %2572 }
 0x2ba   :  { %v642_v39 = vmul.f32 0.5, %v2573_v12 }
 0x2bc   :  { %v643_v40 = vadd.f32 0.5, %v642_v39 }
 0x30d   :  { %v633_v19 = vpop.permute.xlu0 %632 }
 0x30e   :  { %v635_v24 = vmul.f32 %v2573_v12, %v633_v19 }
 0x310   :  { %637 = vrot.lane.b32.xlu0 %v635_v24, %s2781_s4 }
 0x31f   :  { %v604_v25 = vpop.permute.xlu1 %603 }
 0x320   :  { %v606_v26 = vadd.f32 %v604_v25, %v595_v42 }
 0x322   :  { %2574 = vtanh.f32 %v606_v26 }
 0x32f   :  { %v2575_v27 = vpop.eup %2574 }
 0x330   :  { %v610_v28 = vsub.f32 0.0, %v2575_v27 }
 0x332   :  { %612 = vrot.lane.b32.xlu1 %v610_v28, %s2782_s5 }
 0x382   :  { %v638_v29 = vpop.permute.xlu0 %637 }
 0x383   :  { %v640_v30 = vadd.f32 %v638_v29, %v629_v10 }
 0x385   :  { %2576 = vtanh.f32 %v640_v30 }
 0x392   :  { %v2577_v31 = vpop.eup %2576 }
 0x393   :  { %v644_v33 = vsub.f32 %v2906_v62, %v2577_v31 }
 0x395   :  { %646 = vrot.lane.b32.xlu0 %v644_v33, %s2782_s5 }
 0x3a4   :  { %v613_v36 = vpop.permute.xlu1 %612 }
 0x3a5   :  { %v615_v38 = vmul.f32 %v613_v36, %v609_v35 }
 0x3a7   :  { %617 = vrot.lane.b32.xlu1 %v615_v38, %s2785_s6 }
 0x407   :  { %v647_v41 = vpop.permute.xlu0 %646 }
 0x408   :  { %v649_v42 = vmul.f32 %v647_v41, %v643_v40 }
 0x40a   :  { %651 = vrot.lane.b32.xlu0 %v649_v42, %s2785_s6 }
 0x419   :  { %v618_v46 = vpop.permute.xlu1 %617 }
 0x41a   :  { %v2973_v47 = vadd.f32 %v2575_v27, %v618_v46 }
 0x41c   :  { %687 = vperm.xlu0 %2387, %v2973_v47   ;;  %682 = vperm.xlu1 %2386, %v2973_v47  }
 0x420   :  { %2388 = vset.pattern.permute.xlu1 %v2786_v0  ;;  %2390 = vset.pattern.permute.xlu0 %v2783_v43 }
 0x421   :  { %692 = vperm.xlu1 %2388, %v2973_v47  }
 0x425   :  { %2389 = vset.pattern.permute.xlu1 %v2787_v8 }
 0x426   :  { %697 = vperm.xlu1 %2389, %v2973_v47  }
 0x42a   :  { %2391 = vset.pattern.permute.xlu1 %v2784_v44 }
 0x47c   :  { %v652_v62 = vpop.permute.xlu0 %651 }
 0x47d   :  { %v2983_v45 = vadd.f32 %v2577_v31, %v652_v62 }
 0x47f   :  { %657 = vperm.xlu0 %2390, %v2983_v45   ;;  %662 = vperm.xlu1 %2391, %v2983_v45  }
 0x483   :  { %2393 = vset.pattern.permute.xlu0 %v2787_v8  ;;  %2392 = vset.pattern.permute.xlu1 %v2786_v0 }
 0x484   :  { %672 = vperm.xlu0 %2393, %v2983_v45   ;;  %667 = vperm.xlu1 %2392, %v2983_v45  }
 0x488   :  { %2394 = vset.pattern.permute.xlu1 %v2777_v2  ;;  %2395 = vset.pattern.permute.xlu0 %v2779_v14 }
 0x489   :  { %172 = vperm.xlu0 %2395, %v164_v48  }
 0x48d   :  { %2399 = vset.pattern.permute.xlu0 %v2784_v44 }
 0x497   :  { %v683_v53 = vpop.permute.xlu1 %682  ;;  %v688_v55 = vpop.permute.xlu0 %687 }
 0x498   :  { %v690_v56 = vmul.f32 %v2885_v50, %v688_v55  ;;  %v685_v57 = vmul.f32 %v2880_v49, %v683_v53 }
 0x49a   :  { %v701_v63 = vadd.f32 %v690_v56, %v685_v57 }
 0x49c   :  { %v693_v54 = vpop.permute.xlu1 %692 }
 0x49d   :  { %v695_v59 = vmul.f32 %v2890_v51, %v693_v54 }
 0x4a1   :  { %v698_v58 = vpop.permute.xlu1 %697 }
 0x4a2   :  { %v700_v60 = vmul.f32 %v2895_v52, %v698_v58 }
 0x4a4   :  { %v702_v7 = vadd.f32 %v700_v60, %v695_v59 }
 0x4a6   :  { %v703_v9 = vadd.f32 %v702_v7, %v701_v63 }
 0x4a8   :  { %v704_v10 = vadd.f32 %v2904_v61, %v703_v9 }
 0x4aa   :  { %708 = vrot.lane.b32.xlu1 %v704_v10, %s2780_s21 }
 0x4ae   :  { %167 = vperm.xlu1 %2394, %v164_v48  }
 0x4b2   :  { %2396 = vset.pattern.permute.xlu1 %v2776_v1 }
 0x4b3   :  { %177 = vperm.xlu1 %2396, %v164_v48  }
 0x4b7   :  { %2397 = vset.pattern.permute.xlu1 %v2778_v13 }
 0x4b8   :  { %182 = vperm.xlu1 %2397, %v164_v48  }
 0x4bc   :  { %2398 = vset.pattern.permute.xlu1 %v2783_v43 }
 0x4fa   :  { %v658_v12 = vpop.permute.xlu0 %657  ;;  %v663_v19 = vpop.permute.xlu1 %662 }
 0x4fb   :  { %v660_v24 = vmul.f32 %v2933_v16, %v658_v12  ;;  %v731_v25 = vmul.f32 %v2812_v3, %v658_v12  ;;  %v665_v26 = vmul.f32 %v2928_v11, %v663_v19  ;;  %v732_v27 = vmul.f32 %v2817_v4, %v663_v19 }
 0x4fd   :  { %v676_v35 = vadd.f32 %v665_v26, %v660_v24  ;;  %v735_v36 = vadd.f32 %v732_v27, %v731_v25 }
 0x4ff   :  { %v673_v28 = vpop.permute.xlu0 %672  ;;  %v668_v29 = vpop.permute.xlu1 %667 }
 0x500   :  { %v675_v30 = vmul.f32 %v2943_v18, %v673_v28  ;;  %v734_v31 = vmul.f32 %v2827_v6, %v673_v28  ;;  %v670_v33 = vmul.f32 %v2938_v17, %v668_v29  ;;  %v733_v34 = vmul.f32 %v2822_v5, %v668_v29 }
 0x502   :  { %v677_v38 = vadd.f32 %v675_v30, %v670_v33  ;;  %v736_v39 = vadd.f32 %v734_v31, %v733_v34 }
 0x504   :  { %v678_v40 = vadd.f32 %v677_v38, %v676_v35  ;;  %v737_v41 = vadd.f32 %v736_v39, %v735_v36  ;;  %v173_v57 = vpop.permute.xlu0 %172 }
 0x505   :  { %v175_v63 = vmul.f32 %v2860_v23, %v173_v57 }
 0x506   :  { %v738_v42 = vadd.f32 %v2838_v15, %v737_v41  ;;  %v679_v46 = vadd.f32 %v2956_v37, %v678_v40 }
 0x508   :  { %742 = vrot.lane.b32.xlu0 %v738_v42, %s2780_s21  ;;  %v705_v62 = vadd.f32 %v704_v10, %v679_v46 }
 0x50a   :  { %2578 = vtanh.f32 %v705_v62 }
 0x517   :  { %v2579_v48 = vpop.eup %2578 }
 0x518   :  { %v718_v38 = vmul.f32 0.5, %v2579_v48 }
 0x51a   :  { %v719_v39 = vadd.f32 0.5, %v718_v38 }
 0x51c   :  { %v709_v53 = vpop.permute.xlu1 %708 }
 0x51d   :  { %v711_v54 = vmul.f32 %v2579_v48, %v709_v53 }
 0x51f   :  { %713 = vrot.lane.b32.xlu1 %v711_v54, %s2781_s4 }
 0x529   :  { %v168_v55 = vpop.permute.xlu1 %167 }
 0x52a   :  { %v170_v59 = vmul.f32 %v2850_v21, %v168_v55  ;;  %v190_v55 = vld [vmem:[%s4060_s0 + $0x18] sm:$0xff] }
 0x52c   :  { %v186_v9 = vadd.f32 %v175_v63, %v170_v59 }
 0x52e   :  { %v178_v56 = vpop.permute.xlu1 %177 }
 0x52f   :  { %v180_v60 = vmul.f32 %v2845_v20, %v178_v56 }
 0x533   :  { %v183_v58 = vpop.permute.xlu1 %182 }
 0x534   :  { %v185_v7 = vmul.f32 %v2855_v22, %v183_v58 }
 0x536   :  { %v187_v10 = vadd.f32 %v185_v7, %v180_v60 }
 0x538   :  { %v188_v12 = vadd.f32 %v187_v10, %v186_v9 }
 0x53a   :  { %v189_v19 = vadd.f32 %v2869_v32, %v188_v12 }
 0x53c   :  { %v739_v24 = vadd.f32 %v738_v42, %v189_v19 }
 0x53e   :  { %2580 = vtanh.f32 %v739_v24 }
 0x54b   :  { %v2581_v25 = vpop.eup %2580 }
 0x54c   :  { %v752_v42 = vmul.f32 0.5, %v2581_v25 }
 0x54e   :  { %v753_v46 = vadd.f32 0.5, %v752_v42 }
 0x57a   :  { %v743_v26 = vpop.permute.xlu0 %742 }
 0x57b   :  { %v745_v27 = vmul.f32 %v2581_v25, %v743_v26 }
 0x57d   :  { %747 = vrot.lane.b32.xlu0 %v745_v27, %s2781_s4 }
 0x591   :  { %v714_v28 = vpop.permute.xlu1 %713 }
 0x592   :  { %v716_v29 = vadd.f32 %v714_v28, %v705_v62 }
 0x594   :  { %2582 = vtanh.f32 %v716_v29 }
 0x5a1   :  { %v2583_v30 = vpop.eup %2582 }
 0x5a2   :  { %v720_v31 = vsub.f32 %v2973_v47, %v2583_v30 }
 0x5a4   :  { %722 = vrot.lane.b32.xlu1 %v720_v31, %s2782_s5 }
 0x5ef   :  { %v748_v33 = vpop.permute.xlu0 %747 }
 0x5f0   :  { %v750_v34 = vadd.f32 %v748_v33, %v739_v24 }
 0x5f2   :  { %2584 = vtanh.f32 %v750_v34 }
 0x5ff   :  { %v2585_v35 = vpop.eup %2584 }
 0x600   :  { %v754_v36 = vsub.f32 %v2983_v45, %v2585_v35 }
 0x602   :  { %756 = vrot.lane.b32.xlu0 %v754_v36, %s2782_s5 }
 0x616   :  { %v723_v40 = vpop.permute.xlu1 %722 }
 0x617   :  { %v725_v41 = vmul.f32 %v723_v40, %v719_v39 }
 0x619   :  { %727 = vrot.lane.b32.xlu1 %v725_v41, %s2785_s6 }
 0x674   :  { %v757_v62 = vpop.permute.xlu0 %756 }
 0x675   :  { %v759_v47 = vmul.f32 %v757_v62, %v753_v46 }
 0x677   :  { %761 = vrot.lane.b32.xlu0 %v759_v47, %s2785_s6 }
 0x68b   :  { %v728_v53 = vpop.permute.xlu1 %727 }
 0x68c   :  { %v3030_v54 = vadd.f32 %v2583_v30, %v728_v53 }
 0x68e   :  { %797 = vperm.xlu0 %2399, %v3030_v54   ;;  %792 = vperm.xlu1 %2398, %v3030_v54  }
 0x692   :  { %2400 = vset.pattern.permute.xlu1 %v2786_v0  ;;  %2402 = vset.pattern.permute.xlu0 %v2783_v43 }
 0x693   :  { %802 = vperm.xlu1 %2400, %v3030_v54  }
 0x697   :  { %2401 = vset.pattern.permute.xlu1 %v2787_v8 }
 0x698   :  { %807 = vperm.xlu1 %2401, %v3030_v54  }
 0x69c   :  { %2403 = vset.pattern.permute.xlu1 %v2784_v44 }
 0x6e9   :  { %v762_v45 = vpop.permute.xlu0 %761 }
 0x6ea   :  { %v3040_v48 = vadd.f32 %v2585_v35, %v762_v45 }
 0x6ec   :  { %767 = vperm.xlu0 %2402, %v3040_v48   ;;  %772 = vperm.xlu1 %2403, %v3040_v48  }
 0x6f0   :  { %2405 = vset.pattern.permute.xlu0 %v2787_v8  ;;  %2404 = vset.pattern.permute.xlu1 %v2786_v0 }
 0x6f1   :  { %782 = vperm.xlu0 %2405, %v3040_v48   ;;  %777 = vperm.xlu1 %2404, %v3040_v48  }
 0x6f5   :  { %2406 = vset.pattern.permute.xlu1 %v2777_v2  ;;  %2407 = vset.pattern.permute.xlu0 %v2779_v14 }
 0x6f6   :  { %198 = vperm.xlu0 %2407, %v190_v55  }
 0x6fa   :  { %2411 = vset.pattern.permute.xlu0 %v2784_v44 }
 0x709   :  { %v793_v56 = vpop.permute.xlu1 %792  ;;  %v798_v58 = vpop.permute.xlu0 %797 }
 0x70a   :  { %v800_v59 = vmul.f32 %v2885_v50, %v798_v58  ;;  %v795_v60 = vmul.f32 %v2880_v49, %v793_v56 }
 0x70c   :  { %v811_v10 = vadd.f32 %v800_v59, %v795_v60 }
 0x70e   :  { %v803_v57 = vpop.permute.xlu1 %802 }
 0x70f   :  { %v805_v7 = vmul.f32 %v2890_v51, %v803_v57 }
 0x713   :  { %v808_v63 = vpop.permute.xlu1 %807 }
 0x714   :  { %v810_v9 = vmul.f32 %v2895_v52, %v808_v63 }
 0x716   :  { %v812_v12 = vadd.f32 %v810_v9, %v805_v7 }
 0x718   :  { %v813_v19 = vadd.f32 %v812_v12, %v811_v10 }
 0x71a   :  { %v814_v24 = vadd.f32 %v2904_v61, %v813_v19 }
 0x71c   :  { %818 = vrot.lane.b32.xlu1 %v814_v24, %s2780_s21 }
 0x720   :  { %193 = vperm.xlu1 %2406, %v190_v55  }
 0x724   :  { %2408 = vset.pattern.permute.xlu1 %v2776_v1 }
 0x725   :  { %203 = vperm.xlu1 %2408, %v190_v55  }
 0x729   :  { %2409 = vset.pattern.permute.xlu1 %v2778_v13 }
 0x72a   :  { %208 = vperm.xlu1 %2409, %v190_v55  }
 0x72e   :  { %2410 = vset.pattern.permute.xlu1 %v2783_v43 }
 0x767   :  { %v768_v25 = vpop.permute.xlu0 %767  ;;  %v773_v26 = vpop.permute.xlu1 %772 }
 0x768   :  { %v841_v27 = vmul.f32 %v2812_v3, %v768_v25  ;;  %v842_v28 = vmul.f32 %v2817_v4, %v773_v26  ;;  %v770_v36 = vmul.f32 %v2933_v16, %v768_v25  ;;  %v775_v38 = vmul.f32 %v2928_v11, %v773_v26 }
 0x76a   :  { %v845_v39 = vadd.f32 %v842_v28, %v841_v27  ;;  %v786_v46 = vadd.f32 %v775_v38, %v770_v36 }
 0x76c   :  { %v783_v29 = vpop.permute.xlu0 %782  ;;  %v778_v30 = vpop.permute.xlu1 %777 }
 0x76d   :  { %v785_v31 = vmul.f32 %v2943_v18, %v783_v29  ;;  %v844_v33 = vmul.f32 %v2827_v6, %v783_v29  ;;  %v780_v34 = vmul.f32 %v2938_v17, %v778_v30  ;;  %v843_v35 = vmul.f32 %v2822_v5, %v778_v30 }
 0x76f   :  { %v846_v40 = vadd.f32 %v844_v33, %v843_v35  ;;  %v787_v41 = vadd.f32 %v785_v31, %v780_v34 }
 0x771   :  { %v847_v42 = vadd.f32 %v846_v40, %v845_v39  ;;  %v788_v47 = vadd.f32 %v787_v41, %v786_v46  ;;  %v199_v60 = vpop.permute.xlu0 %198 }
 0x772   :  { %v201_v10 = vmul.f32 %v2860_v23, %v199_v60 }
 0x773   :  { %v848_v62 = vadd.f32 %v2838_v15, %v847_v42  ;;  %v789_v53 = vadd.f32 %v2956_v37, %v788_v47 }
 0x775   :  { %852 = vrot.lane.b32.xlu0 %v848_v62, %s2780_s21  ;;  %v815_v45 = vadd.f32 %v814_v24, %v789_v53 }
 0x777   :  { %2586 = vtanh.f32 %v815_v45 }
 0x784   :  { %v2587_v55 = vpop.eup %2586 }
 0x785   :  { %v828_v41 = vmul.f32 0.5, %v2587_v55 }
 0x787   :  { %v829_v42 = vadd.f32 0.5, %v828_v41 }
 0x78e   :  { %v819_v56 = vpop.permute.xlu1 %818 }
 0x78f   :  { %v821_v57 = vmul.f32 %v2587_v55, %v819_v56 }
 0x791   :  { %823 = vrot.lane.b32.xlu1 %v821_v57, %s2781_s4 }
 0x79b   :  { %v194_v58 = vpop.permute.xlu1 %193 }
 0x79c   :  { %v196_v7 = vmul.f32 %v2850_v21, %v194_v58  ;;  %v216_v58 = vld [vmem:[%s4060_s0 + $0x20] sm:$0xff] }
 0x79e   :  { %v212_v19 = vadd.f32 %v201_v10, %v196_v7 }
 0x7a0   :  { %v204_v59 = vpop.permute.xlu1 %203 }
 0x7a1   :  { %v206_v9 = vmul.f32 %v2845_v20, %v204_v59 }
 0x7a5   :  { %v209_v63 = vpop.permute.xlu1 %208 }
 0x7a6   :  { %v211_v12 = vmul.f32 %v2855_v22, %v209_v63 }
 0x7a8   :  { %v213_v24 = vadd.f32 %v211_v12, %v206_v9 }
 0x7aa   :  { %v214_v25 = vadd.f32 %v213_v24, %v212_v19 }
 0x7ac   :  { %v215_v26 = vadd.f32 %v2869_v32, %v214_v25 }
 0x7ae   :  { %v849_v27 = vadd.f32 %v848_v62, %v215_v26 }
 0x7b0   :  { %2588 = vtanh.f32 %v849_v27 }
 0x7bd   :  { %v2589_v28 = vpop.eup %2588 }
 0x7be   :  { %v862_v47 = vmul.f32 0.5, %v2589_v28 }
 0x7c0   :  { %v863_v53 = vadd.f32 0.5, %v862_v47 }
 0x7e7   :  { %v853_v29 = vpop.permute.xlu0 %852 }
 0x7e8   :  { %v855_v30 = vmul.f32 %v2589_v28, %v853_v29 }
 0x7ea   :  { %857 = vrot.lane.b32.xlu0 %v855_v30, %s2781_s4 }
 0x803   :  { %v824_v31 = vpop.permute.xlu1 %823 }
 0x804   :  { %v826_v33 = vadd.f32 %v824_v31, %v815_v45 }
 0x806   :  { %2590 = vtanh.f32 %v826_v33 }
 0x813   :  { %v2591_v34 = vpop.eup %2590 }
 0x814   :  { %v830_v35 = vsub.f32 %v3030_v54, %v2591_v34 }
 0x816   :  { %832 = vrot.lane.b32.xlu1 %v830_v35, %s2782_s5 }
 0x85c   :  { %v858_v36 = vpop.permute.xlu0 %857 }
 0x85d   :  { %v860_v38 = vadd.f32 %v858_v36, %v849_v27 }
 0x85f   :  { %2592 = vtanh.f32 %v860_v38 }
 0x86c   :  { %v2593_v39 = vpop.eup %2592 }
 0x86d   :  { %v864_v40 = vsub.f32 %v3040_v48, %v2593_v39 }
 0x86f   :  { %866 = vrot.lane.b32.xlu0 %v864_v40, %s2782_s5 }
 0x888   :  { %v833_v46 = vpop.permute.xlu1 %832 }
 0x889   :  { %v835_v62 = vmul.f32 %v833_v46, %v829_v42 }
 0x88b   :  { %837 = vrot.lane.b32.xlu1 %v835_v62, %s2785_s6 }
 0x8e1   :  { %v867_v45 = vpop.permute.xlu0 %866 }
 0x8e2   :  { %v869_v54 = vmul.f32 %v867_v45, %v863_v53 }
 0x8e4   :  { %871 = vrot.lane.b32.xlu0 %v869_v54, %s2785_s6 }
 0x8fd   :  { %v838_v56 = vpop.permute.xlu1 %837 }
 0x8fe   :  { %v3087_v57 = vadd.f32 %v2591_v34, %v838_v56 }
 0x900   :  { %907 = vperm.xlu0 %2411, %v3087_v57   ;;  %902 = vperm.xlu1 %2410, %v3087_v57  }
 0x904   :  { %2412 = vset.pattern.permute.xlu1 %v2786_v0  ;;  %2414 = vset.pattern.permute.xlu0 %v2783_v43 }
 0x905   :  { %912 = vperm.xlu1 %2412, %v3087_v57  }
 0x909   :  { %2413 = vset.pattern.permute.xlu1 %v2787_v8 }
 0x90a   :  { %917 = vperm.xlu1 %2413, %v3087_v57  }
 0x90e   :  { %2415 = vset.pattern.permute.xlu1 %v2784_v44 }
 0x956   :  { %v872_v48 = vpop.permute.xlu0 %871 }
 0x957   :  { %v3097_v55 = vadd.f32 %v2593_v39, %v872_v48 }
 0x959   :  { %877 = vperm.xlu0 %2414, %v3097_v55   ;;  %882 = vperm.xlu1 %2415, %v3097_v55  }
 0x95d   :  { %2417 = vset.pattern.permute.xlu0 %v2787_v8  ;;  %2416 = vset.pattern.permute.xlu1 %v2786_v0 }
 0x95e   :  { %892 = vperm.xlu0 %2417, %v3097_v55   ;;  %887 = vperm.xlu1 %2416, %v3097_v55  }
 0x962   :  { %2418 = vset.pattern.permute.xlu1 %v2777_v2  ;;  %2419 = vset.pattern.permute.xlu0 %v2779_v14 }
 0x963   :  { %224 = vperm.xlu0 %2419, %v216_v58  }
 0x967   :  { %2423 = vset.pattern.permute.xlu0 %v2784_v44 }
 0x97b   :  { %v903_v59 = vpop.permute.xlu1 %902  ;;  %v908_v63 = vpop.permute.xlu0 %907 }
 0x97c   :  { %v910_v7 = vmul.f32 %v2885_v50, %v908_v63  ;;  %v905_v9 = vmul.f32 %v2880_v49, %v903_v59 }
 0x97e   :  { %v921_v24 = vadd.f32 %v910_v7, %v905_v9 }
 0x980   :  { %v913_v60 = vpop.permute.xlu1 %912 }
 0x981   :  { %v915_v12 = vmul.f32 %v2890_v51, %v913_v60 }
 0x985   :  { %v918_v10 = vpop.permute.xlu1 %917 }
 0x986   :  { %v920_v19 = vmul.f32 %v2895_v52, %v918_v10 }
 0x988   :  { %v922_v25 = vadd.f32 %v920_v19, %v915_v12 }
 0x98a   :  { %v923_v26 = vadd.f32 %v922_v25, %v921_v24 }
 0x98c   :  { %v924_v27 = vadd.f32 %v2904_v61, %v923_v26 }
 0x98e   :  { %928 = vrot.lane.b32.xlu1 %v924_v27, %s2780_s21 }
 0x992   :  { %219 = vperm.xlu1 %2418, %v216_v58  }
 0x996   :  { %2420 = vset.pattern.permute.xlu1 %v2776_v1 }
 0x997   :  { %229 = vperm.xlu1 %2420, %v216_v58  }
 0x99b   :  { %2421 = vset.pattern.permute.xlu1 %v2778_v13 }
 0x99c   :  { %234 = vperm.xlu1 %2421, %v216_v58  }
 0x9a0   :  { %2422 = vset.pattern.permute.xlu1 %v2783_v43 }
 0x9d4   :  { %v878_v28 = vpop.permute.xlu0 %877  ;;  %v883_v29 = vpop.permute.xlu1 %882 }
 0x9d5   :  { %v951_v30 = vmul.f32 %v2812_v3, %v878_v28  ;;  %v952_v31 = vmul.f32 %v2817_v4, %v883_v29  ;;  %v880_v62 = vmul.f32 %v2933_v16, %v878_v28  ;;  %v885_v3 = vmul.f32 %v2928_v11, %v883_v29 }
 0x9d7   :  { %v955_v38 = vadd.f32 %v952_v31, %v951_v30  ;;  %v896_v47 = vadd.f32 %v885_v3, %v880_v62  ;;  %v242_v62 = vld [vmem:[%s4060_s0 + $0x28] sm:$0xff] }
 0x9d9   :  { %v893_v33 = vpop.permute.xlu0 %892  ;;  %v888_v34 = vpop.permute.xlu1 %887 }
 0x9da   :  { %v954_v35 = vmul.f32 %v2827_v6, %v893_v33  ;;  %v953_v36 = vmul.f32 %v2822_v5, %v888_v34  ;;  %v895_v41 = vmul.f32 %v2943_v18, %v893_v33  ;;  %v890_v42 = vmul.f32 %v2938_v17, %v888_v34 }
 0x9dc   :  { %v956_v39 = vadd.f32 %v954_v35, %v953_v36  ;;  %v897_v4 = vadd.f32 %v895_v41, %v890_v42 }
 0x9de   :  { %v957_v40 = vadd.f32 %v956_v39, %v955_v38  ;;  %v898_v6 = vadd.f32 %v897_v4, %v896_v47  ;;  %v225_v58 = vpop.permute.xlu0 %224 }
 0x9df   :  { %v227_v7 = vmul.f32 %v2860_v23, %v225_v58 }
 0x9e0   :  { %v958_v46 = vadd.f32 %v2838_v15, %v957_v40  ;;  %v899_v5 = vadd.f32 %v2956_v37, %v898_v6 }
 0x9e2   :  { %962 = vrot.lane.b32.xlu0 %v958_v46, %s2780_s21  ;;  %v925_v53 = vadd.f32 %v924_v27, %v899_v5 }
 0x9e4   :  { %2594 = vtanh.f32 %v925_v53 }
 0x9f1   :  { %v2595_v45 = vpop.eup %2594 }
 0x9f2   :  { %v938_v33 = vmul.f32 0.5, %v2595_v45 }
 0x9f4   :  { %v939_v34 = vadd.f32 0.5, %v938_v33 }
 0xa00   :  { %v929_v54 = vpop.permute.xlu1 %928 }
 0xa01   :  { %v931_v56 = vmul.f32 %v2595_v45, %v929_v54 }
 0xa03   :  { %933 = vrot.lane.b32.xlu1 %v931_v56, %s2781_s4 }
 0xa0d   :  { %v220_v48 = vpop.permute.xlu1 %219 }
 0xa0e   :  { %v222_v60 = vmul.f32 %v2850_v21, %v220_v48 }
 0xa10   :  { %v238_v10 = vadd.f32 %v227_v7, %v222_v60  ;;  %v3192_v7 = vld [vmem:[%s4061_s1 + $0x8] ss:$0 sm:$0xff] }
 0xa12   :  { %v230_v15 = vpop.permute.xlu1 %229 }
 0xa13   :  { %v232_v63 = vmul.f32 %v2845_v20, %v230_v15 }
 0xa17   :  { %v235_v59 = vpop.permute.xlu1 %234 }
 0xa18   :  { %v237_v9 = vmul.f32 %v2855_v22, %v235_v59 }
 0xa1a   :  { %v239_v12 = vadd.f32 %v237_v9, %v232_v63 }
 0xa1c   :  { %v240_v19 = vadd.f32 %v239_v12, %v238_v10  ;;  %v3198_v10 = vld [vmem:[%s4061_s1 + $0x7] ss:$0 sm:$0xff] }
 0xa1e   :  { %v241_v24 = vadd.f32 %v2869_v32, %v240_v19 }
 0xa20   :  { %v959_v25 = vadd.f32 %v958_v46, %v241_v24 }
 0xa22   :  { %2596 = vtanh.f32 %v959_v25 }
 0xa2f   :  { %v2597_v26 = vpop.eup %2596 }
 0xa30   :  { %v972_v38 = vmul.f32 0.5, %v2597_v26 }
 0xa32   :  { %v973_v39 = vadd.f32 0.5, %v972_v38 }
 0xa54   :  { %v963_v27 = vpop.permute.xlu0 %962 }
 0xa55   :  { %v965_v28 = vmul.f32 %v2597_v26, %v963_v27  ;;  %v3204_v26 = vld [vmem:[%s4061_s1 + $0x9] ss:$0 sm:$0xff] }
 0xa57   :  { %967 = vrot.lane.b32.xlu0 %v965_v28, %s2781_s4 }
 0xa75   :  { %v934_v29 = vpop.permute.xlu1 %933 }
 0xa76   :  { %v936_v21 = vadd.f32 %v934_v29, %v925_v53 }
 0xa78   :  { %2598 = vtanh.f32 %v936_v21 }
 0xa85   :  { %v2599_v20 = vpop.eup %2598 }
 0xa86   :  { %v940_v23 = vsub.f32 %v3087_v57, %v2599_v20 }
 0xa88   :  { %942 = vrot.lane.b32.xlu1 %v940_v23, %s2782_s5 }
 0xac9   :  { %v968_v22 = vpop.permute.xlu0 %967 }
 0xaca   :  { %v970_v30 = vadd.f32 %v968_v22, %v959_v25 }
 0xacc   :  { %2600 = vtanh.f32 %v970_v30 }
 0xad9   :  { %v2601_v31 = vpop.eup %2600 }
 0xada   :  { %v974_v32 = vsub.f32 %v3097_v55, %v2601_v31 }
 0xadc   :  { %976 = vrot.lane.b32.xlu0 %v974_v32, %s2782_s5 }
 0xafa   :  { %v943_v35 = vpop.permute.xlu1 %942 }
 0xafb   :  { %v945_v36 = vmul.f32 %v943_v35, %v939_v34 }
 0xafd   :  { %947 = vrot.lane.b32.xlu1 %v945_v36, %s2785_s6 }
 0xb4e   :  { %v977_v40 = vpop.permute.xlu0 %976 }
 0xb4f   :  { %v979_v57 = vmul.f32 %v977_v40, %v973_v39  ;;  %v3229_v40 = vld [vmem:[%s4061_s1 + $0x1] ss:$0 sm:$0xff] }
 0xb51   :  { %981 = vrot.lane.b32.xlu0 %v979_v57, %s2785_s6 }
 0xb6f   :  { %v948_v41 = vpop.permute.xlu1 %947 }
 0xb70   :  { %v3144_v42 = vadd.f32 %v2599_v20, %v948_v41  ;;  %v3235_v41 = vld [vmem:[%s4061_s1 + $0x3] ss:$0 sm:$0xff] }
 0xb72   :  { %1017 = vperm.xlu0 %2423, %v3144_v42   ;;  %1012 = vperm.xlu1 %2422, %v3144_v42  }
 0xb76   :  { %2424 = vset.pattern.permute.xlu1 %v2786_v0  ;;  %2426 = vset.pattern.permute.xlu0 %v2783_v43 }
 0xb77   :  { %1022 = vperm.xlu1 %2424, %v3144_v42  }
 0xb7b   :  { %2425 = vset.pattern.permute.xlu1 %v2787_v8 }
 0xb7c   :  { %1027 = vperm.xlu1 %2425, %v3144_v42  }
 0xb80   :  { %2427 = vset.pattern.permute.xlu1 %v2784_v44 }
 0xbc3   :  { %v982_v55 = vpop.permute.xlu0 %981 }
 0xbc4   :  { %v3154_v46 = vadd.f32 %v2601_v31, %v982_v55 }
 0xbc6   :  { %987 = vperm.xlu0 %2426, %v3154_v46   ;;  %992 = vperm.xlu1 %2427, %v3154_v46  }
 0xbca   :  { %2429 = vset.pattern.permute.xlu0 %v2787_v8  ;;  %2428 = vset.pattern.permute.xlu1 %v2786_v0 }
 0xbcb   :  { %1002 = vperm.xlu0 %2429, %v3154_v46   ;;  %997 = vperm.xlu1 %2428, %v3154_v46  }
 0xbcf   :  { %2430 = vset.pattern.permute.xlu1 %v2777_v2  ;;  %2431 = vset.pattern.permute.xlu0 %v2779_v14 }
 0xbd0   :  { %250 = vperm.xlu0 %2431, %v242_v62  }
 0xbd4   :  { %2435 = vset.pattern.permute.xlu0 %v2784_v44 }
 0xbed   :  { %v1013_v3 = vpop.permute.xlu1 %1012  ;;  %v1018_v47 = vpop.permute.xlu0 %1017 }
 0xbee   :  { %v1020_v6 = vmul.f32 %v2885_v50, %v1018_v47  ;;  %v1015_v5 = vmul.f32 %v2880_v49, %v1013_v3  ;;  %v3241_v47 = vld [vmem:[%s4061_s1 + $0x4] ss:$0 sm:$0xff] }
 0xbf0   :  { %v1031_v56 = vadd.f32 %v1020_v6, %v1015_v5 }
 0xbf2   :  { %v1023_v4 = vpop.permute.xlu1 %1022 }
 0xbf3   :  { %v1025_v45 = vmul.f32 %v2890_v51, %v1023_v4  ;;  %v3180_v51 = vld [vmem:[%s4061_s1 + $0x5] ss:$0 sm:$0xff] }
 0xbf7   :  { %v1028_v53 = vpop.permute.xlu1 %1027 }
 0xbf8   :  { %v1030_v54 = vmul.f32 %v2895_v52, %v1028_v53 }
 0xbfa   :  { %v1032_v48 = vadd.f32 %v1030_v54, %v1025_v45 }
 0xbfc   :  { %v1033_v15 = vadd.f32 %v1032_v48, %v1031_v56 }
 0xbfe   :  { %v1034_v58 = vadd.f32 %v2904_v61, %v1033_v15  ;;  %v3186_v61 = vld [vmem:[%s4061_s1 + $0x6] ss:$0 sm:$0xff] }
 0xc00   :  { %1038 = vrot.lane.b32.xlu1 %v1034_v58, %s2780_s21 }
 0xc04   :  { %245 = vperm.xlu1 %2430, %v242_v62  }
 0xc08   :  { %2432 = vset.pattern.permute.xlu1 %v2776_v1 }
 0xc09   :  { %255 = vperm.xlu1 %2432, %v242_v62  }
 0xc0d   :  { %2433 = vset.pattern.permute.xlu1 %v2778_v13 }
 0xc0e   :  { %260 = vperm.xlu1 %2433, %v242_v62  }
 0xc12   :  { %2434 = vset.pattern.permute.xlu1 %v2783_v43 }
 0xc41   :  { %v988_v49 = vpop.permute.xlu0 %987  ;;  %v993_v50 = vpop.permute.xlu1 %992 }
 0xc42   :  { %v1061_v52 = vmul.f32 %v3180_v51, %v988_v49  ;;  %v1062_v59 = vmul.f32 %v3186_v61, %v993_v50  ;;  %v990_v21 = vmul.f32 %v2933_v16, %v988_v49  ;;  %v995_v20 = vmul.f32 %v2928_v11, %v993_v50  ;;  %v3217_v11 = vld [vmem:[%s4061_s1] ss:$0 sm:$0xff] }
 0xc44   :  { %v1065_v19 = vadd.f32 %v1062_v59, %v1061_v52  ;;  %v1006_v22 = vadd.f32 %v995_v20, %v990_v21  ;;  %v268_v21 = vld [vmem:[%s4060_s0 + $0x30] sm:$0xff] }
 0xc46   :  { %v1003_v60 = vpop.permute.xlu0 %1002  ;;  %v998_v63 = vpop.permute.xlu1 %997 }
 0xc47   :  { %v1064_v9 = vmul.f32 %v3192_v7, %v1003_v60  ;;  %v1063_v12 = vmul.f32 %v3198_v10, %v998_v63  ;;  %v1005_v28 = vmul.f32 %v2943_v18, %v1003_v60  ;;  %v1000_v29 = vmul.f32 %v2938_v17, %v998_v63 }
 0xc49   :  { %v1066_v24 = vadd.f32 %v1064_v9, %v1063_v12  ;;  %v1007_v23 = vadd.f32 %v1005_v28, %v1000_v29 }
 0xc4b   :  { %v1067_v25 = vadd.f32 %v1066_v24, %v1065_v19  ;;  %v1008_v30 = vadd.f32 %v1007_v23, %v1006_v22  ;;  %v251_v38 = vpop.permute.xlu0 %250 }
 0xc4c   :  { %v253_v57 = vmul.f32 %v3229_v40, %v251_v38 }
 0xc4d   :  { %v1068_v27 = vadd.f32 %v3204_v26, %v1067_v25  ;;  %v1009_v31 = vadd.f32 %v2956_v37, %v1008_v30  ;;  %v3223_v37 = vld [vmem:[%s4061_s1 + $0x2] ss:$0 sm:$0xff]  ;;  %v3278_v30 = vld [vmem:[%s4061_s1 + $0x10] ss:$0 sm:$0xff] }
 0xc4f   :  { %1072 = vrot.lane.b32.xlu0 %v1068_v27, %s2780_s21  ;;  %v1035_v32 = vadd.f32 %v1034_v58, %v1009_v31 }
 0xc51   :  { %2602 = vtanh.f32 %v1035_v32 }
 0xc5e   :  { %v2603_v33 = vpop.eup %2602 }
 0xc5f   :  { %v1048_v60 = vmul.f32 0.5, %v2603_v33 }
 0xc61   :  { %v1049_v63 = vadd.f32 0.5, %v1048_v60  ;;  %v3330_v60 = vld [vmem:[%s4061_s1 + $0xa] ss:$0 sm:$0xff] }
 0xc72   :  { %v1039_v34 = vpop.permute.xlu1 %1038 }
 0xc73   :  { %v1041_v35 = vmul.f32 %v2603_v33, %v1039_v34 }
 0xc75   :  { %1043 = vrot.lane.b32.xlu1 %v1041_v35, %s2781_s4  ;;  %v3290_v35 = vld [vmem:[%s4061_s1 + $0x11] ss:$0 sm:$0xff] }
 0xc7f   :  { %v246_v36 = vpop.permute.xlu1 %245 }
 0xc80   :  { %v248_v16 = vmul.f32 %v3217_v11, %v246_v36 }
 0xc82   :  { %v264_v62 = vadd.f32 %v253_v57, %v248_v16  ;;  %v3302_v57 = vld [vmem:[%s4061_s1 + $0x13] ss:$0 sm:$0xff] }
 0xc84   :  { %v256_v18 = vpop.permute.xlu1 %255 }
 0xc85   :  { %v258_v39 = vmul.f32 %v3223_v37, %v256_v18  ;;  %v3296_v18 = vld [vmem:[%s4061_s1 + $0x12] ss:$0 sm:$0xff] }
 0xc89   :  { %v261_v17 = vpop.permute.xlu1 %260 }
 0xc8a   :  { %v263_v55 = vmul.f32 %v3235_v41, %v261_v17 }
 0xc8c   :  { %v265_v3 = vadd.f32 %v263_v55, %v258_v39 }
 0xc8e   :  { %v266_v4 = vadd.f32 %v265_v3, %v264_v62 }
 0xc90   :  { %v267_v6 = vadd.f32 %v3241_v47, %v266_v4 }
 0xc92   :  { %v1069_v5 = vadd.f32 %v1068_v27, %v267_v6 }
 0xc94   :  { %2604 = vtanh.f32 %v1069_v5 }
 0xca1   :  { %v2605_v53 = vpop.eup %2604 }
 0xca2   :  { %v1082_v19 = vmul.f32 0.5, %v2605_v53 }
 0xca4   :  { %v1083_v24 = vadd.f32 0.5, %v1082_v19 }
 0xcc1   :  { %v1073_v45 = vpop.permute.xlu0 %1072 }
 0xcc2   :  { %v1075_v54 = vmul.f32 %v2605_v53, %v1073_v45 }
 0xcc4   :  { %1077 = vrot.lane.b32.xlu0 %v1075_v54, %s2781_s4 }
 0xce7   :  { %v1044_v56 = vpop.permute.xlu1 %1043 }
 0xce8   :  { %v1046_v48 = vadd.f32 %v1044_v56, %v1035_v32  ;;  %v3284_v32 = vld [vmem:[%s4061_s1 + $0xf] ss:$0 sm:$0xff] }
 0xcea   :  { %2606 = vtanh.f32 %v1046_v48 }
 0xcf7   :  { %v2607_v15 = vpop.eup %2606 }
 0xcf8   :  { %v1050_v58 = vsub.f32 %v3144_v42, %v2607_v15 }
 0xcfa   :  { %1052 = vrot.lane.b32.xlu1 %v1050_v58, %s2782_s5 }
 0xd36   :  { %v1078_v49 = vpop.permute.xlu0 %1077 }
 0xd37   :  { %v1080_v50 = vadd.f32 %v1078_v49, %v1069_v5  ;;  %v3318_v49 = vld [vmem:[%s4061_s1 + $0xd] ss:$0 sm:$0xff] }
 0xd39   :  { %2608 = vtanh.f32 %v1080_v50 }
 0xd46   :  { %v2609_v52 = vpop.eup %2608 }
 0xd47   :  { %v1084_v59 = vsub.f32 %v3154_v46, %v2609_v52 }
 0xd49   :  { %1086 = vrot.lane.b32.xlu0 %v1084_v59, %s2782_s5 }
 0xd6c   :  { %v1053_v9 = vpop.permute.xlu1 %1052 }
 0xd6d   :  { %v1055_v12 = vmul.f32 %v1053_v9, %v1049_v63  ;;  %v3336_v9 = vld [vmem:[%s4061_s1 + $0xb] ss:$0 sm:$0xff] }
 0xd6f   :  { %1057 = vrot.lane.b32.xlu1 %v1055_v12, %s2785_s6 }
 0xdbb   :  { %v1087_v25 = vpop.permute.xlu0 %1086 }
 0xdbc   :  { %v1089_v42 = vmul.f32 %v1087_v25, %v1083_v24 }
 0xdbe   :  { %1091 = vrot.lane.b32.xlu0 %v1089_v42, %s2785_s6  ;;  %v3342_v42 = vld [vmem:[%s4061_s1 + $0xe] ss:$0 sm:$0xff] }
 0xde1   :  { %v1058_v27 = vpop.permute.xlu1 %1057 }
 0xde2   :  { %v3251_v28 = vadd.f32 %v2607_v15, %v1058_v27 }
 0xde4   :  { %1127 = vperm.xlu0 %2435, %v3251_v28   ;;  %1122 = vperm.xlu1 %2434, %v3251_v28  }
 0xde8   :  { %2436 = vset.pattern.permute.xlu1 %v2786_v0  ;;  %2438 = vset.pattern.permute.xlu0 %v2783_v43 }
 0xde9   :  { %1132 = vperm.xlu1 %2436, %v3251_v28  }
 0xded   :  { %2437 = vset.pattern.permute.xlu1 %v2787_v8 }
 0xdee   :  { %1137 = vperm.xlu1 %2437, %v3251_v28  }
 0xdf2   :  { %2439 = vset.pattern.permute.xlu1 %v2784_v44 }
 0xe30   :  { %v1092_v46 = vpop.permute.xlu0 %1091 }
 0xe31   :  { %v3261_v29 = vadd.f32 %v2609_v52, %v1092_v46  ;;  %v3324_v52 = vld [vmem:[%s4061_s1 + $0xc] ss:$0 sm:$0xff] }
 0xe33   :  { %1097 = vperm.xlu0 %2438, %v3261_v29   ;;  %1102 = vperm.xlu1 %2439, %v3261_v29  }
 0xe37   :  { %2441 = vset.pattern.permute.xlu0 %v2787_v8  ;;  %2440 = vset.pattern.permute.xlu1 %v2786_v0 }
 0xe38   :  { %1112 = vperm.xlu0 %2441, %v3261_v29   ;;  %1107 = vperm.xlu1 %2440, %v3261_v29  }
 0xe3c   :  { %2442 = vset.pattern.permute.xlu1 %v2777_v2  ;;  %2443 = vset.pattern.permute.xlu0 %v2779_v14 }
 0xe3d   :  { %276 = vperm.xlu0 %2443, %v268_v21  }
 0xe41   :  { %2447 = vset.pattern.permute.xlu0 %v2784_v44 }
 0xe5f   :  { %v1123_v20 = vpop.permute.xlu1 %1122  ;;  %v1128_v22 = vpop.permute.xlu0 %1127 }
 0xe60   :  { %v1130_v31 = vmul.f32 %v3278_v30, %v1128_v22  ;;  %v1125_v33 = vmul.f32 %v3284_v32, %v1123_v20 }
 0xe62   :  { %v1141_v17 = vadd.f32 %v1130_v31, %v1125_v33 }
 0xe64   :  { %v1133_v23 = vpop.permute.xlu1 %1132 }
 0xe65   :  { %v1135_v36 = vmul.f32 %v3290_v35, %v1133_v23 }
 0xe69   :  { %v1138_v34 = vpop.permute.xlu1 %1137 }
 0xe6a   :  { %v1140_v38 = vmul.f32 %v3296_v18, %v1138_v34 }
 0xe6c   :  { %v1142_v16 = vadd.f32 %v1140_v38, %v1135_v36 }
 0xe6e   :  { %v1143_v39 = vadd.f32 %v1142_v16, %v1141_v17 }
 0xe70   :  { %v1144_v55 = vadd.f32 %v3302_v57, %v1143_v39 }
 0xe72   :  { %1148 = vrot.lane.b32.xlu1 %v1144_v55, %s2780_s21 }
 0xe76   :  { %271 = vperm.xlu1 %2442, %v268_v21  }
 0xe7a   :  { %2444 = vset.pattern.permute.xlu1 %v2776_v1 }
 0xe7b   :  { %281 = vperm.xlu1 %2444, %v268_v21  }
 0xe7f   :  { %2445 = vset.pattern.permute.xlu1 %v2778_v13 }
 0xe80   :  { %286 = vperm.xlu1 %2445, %v268_v21  }
 0xe84   :  { %2446 = vset.pattern.permute.xlu1 %v2783_v43 }
 0xeae   :  { %v1098_v62 = vpop.permute.xlu0 %1097  ;;  %v1103_v3 = vpop.permute.xlu1 %1102 }
 0xeaf   :  { %v1171_v4 = vmul.f32 %v3180_v51, %v1098_v62  ;;  %v1172_v6 = vmul.f32 %v3186_v61, %v1103_v3  ;;  %v1100_v63 = vmul.f32 %v3330_v60, %v1098_v62  ;;  %v1105_v12 = vmul.f32 %v3336_v9, %v1103_v3 }
 0xeb1   :  { %v1175_v56 = vadd.f32 %v1172_v6, %v1171_v4  ;;  %v1116_v24 = vadd.f32 %v1105_v12, %v1100_v63 }
 0xeb3   :  { %v1113_v5 = vpop.permute.xlu0 %1112  ;;  %v1108_v53 = vpop.permute.xlu1 %1107 }
 0xeb4   :  { %v1174_v45 = vmul.f32 %v3192_v7, %v1113_v5  ;;  %v1173_v54 = vmul.f32 %v3198_v10, %v1108_v53  ;;  %v1115_v50 = vmul.f32 %v3318_v49, %v1113_v5  ;;  %v1110_v59 = vmul.f32 %v3324_v52, %v1108_v53 }
 0xeb6   :  { %v1176_v48 = vadd.f32 %v1174_v45, %v1173_v54  ;;  %v1117_v19 = vadd.f32 %v1115_v50, %v1110_v59 }
 0xeb8   :  { %v1177_v15 = vadd.f32 %v1176_v48, %v1175_v56  ;;  %v1118_v25 = vadd.f32 %v1117_v19, %v1116_v24  ;;  %v277_v33 = vpop.permute.xlu0 %276 }
 0xeb9   :  { %v279_v17 = vmul.f32 %v3229_v40, %v277_v33 }
 0xeba   :  { %v1178_v58 = vadd.f32 %v3204_v26, %v1177_v15  ;;  %v1119_v27 = vadd.f32 %v3342_v42, %v1118_v25 }
 0xebc   :  { %1182 = vrot.lane.b32.xlu0 %v1178_v58, %s2780_s21  ;;  %v1145_v46 = vadd.f32 %v1144_v55, %v1119_v27 }
 0xebe   :  { %2610 = vtanh.f32 %v1145_v46 }
 0xecb   :  { %v2611_v21 = vpop.eup %2610 }
 0xecc   :  { %v1158_v63 = vmul.f32 0.5, %v2611_v21 }
 0xece   :  { %v1159_v12 = vadd.f32 0.5, %v1158_v63 }
 0xee4   :  { %v1149_v20 = vpop.permute.xlu1 %1148 }
 0xee5   :  { %v1151_v23 = vmul.f32 %v2611_v21, %v1149_v20 }
 0xee7   :  { %1153 = vrot.lane.b32.xlu1 %v1151_v23, %s2781_s4 }
 0xef1   :  { %v272_v22 = vpop.permute.xlu1 %271 }
 0xef2   :  { %v274_v36 = vmul.f32 %v3217_v11, %v272_v22  ;;  %v294_v22 = vld [vmem:[%s4060_s0 + $0x38] sm:$0xff] }
 0xef4   :  { %v290_v39 = vadd.f32 %v279_v17, %v274_v36 }
 0xef6   :  { %v282_v31 = vpop.permute.xlu1 %281 }
 0xef7   :  { %v284_v38 = vmul.f32 %v3223_v37, %v282_v31 }
 0xefb   :  { %v287_v34 = vpop.permute.xlu1 %286 }
 0xefc   :  { %v289_v16 = vmul.f32 %v3235_v41, %v287_v34 }
 0xefe   :  { %v291_v55 = vadd.f32 %v289_v16, %v284_v38 }
 0xf00   :  { %v292_v62 = vadd.f32 %v291_v55, %v290_v39 }
 0xf02   :  { %v293_v3 = vadd.f32 %v3241_v47, %v292_v62 }
 0xf04   :  { %v1179_v4 = vadd.f32 %v1178_v58, %v293_v3 }
 0xf06   :  { %2612 = vtanh.f32 %v1179_v4 }
 0xf13   :  { %v2613_v6 = vpop.eup %2612 }
 0xf14   :  { %v1192_v25 = vmul.f32 0.5, %v2613_v6 }
 0xf16   :  { %v1193_v27 = vadd.f32 0.5, %v1192_v25 }
 0xf2e   :  { %v1183_v5 = vpop.permute.xlu0 %1182 }
 0xf2f   :  { %v1185_v53 = vmul.f32 %v2613_v6, %v1183_v5 }
 0xf31   :  { %1187 = vrot.lane.b32.xlu0 %v1185_v53, %s2781_s4 }
 0xf59   :  { %v1154_v45 = vpop.permute.xlu1 %1153 }
 0xf5a   :  { %v1156_v54 = vadd.f32 %v1154_v45, %v1145_v46 }
 0xf5c   :  { %2614 = vtanh.f32 %v1156_v54 }
 0xf69   :  { %v2615_v56 = vpop.eup %2614 }
 0xf6a   :  { %v1160_v48 = vsub.f32 %v3251_v28, %v2615_v56 }
 0xf6c   :  { %1162 = vrot.lane.b32.xlu1 %v1160_v48, %s2782_s5 }
 0xfa3   :  { %v1188_v15 = vpop.permute.xlu0 %1187 }
 0xfa4   :  { %v1190_v50 = vadd.f32 %v1188_v15, %v1179_v4 }
 0xfa6   :  { %2616 = vtanh.f32 %v1190_v50 }
 0xfb3   :  { %v2617_v59 = vpop.eup %2616 }
 0xfb4   :  { %v1194_v58 = vsub.f32 %v3261_v29, %v2617_v59 }
 0xfb6   :  { %1196 = vrot.lane.b32.xlu0 %v1194_v58, %s2782_s5 }
 0xfde   :  { %v1163_v19 = vpop.permute.xlu1 %1162 }
 0xfdf   :  { %v1165_v24 = vmul.f32 %v1163_v19, %v1159_v12 }
 0xfe1   :  { %1167 = vrot.lane.b32.xlu1 %v1165_v24, %s2785_s6 }
0x1028   :  { %v1197_v46 = vpop.permute.xlu0 %1196 }
0x1029   :  { %v1199_v28 = vmul.f32 %v1197_v46, %v1193_v27 }
0x102b   :  { %1201 = vrot.lane.b32.xlu0 %v1199_v28, %s2785_s6 }
0x1053   :  { %v1168_v20 = vpop.permute.xlu1 %1167 }
0x1054   :  { %v3358_v23 = vadd.f32 %v2615_v56, %v1168_v20 }
0x1056   :  { %1237 = vperm.xlu0 %2447, %v3358_v23   ;;  %1232 = vperm.xlu1 %2446, %v3358_v23  }
0x105a   :  { %2448 = vset.pattern.permute.xlu1 %v2786_v0  ;;  %2450 = vset.pattern.permute.xlu0 %v2783_v43 }
0x105b   :  { %1242 = vperm.xlu1 %2448, %v3358_v23  }
0x105f   :  { %2449 = vset.pattern.permute.xlu1 %v2787_v8 }
0x1060   :  { %1247 = vperm.xlu1 %2449, %v3358_v23  }
0x1064   :  { %2451 = vset.pattern.permute.xlu1 %v2784_v44 }
0x109d   :  { %v1202_v29 = vpop.permute.xlu0 %1201 }
0x109e   :  { %v3368_v21 = vadd.f32 %v2617_v59, %v1202_v29 }
0x10a0   :  { %1207 = vperm.xlu0 %2450, %v3368_v21   ;;  %1212 = vperm.xlu1 %2451, %v3368_v21  }
0x10a4   :  { %2453 = vset.pattern.permute.xlu0 %v2787_v8  ;;  %2452 = vset.pattern.permute.xlu1 %v2786_v0 }
0x10a5   :  { %1222 = vperm.xlu0 %2453, %v3368_v21   ;;  %1217 = vperm.xlu1 %2452, %v3368_v21  }
0x10a9   :  { %2454 = vset.pattern.permute.xlu1 %v2777_v2  ;;  %2455 = vset.pattern.permute.xlu0 %v2779_v14 }
0x10aa   :  { %302 = vperm.xlu0 %2455, %v294_v22  }
0x10ae   :  { %2459 = vset.pattern.permute.xlu0 %v2784_v44 }
0x10d1   :  { %v1233_v31 = vpop.permute.xlu1 %1232  ;;  %v1238_v34 = vpop.permute.xlu0 %1237 }
0x10d2   :  { %v1240_v36 = vmul.f32 %v3278_v30, %v1238_v34  ;;  %v1235_v38 = vmul.f32 %v3284_v32, %v1233_v31 }
0x10d4   :  { %v1251_v55 = vadd.f32 %v1240_v36, %v1235_v38 }
0x10d6   :  { %v1243_v33 = vpop.permute.xlu1 %1242 }
0x10d7   :  { %v1245_v16 = vmul.f32 %v3290_v35, %v1243_v33 }
0x10db   :  { %v1248_v17 = vpop.permute.xlu1 %1247 }
0x10dc   :  { %v1250_v39 = vmul.f32 %v3296_v18, %v1248_v17 }
0x10de   :  { %v1252_v62 = vadd.f32 %v1250_v39, %v1245_v16 }
0x10e0   :  { %v1253_v3 = vadd.f32 %v1252_v62, %v1251_v55 }
0x10e2   :  { %v1254_v4 = vadd.f32 %v3302_v57, %v1253_v3 }
0x10e4   :  { %1258 = vrot.lane.b32.xlu1 %v1254_v4, %s2780_s21 }
0x10e8   :  { %297 = vperm.xlu1 %2454, %v294_v22  }
0x10ec   :  { %2456 = vset.pattern.permute.xlu1 %v2776_v1 }
0x10ed   :  { %307 = vperm.xlu1 %2456, %v294_v22  }
0x10f1   :  { %2457 = vset.pattern.permute.xlu1 %v2778_v13 }
0x10f2   :  { %312 = vperm.xlu1 %2457, %v294_v22  }
0x10f6   :  { %2458 = vset.pattern.permute.xlu1 %v2783_v43 }
0x111b   :  { %v1208_v6 = vpop.permute.xlu0 %1207  ;;  %v1213_v5 = vpop.permute.xlu1 %1212 }
0x111c   :  { %v1281_v53 = vmul.f32 %v3180_v51, %v1208_v6  ;;  %v1282_v45 = vmul.f32 %v3186_v61, %v1213_v5  ;;  %v1210_v24 = vmul.f32 %v3330_v60, %v1208_v6  ;;  %v1215_v25 = vmul.f32 %v3336_v9, %v1213_v5 }
0x111e   :  { %v1285_v50 = vadd.f32 %v1282_v45, %v1281_v53  ;;  %v1226_v46 = vadd.f32 %v1215_v25, %v1210_v24 }
0x1120   :  { %v1223_v54 = vpop.permute.xlu0 %1222  ;;  %v1218_v56 = vpop.permute.xlu1 %1217 }
0x1121   :  { %v1284_v48 = vmul.f32 %v3192_v7, %v1223_v54  ;;  %v1283_v15 = vmul.f32 %v3198_v10, %v1218_v56  ;;  %v1225_v12 = vmul.f32 %v3318_v49, %v1223_v54  ;;  %v1220_v19 = vmul.f32 %v3324_v52, %v1218_v56 }
0x1123   :  { %v1286_v59 = vadd.f32 %v1284_v48, %v1283_v15  ;;  %v1227_v27 = vadd.f32 %v1225_v12, %v1220_v19 }
0x1125   :  { %v1287_v58 = vadd.f32 %v1286_v59, %v1285_v50  ;;  %v1228_v28 = vadd.f32 %v1227_v27, %v1226_v46  ;;  %v303_v38 = vpop.permute.xlu0 %302 }
0x1126   :  { %v305_v55 = vmul.f32 %v3229_v40, %v303_v38 }
0x1127   :  { %v1288_v63 = vadd.f32 %v3204_v26, %v1287_v58  ;;  %v1229_v20 = vadd.f32 %v3342_v42, %v1228_v28 }
0x1129   :  { %1292 = vrot.lane.b32.xlu0 %v1288_v63, %s2780_s21  ;;  %v1255_v29 = vadd.f32 %v1254_v4, %v1229_v20 }
0x112b   :  { %2618 = vtanh.f32 %v1255_v29 }
0x1138   :  { %v2619_v22 = vpop.eup %2618 }
0x1139   :  { %v1268_v24 = vmul.f32 0.5, %v2619_v22 }
0x113b   :  { %v1269_v25 = vadd.f32 0.5, %v1268_v24 }
0x1156   :  { %v1259_v31 = vpop.permute.xlu1 %1258 }
0x1157   :  { %v1261_v33 = vmul.f32 %v2619_v22, %v1259_v31 }
0x1159   :  { %1263 = vrot.lane.b32.xlu1 %v1261_v33, %s2781_s4 }
0x1163   :  { %v298_v34 = vpop.permute.xlu1 %297 }
0x1164   :  { %v300_v16 = vmul.f32 %v3217_v11, %v298_v34  ;;  %v320_v34 = vld [vmem:[%s4060_s0 + $0x40] sm:$0xff] }
0x1166   :  { %v316_v3 = vadd.f32 %v305_v55, %v300_v16 }
0x1168   :  { %v308_v36 = vpop.permute.xlu1 %307 }
0x1169   :  { %v310_v39 = vmul.f32 %v3223_v37, %v308_v36 }
0x116d   :  { %v313_v17 = vpop.permute.xlu1 %312 }
0x116e   :  { %v315_v62 = vmul.f32 %v3235_v41, %v313_v17 }
0x1170   :  { %v317_v4 = vadd.f32 %v315_v62, %v310_v39 }
0x1172   :  { %v318_v6 = vadd.f32 %v317_v4, %v316_v3 }
0x1174   :  { %v319_v5 = vadd.f32 %v3241_v47, %v318_v6 }
0x1176   :  { %v1289_v53 = vadd.f32 %v1288_v63, %v319_v5 }
0x1178   :  { %2620 = vtanh.f32 %v1289_v53 }
0x1185   :  { %v2621_v45 = vpop.eup %2620 }
0x1186   :  { %v1302_v28 = vmul.f32 0.5, %v2621_v45 }
0x1188   :  { %v1303_v20 = vadd.f32 0.5, %v1302_v28 }
0x119b   :  { %v1293_v54 = vpop.permute.xlu0 %1292 }
0x119c   :  { %v1295_v56 = vmul.f32 %v2621_v45, %v1293_v54 }
0x119e   :  { %1297 = vrot.lane.b32.xlu0 %v1295_v56, %s2781_s4 }
0x11cb   :  { %v1264_v48 = vpop.permute.xlu1 %1263 }
0x11cc   :  { %v1266_v15 = vadd.f32 %v1264_v48, %v1255_v29 }
0x11ce   :  { %2622 = vtanh.f32 %v1266_v15 }
0x11db   :  { %v2623_v50 = vpop.eup %2622 }
0x11dc   :  { %v1270_v59 = vsub.f32 %v3358_v23, %v2623_v50 }
0x11de   :  { %1272 = vrot.lane.b32.xlu1 %v1270_v59, %s2782_s5 }
0x1210   :  { %v1298_v58 = vpop.permute.xlu0 %1297 }
0x1211   :  { %v1300_v12 = vadd.f32 %v1298_v58, %v1289_v53 }
0x1213   :  { %2624 = vtanh.f32 %v1300_v12 }
0x1220   :  { %v2625_v19 = vpop.eup %2624 }
0x1221   :  { %v1304_v63 = vsub.f32 %v3368_v21, %v2625_v19 }
0x1223   :  { %1306 = vrot.lane.b32.xlu0 %v1304_v63, %s2782_s5 }
0x1250   :  { %v1273_v27 = vpop.permute.xlu1 %1272 }
0x1251   :  { %v1275_v46 = vmul.f32 %v1273_v27, %v1269_v25 }
0x1253   :  { %1277 = vrot.lane.b32.xlu1 %v1275_v46, %s2785_s6 }
0x1295   :  { %v1307_v29 = vpop.permute.xlu0 %1306 }
0x1296   :  { %v1309_v23 = vmul.f32 %v1307_v29, %v1303_v20 }
0x1298   :  { %1311 = vrot.lane.b32.xlu0 %v1309_v23, %s2785_s6 }
0x12c5   :  { %v1278_v31 = vpop.permute.xlu1 %1277 }
0x12c6   :  { %v3415_v33 = vadd.f32 %v2623_v50, %v1278_v31 }
0x12c8   :  { %1347 = vperm.xlu0 %2459, %v3415_v33   ;;  %1342 = vperm.xlu1 %2458, %v3415_v33  }
0x12cc   :  { %2460 = vset.pattern.permute.xlu1 %v2786_v0  ;;  %2462 = vset.pattern.permute.xlu0 %v2783_v43 }
0x12cd   :  { %1352 = vperm.xlu1 %2460, %v3415_v33  }
0x12d1   :  { %2461 = vset.pattern.permute.xlu1 %v2787_v8 }
0x12d2   :  { %1357 = vperm.xlu1 %2461, %v3415_v33  }
0x12d6   :  { %2463 = vset.pattern.permute.xlu1 %v2784_v44 }
0x130a   :  { %v1312_v21 = vpop.permute.xlu0 %1311 }
0x130b   :  { %v3425_v22 = vadd.f32 %v2625_v19, %v1312_v21 }
0x130d   :  { %1317 = vperm.xlu0 %2462, %v3425_v22   ;;  %1322 = vperm.xlu1 %2463, %v3425_v22  }
0x1311   :  { %2465 = vset.pattern.permute.xlu0 %v2787_v8  ;;  %2464 = vset.pattern.permute.xlu1 %v2786_v0 }
0x1312   :  { %1332 = vperm.xlu0 %2465, %v3425_v22   ;;  %1327 = vperm.xlu1 %2464, %v3425_v22  }
0x1316   :  { %2466 = vset.pattern.permute.xlu1 %v2777_v2  ;;  %2467 = vset.pattern.permute.xlu0 %v2779_v14 }
0x1317   :  { %328 = vperm.xlu0 %2467, %v320_v34  }
0x131b   :  { %2471 = vset.pattern.permute.xlu0 %v2784_v44 }
0x1343   :  { %v1343_v36 = vpop.permute.xlu1 %1342  ;;  %v1348_v17 = vpop.permute.xlu0 %1347 }
0x1344   :  { %v1350_v16 = vmul.f32 %v3278_v30, %v1348_v17  ;;  %v1345_v39 = vmul.f32 %v3284_v32, %v1343_v36 }
0x1346   :  { %v1361_v4 = vadd.f32 %v1350_v16, %v1345_v39 }
0x1348   :  { %v1353_v38 = vpop.permute.xlu1 %1352 }
0x1349   :  { %v1355_v62 = vmul.f32 %v3290_v35, %v1353_v38 }
0x134d   :  { %v1358_v55 = vpop.permute.xlu1 %1357 }
0x134e   :  { %v1360_v3 = vmul.f32 %v3296_v18, %v1358_v55 }
0x1350   :  { %v1362_v6 = vadd.f32 %v1360_v3, %v1355_v62 }
0x1352   :  { %v1363_v5 = vadd.f32 %v1362_v6, %v1361_v4 }
0x1354   :  { %v1364_v53 = vadd.f32 %v3302_v57, %v1363_v5 }
0x1356   :  { %1368 = vrot.lane.b32.xlu1 %v1364_v53, %s2780_s21 }
0x135a   :  { %323 = vperm.xlu1 %2466, %v320_v34  }
0x135e   :  { %2468 = vset.pattern.permute.xlu1 %v2776_v1 }
0x135f   :  { %333 = vperm.xlu1 %2468, %v320_v34  }
0x1363   :  { %2469 = vset.pattern.permute.xlu1 %v2778_v13 }
0x1364   :  { %338 = vperm.xlu1 %2469, %v320_v34  }
0x1368   :  { %2470 = vset.pattern.permute.xlu1 %v2783_v43 }
0x1388   :  { %v1318_v45 = vpop.permute.xlu0 %1317  ;;  %v1323_v54 = vpop.permute.xlu1 %1322 }
0x1389   :  { %v1391_v56 = vmul.f32 %v3180_v51, %v1318_v45  ;;  %v1392_v48 = vmul.f32 %v3186_v61, %v1323_v54  ;;  %v1320_v46 = vmul.f32 %v3330_v60, %v1318_v45  ;;  %v1325_v28 = vmul.f32 %v3336_v9, %v1323_v54 }
0x138b   :  { %v1395_v12 = vadd.f32 %v1392_v48, %v1391_v56  ;;  %v1336_v29 = vadd.f32 %v1325_v28, %v1320_v46 }
0x138d   :  { %v1333_v15 = vpop.permute.xlu0 %1332  ;;  %v1328_v50 = vpop.permute.xlu1 %1327 }
0x138e   :  { %v1394_v59 = vmul.f32 %v3192_v7, %v1333_v15  ;;  %v1393_v58 = vmul.f32 %v3198_v10, %v1328_v50  ;;  %v1335_v25 = vmul.f32 %v3318_v49, %v1333_v15  ;;  %v1330_v27 = vmul.f32 %v3324_v52, %v1328_v50 }
0x1390   :  { %v1396_v19 = vadd.f32 %v1394_v59, %v1393_v58  ;;  %v1337_v20 = vadd.f32 %v1335_v25, %v1330_v27 }
0x1392   :  { %v1397_v63 = vadd.f32 %v1396_v19, %v1395_v12  ;;  %v1338_v23 = vadd.f32 %v1337_v20, %v1336_v29  ;;  %v329_v39 = vpop.permute.xlu0 %328 }
0x1393   :  { %v331_v4 = vmul.f32 %v3229_v40, %v329_v39 }
0x1394   :  { %v1398_v24 = vadd.f32 %v3204_v26, %v1397_v63  ;;  %v1339_v31 = vadd.f32 %v3342_v42, %v1338_v23 }
0x1396   :  { %1402 = vrot.lane.b32.xlu0 %v1398_v24, %s2780_s21  ;;  %v1365_v21 = vadd.f32 %v1364_v53, %v1339_v31 }
0x1398   :  { %2626 = vtanh.f32 %v1365_v21 }
0x13a5   :  { %v2627_v34 = vpop.eup %2626 }
0x13a6   :  { %v1378_v46 = vmul.f32 0.5, %v2627_v34 }
0x13a8   :  { %v1379_v28 = vadd.f32 0.5, %v1378_v46 }
0x13c8   :  { %v1369_v36 = vpop.permute.xlu1 %1368 }
0x13c9   :  { %v1371_v38 = vmul.f32 %v2627_v34, %v1369_v36 }
0x13cb   :  { %1373 = vrot.lane.b32.xlu1 %v1371_v38, %s2781_s4 }
0x13d5   :  { %v324_v17 = vpop.permute.xlu1 %323 }
0x13d6   :  { %v326_v62 = vmul.f32 %v3217_v11, %v324_v17  ;;  %v346_v17 = vld [vmem:[%s4060_s0 + $0x48] sm:$0xff] }
0x13d8   :  { %v342_v5 = vadd.f32 %v331_v4, %v326_v62 }
0x13da   :  { %v334_v16 = vpop.permute.xlu1 %333 }
0x13db   :  { %v336_v3 = vmul.f32 %v3223_v37, %v334_v16 }
0x13df   :  { %v339_v55 = vpop.permute.xlu1 %338 }
0x13e0   :  { %v341_v6 = vmul.f32 %v3235_v41, %v339_v55 }
0x13e2   :  { %v343_v53 = vadd.f32 %v341_v6, %v336_v3 }
0x13e4   :  { %v344_v45 = vadd.f32 %v343_v53, %v342_v5 }
0x13e6   :  { %v345_v54 = vadd.f32 %v3241_v47, %v344_v45 }
0x13e8   :  { %v1399_v56 = vadd.f32 %v1398_v24, %v345_v54 }
0x13ea   :  { %2628 = vtanh.f32 %v1399_v56 }
0x13f7   :  { %v2629_v48 = vpop.eup %2628 }
0x13f8   :  { %v1412_v23 = vmul.f32 0.5, %v2629_v48 }
0x13fa   :  { %v1413_v31 = vadd.f32 0.5, %v1412_v23 }
0x1408   :  { %v1403_v15 = vpop.permute.xlu0 %1402 }
0x1409   :  { %v1405_v50 = vmul.f32 %v2629_v48, %v1403_v15 }
0x140b   :  { %1407 = vrot.lane.b32.xlu0 %v1405_v50, %s2781_s4 }
0x143d   :  { %v1374_v59 = vpop.permute.xlu1 %1373 }
0x143e   :  { %v1376_v58 = vadd.f32 %v1374_v59, %v1365_v21 }
0x1440   :  { %2630 = vtanh.f32 %v1376_v58 }
0x144d   :  { %v2631_v12 = vpop.eup %2630 }
0x144e   :  { %v1380_v19 = vsub.f32 %v3415_v33, %v2631_v12 }
0x1450   :  { %1382 = vrot.lane.b32.xlu1 %v1380_v19, %s2782_s5 }
0x147d   :  { %v1408_v63 = vpop.permute.xlu0 %1407 }
0x147e   :  { %v1410_v25 = vadd.f32 %v1408_v63, %v1399_v56 }
0x1480   :  { %2632 = vtanh.f32 %v1410_v25 }
0x148d   :  { %v2633_v27 = vpop.eup %2632 }
0x148e   :  { %v1414_v24 = vsub.f32 %v3425_v22, %v2633_v27 }
0x1490   :  { %1416 = vrot.lane.b32.xlu0 %v1414_v24, %s2782_s5 }
0x14c2   :  { %v1383_v20 = vpop.permute.xlu1 %1382 }
0x14c3   :  { %v1385_v29 = vmul.f32 %v1383_v20, %v1379_v28 }
0x14c5   :  { %1387 = vrot.lane.b32.xlu1 %v1385_v29, %s2785_s6 }
0x1502   :  { %v1417_v21 = vpop.permute.xlu0 %1416 }
0x1503   :  { %v1419_v33 = vmul.f32 %v1417_v21, %v1413_v31 }
0x1505   :  { %1421 = vrot.lane.b32.xlu0 %v1419_v33, %s2785_s6 }
0x1537   :  { %v1388_v36 = vpop.permute.xlu1 %1387 }
0x1538   :  { %v3472_v38 = vadd.f32 %v2631_v12, %v1388_v36 }
0x153a   :  { %1457 = vperm.xlu0 %2471, %v3472_v38   ;;  %1452 = vperm.xlu1 %2470, %v3472_v38  }
0x153e   :  { %2472 = vset.pattern.permute.xlu1 %v2786_v0  ;;  %2474 = vset.pattern.permute.xlu0 %v2783_v43 }
0x153f   :  { %1462 = vperm.xlu1 %2472, %v3472_v38  }
0x1543   :  { %2473 = vset.pattern.permute.xlu1 %v2787_v8 }
0x1544   :  { %1467 = vperm.xlu1 %2473, %v3472_v38  }
0x1548   :  { %2475 = vset.pattern.permute.xlu1 %v2784_v44 }
0x1577   :  { %v1422_v22 = vpop.permute.xlu0 %1421 }
0x1578   :  { %v3482_v34 = vadd.f32 %v2633_v27, %v1422_v22 }
0x157a   :  { %1427 = vperm.xlu0 %2474, %v3482_v34   ;;  %1432 = vperm.xlu1 %2475, %v3482_v34  }
0x157e   :  { %2477 = vset.pattern.permute.xlu0 %v2787_v8  ;;  %2476 = vset.pattern.permute.xlu1 %v2786_v0 }
0x157f   :  { %1442 = vperm.xlu0 %2477, %v3482_v34   ;;  %1437 = vperm.xlu1 %2476, %v3482_v34  }
0x1583   :  { %2478 = vset.pattern.permute.xlu1 %v2777_v2  ;;  %2479 = vset.pattern.permute.xlu0 %v2779_v14 }
0x1584   :  { %354 = vperm.xlu0 %2479, %v346_v17  }
0x1588   :  { %2483 = vset.pattern.permute.xlu0 %v2784_v44 }
0x15b5   :  { %v1453_v16 = vpop.permute.xlu1 %1452  ;;  %v1458_v55 = vpop.permute.xlu0 %1457 }
0x15b6   :  { %v1460_v62 = vmul.f32 %v3278_v30, %v1458_v55  ;;  %v1455_v3 = vmul.f32 %v3284_v32, %v1453_v16 }
0x15b8   :  { %v1471_v53 = vadd.f32 %v1460_v62, %v1455_v3 }
0x15ba   :  { %v1463_v39 = vpop.permute.xlu1 %1462 }
0x15bb   :  { %v1465_v6 = vmul.f32 %v3290_v35, %v1463_v39 }
0x15bf   :  { %v1468_v4 = vpop.permute.xlu1 %1467 }
0x15c0   :  { %v1470_v5 = vmul.f32 %v3296_v18, %v1468_v4 }
0x15c2   :  { %v1472_v45 = vadd.f32 %v1470_v5, %v1465_v6 }
0x15c4   :  { %v1473_v54 = vadd.f32 %v1472_v45, %v1471_v53 }
0x15c6   :  { %v1474_v56 = vadd.f32 %v3302_v57, %v1473_v54 }
0x15c8   :  { %1478 = vrot.lane.b32.xlu1 %v1474_v56, %s2780_s21 }
0x15cc   :  { %349 = vperm.xlu1 %2478, %v346_v17  }
0x15d0   :  { %2480 = vset.pattern.permute.xlu1 %v2776_v1 }
0x15d1   :  { %359 = vperm.xlu1 %2480, %v346_v17  }
0x15d5   :  { %2481 = vset.pattern.permute.xlu1 %v2778_v13 }
0x15d6   :  { %364 = vperm.xlu1 %2481, %v346_v17  }
0x15da   :  { %2482 = vset.pattern.permute.xlu1 %v2783_v43 }
0x15f5   :  { %v1428_v48 = vpop.permute.xlu0 %1427  ;;  %v1433_v15 = vpop.permute.xlu1 %1432 }
0x15f6   :  { %v1501_v50 = vmul.f32 %v3180_v51, %v1428_v48  ;;  %v1502_v59 = vmul.f32 %v3186_v61, %v1433_v15  ;;  %v1430_v51 = vmul.f32 %v3330_v60, %v1428_v48  ;;  %v1435_v61 = vmul.f32 %v3336_v9, %v1433_v15 }
0x15f8   :  { %v1505_v25 = vadd.f32 %v1502_v59, %v1501_v50  ;;  %v1446_v23 = vadd.f32 %v1435_v61, %v1430_v51  ;;  %v372_v51 = vld [vmem:[%s4060_s0 + $0x50] sm:$0xff] }
0x15fa   :  { %v1443_v58 = vpop.permute.xlu0 %1442  ;;  %v1438_v12 = vpop.permute.xlu1 %1437 }
0x15fb   :  { %v1504_v19 = vmul.f32 %v3192_v7, %v1443_v58  ;;  %v1503_v63 = vmul.f32 %v3198_v10, %v1438_v12  ;;  %v1445_v28 = vmul.f32 %v3318_v49, %v1443_v58  ;;  %v1440_v20 = vmul.f32 %v3324_v52, %v1438_v12 }
0x15fd   :  { %v1506_v27 = vadd.f32 %v1504_v19, %v1503_v63  ;;  %v1447_v29 = vadd.f32 %v1445_v28, %v1440_v20 }
0x15ff   :  { %v1507_v24 = vadd.f32 %v1506_v27, %v1505_v25  ;;  %v1448_v7 = vadd.f32 %v1447_v29, %v1446_v23  ;;  %v355_v17 = vpop.permute.xlu0 %354 }
0x1600   :  { %v357_v62 = vmul.f32 %v3229_v40, %v355_v17 }
0x1601   :  { %v1508_v46 = vadd.f32 %v3204_v26, %v1507_v24  ;;  %v1449_v10 = vadd.f32 %v3342_v42, %v1448_v7 }
0x1603   :  { %1512 = vrot.lane.b32.xlu0 %v1508_v46, %s2780_s21  ;;  %v1475_v31 = vadd.f32 %v1474_v56, %v1449_v10 }
0x1605   :  { %2634 = vtanh.f32 %v1475_v31 }
0x1612   :  { %v2635_v21 = vpop.eup %2634 }
0x1613   :  { %v1488_v58 = vmul.f32 0.5, %v2635_v21 }
0x1615   :  { %v1489_v12 = vadd.f32 0.5, %v1488_v58 }
0x163a   :  { %v1479_v33 = vpop.permute.xlu1 %1478 }
0x163b   :  { %v1481_v26 = vmul.f32 %v2635_v21, %v1479_v33 }
0x163d   :  { %1483 = vrot.lane.b32.xlu1 %v1481_v26, %s2781_s4 }
0x1647   :  { %v350_v36 = vpop.permute.xlu1 %349 }
0x1648   :  { %v352_v39 = vmul.f32 %v3217_v11, %v350_v36 }
0x164a   :  { %v368_v4 = vadd.f32 %v357_v62, %v352_v39  ;;  %v3577_v62 = vld [vmem:[%s4061_s1 + $0x8] ss:$0 sm:$0xff] }
0x164c   :  { %v360_v22 = vpop.permute.xlu1 %359 }
0x164d   :  { %v362_v55 = vmul.f32 %v3223_v37, %v360_v22 }
0x1651   :  { %v365_v16 = vpop.permute.xlu1 %364 }
0x1652   :  { %v367_v3 = vmul.f32 %v3235_v41, %v365_v16 }
0x1654   :  { %v369_v6 = vadd.f32 %v367_v3, %v362_v55 }
0x1656   :  { %v370_v5 = vadd.f32 %v369_v6, %v368_v4  ;;  %v3583_v4 = vld [vmem:[%s4061_s1 + $0x7] ss:$0 sm:$0xff] }
0x1658   :  { %v371_v53 = vadd.f32 %v3241_v47, %v370_v5 }
0x165a   :  { %v1509_v45 = vadd.f32 %v1508_v46, %v371_v53 }
0x165c   :  { %2636 = vtanh.f32 %v1509_v45 }
0x1669   :  { %v2637_v54 = vpop.eup %2636 }
0x166a   :  { %v1522_v25 = vmul.f32 0.5, %v2637_v54 }
0x166c   :  { %v1523_v27 = vadd.f32 0.5, %v1522_v25 }
0x1675   :  { %v1513_v56 = vpop.permute.xlu0 %1512 }
0x1676   :  { %v1515_v48 = vmul.f32 %v2637_v54, %v1513_v56  ;;  %v3589_v54 = vld [vmem:[%s4061_s1 + $0x9] ss:$0 sm:$0xff] }
0x1678   :  { %1517 = vrot.lane.b32.xlu0 %v1515_v48, %s2781_s4 }
0x16af   :  { %v1484_v15 = vpop.permute.xlu1 %1483 }
0x16b0   :  { %v1486_v11 = vadd.f32 %v1484_v15, %v1475_v31 }
0x16b2   :  { %2638 = vtanh.f32 %v1486_v11 }
0x16bf   :  { %v2639_v37 = vpop.eup %2638 }
0x16c0   :  { %v1490_v40 = vsub.f32 %v3472_v38, %v2639_v37 }
0x16c2   :  { %1492 = vrot.lane.b32.xlu1 %v1490_v40, %s2782_s5 }
0x16ea   :  { %v1518_v41 = vpop.permute.xlu0 %1517 }
0x16eb   :  { %v1520_v50 = vadd.f32 %v1518_v41, %v1509_v45 }
0x16ed   :  { %2640 = vtanh.f32 %v1520_v50 }
0x16fa   :  { %v2641_v59 = vpop.eup %2640 }
0x16fb   :  { %v1524_v47 = vsub.f32 %v3482_v34, %v2641_v59 }
0x16fd   :  { %1526 = vrot.lane.b32.xlu0 %v1524_v47, %s2782_s5 }
0x1734   :  { %v1493_v19 = vpop.permute.xlu1 %1492 }
0x1735   :  { %v1495_v63 = vmul.f32 %v1493_v19, %v1489_v12 }
0x1737   :  { %1497 = vrot.lane.b32.xlu1 %v1495_v63, %s2785_s6 }
0x176f   :  { %v1527_v24 = vpop.permute.xlu0 %1526 }
0x1770   :  { %v1529_v38 = vmul.f32 %v1527_v24, %v1523_v27  ;;  %v3614_v27 = vld [vmem:[%s4061_s1 + $0x2] ss:$0 sm:$0xff] }
0x1772   :  { %1531 = vrot.lane.b32.xlu0 %v1529_v38, %s2785_s6 }
0x17a9   :  { %v1498_v46 = vpop.permute.xlu1 %1497 }
0x17aa   :  { %v3529_v28 = vadd.f32 %v2639_v37, %v1498_v46  ;;  %v3620_v46 = vld [vmem:[%s4061_s1 + $0x3] ss:$0 sm:$0xff] }
0x17ac   :  { %1567 = vperm.xlu0 %2483, %v3529_v28   ;;  %1562 = vperm.xlu1 %2482, %v3529_v28  }
0x17b0   :  { %2484 = vset.pattern.permute.xlu1 %v2786_v0  ;;  %2486 = vset.pattern.permute.xlu0 %v2783_v43 }
0x17b1   :  { %1572 = vperm.xlu1 %2484, %v3529_v28  }
0x17b5   :  { %2485 = vset.pattern.permute.xlu1 %v2787_v8 }
0x17b6   :  { %1577 = vperm.xlu1 %2485, %v3529_v28  }
0x17ba   :  { %2487 = vset.pattern.permute.xlu1 %v2784_v44 }
0x17e4   :  { %v1532_v34 = vpop.permute.xlu0 %1531 }
0x17e5   :  { %v3539_v20 = vadd.f32 %v2641_v59, %v1532_v34 }
0x17e7   :  { %1537 = vperm.xlu0 %2486, %v3539_v20   ;;  %1542 = vperm.xlu1 %2487, %v3539_v20  }
0x17eb   :  { %2489 = vset.pattern.permute.xlu0 %v2787_v8  ;;  %2488 = vset.pattern.permute.xlu1 %v2786_v0 }
0x17ec   :  { %1552 = vperm.xlu0 %2489, %v3539_v20   ;;  %1547 = vperm.xlu1 %2488, %v3539_v20  }
0x17f0   :  { %2490 = vset.pattern.permute.xlu1 %v2777_v2  ;;  %2491 = vset.pattern.permute.xlu0 %v2779_v14 }
0x17f1   :  { %380 = vperm.xlu0 %2491, %v372_v51  }
0x17f5   :  { %2495 = vset.pattern.permute.xlu0 %v2784_v44 }
0x1827   :  { %v1563_v61 = vpop.permute.xlu1 %1562  ;;  %v1568_v23 = vpop.permute.xlu0 %1567 }
0x1828   :  { %v1570_v7 = vmul.f32 %v3278_v30, %v1568_v23  ;;  %v1565_v10 = vmul.f32 %v3284_v32, %v1563_v61  ;;  %v3626_v23 = vld [vmem:[%s4061_s1 + $0x4] ss:$0 sm:$0xff] }
0x182a   :  { %v1581_v26 = vadd.f32 %v1570_v7, %v1565_v10 }
0x182c   :  { %v1573_v29 = vpop.permute.xlu1 %1572 }
0x182d   :  { %v1575_v21 = vmul.f32 %v3290_v35, %v1573_v29  ;;  %v3565_v35 = vld [vmem:[%s4061_s1 + $0x5] ss:$0 sm:$0xff] }
0x1831   :  { %v1578_v31 = vpop.permute.xlu1 %1577 }
0x1832   :  { %v1580_v33 = vmul.f32 %v3296_v18, %v1578_v31 }
0x1834   :  { %v1582_v36 = vadd.f32 %v1580_v33, %v1575_v21 }
0x1836   :  { %v1583_v22 = vadd.f32 %v1582_v36, %v1581_v26 }
0x1838   :  { %v1584_v17 = vadd.f32 %v3302_v57, %v1583_v22  ;;  %v3571_v57 = vld [vmem:[%s4061_s1 + $0x6] ss:$0 sm:$0xff] }
0x183a   :  { %1588 = vrot.lane.b32.xlu1 %v1584_v17, %s2780_s21 }
0x183e   :  { %375 = vperm.xlu1 %2490, %v372_v51  }
0x1842   :  { %2492 = vset.pattern.permute.xlu1 %v2776_v1 }
0x1843   :  { %385 = vperm.xlu1 %2492, %v372_v51  }
0x1847   :  { %2493 = vset.pattern.permute.xlu1 %v2778_v13 }
0x1848   :  { %390 = vperm.xlu1 %2493, %v372_v51  }
0x184c   :  { %2494 = vset.pattern.permute.xlu1 %v2783_v43 }
0x1862   :  { %v1538_v30 = vpop.permute.xlu0 %1537  ;;  %v1543_v32 = vpop.permute.xlu1 %1542 }
0x1863   :  { %v1611_v18 = vmul.f32 %v3565_v35, %v1538_v30  ;;  %v1612_v16 = vmul.f32 %v3571_v57, %v1543_v32  ;;  %v1540_v11 = vmul.f32 %v3330_v60, %v1538_v30  ;;  %v1545_v37 = vmul.f32 %v3336_v9, %v1543_v32  ;;  %v3608_v9 = vld [vmem:[%s4061_s1 + $0x1] ss:$0 sm:$0xff] }
0x1865   :  { %v1615_v5 = vadd.f32 %v1612_v16, %v1611_v18  ;;  %v1556_v41 = vadd.f32 %v1545_v37, %v1540_v11  ;;  %v398_v11 = vld [vmem:[%s4060_s0 + $0x58] sm:$0xff] }
0x1867   :  { %v1553_v39 = vpop.permute.xlu0 %1552  ;;  %v1548_v55 = vpop.permute.xlu1 %1547 }
0x1868   :  { %v1614_v3 = vmul.f32 %v3577_v62, %v1553_v39  ;;  %v1613_v6 = vmul.f32 %v3583_v4, %v1548_v55  ;;  %v1555_v48 = vmul.f32 %v3318_v49, %v1553_v39  ;;  %v1550_v15 = vmul.f32 %v3324_v52, %v1548_v55  ;;  %v3602_v52 = vld [vmem:[%s4061_s1] ss:$0 sm:$0xff] }
0x186a   :  { %v1616_v53 = vadd.f32 %v1614_v3, %v1613_v6  ;;  %v1557_v40 = vadd.f32 %v1555_v48, %v1550_v15 }
0x186c   :  { %v1617_v45 = vadd.f32 %v1616_v53, %v1615_v5  ;;  %v1558_v50 = vadd.f32 %v1557_v40, %v1556_v41  ;;  %v381_v25 = vpop.permute.xlu0 %380 }
0x186e   :  { %v1618_v56 = vadd.f32 %v3589_v54, %v1617_v45  ;;  %v1559_v59 = vadd.f32 %v3342_v42, %v1558_v50  ;;  %v383_v42 = vmul.f32 %v3608_v9, %v381_v25  ;;  %v3663_v50 = vld [vmem:[%s4061_s1 + $0x10] ss:$0 sm:$0xff] }
0x1870   :  { %1622 = vrot.lane.b32.xlu0 %v1618_v56, %s2780_s21  ;;  %v1585_v47 = vadd.f32 %v1584_v17, %v1559_v59 }
0x1872   :  { %2642 = vtanh.f32 %v1585_v47 }
0x187f   :  { %v2643_v58 = vpop.eup %2642 }
0x1880   :  { %v1598_v39 = vmul.f32 0.5, %v2643_v58 }
0x1882   :  { %v1599_v55 = vadd.f32 0.5, %v1598_v39  ;;  %v3715_v39 = vld [vmem:[%s4061_s1 + $0xa] ss:$0 sm:$0xff] }
0x18ac   :  { %v1589_v12 = vpop.permute.xlu1 %1588 }
0x18ad   :  { %v1591_v19 = vmul.f32 %v2643_v58, %v1589_v12 }
0x18af   :  { %1593 = vrot.lane.b32.xlu1 %v1591_v19, %s2781_s4  ;;  %v3675_v19 = vld [vmem:[%s4061_s1 + $0x11] ss:$0 sm:$0xff] }
0x18b9   :  { %v376_v63 = vpop.permute.xlu1 %375 }
0x18ba   :  { %v378_v60 = vmul.f32 %v3602_v52, %v376_v63 }
0x18bc   :  { %v394_v51 = vadd.f32 %v383_v42, %v378_v60 }
0x18be   :  { %v386_v49 = vpop.permute.xlu1 %385 }
0x18bf   :  { %v388_v24 = vmul.f32 %v3614_v27, %v386_v49  ;;  %v3681_v49 = vld [vmem:[%s4061_s1 + $0x12] ss:$0 sm:$0xff] }
0x18c3   :  { %v391_v38 = vpop.permute.xlu1 %390 }
0x18c4   :  { %v393_v34 = vmul.f32 %v3620_v46, %v391_v38  ;;  %v3687_v38 = vld [vmem:[%s4061_s1 + $0x13] ss:$0 sm:$0xff] }
0x18c6   :  { %v395_v61 = vadd.f32 %v393_v34, %v388_v24 }
0x18c8   :  { %v396_v29 = vadd.f32 %v395_v61, %v394_v51 }
0x18ca   :  { %v397_v7 = vadd.f32 %v3626_v23, %v396_v29 }
0x18cc   :  { %v1619_v10 = vadd.f32 %v1618_v56, %v397_v7 }
0x18ce   :  { %2644 = vtanh.f32 %v1619_v10 }
0x18db   :  { %v2645_v31 = vpop.eup %2644 }
0x18dc   :  { %v1632_v5 = vmul.f32 0.5, %v2645_v31 }
0x18de   :  { %v1633_v53 = vadd.f32 0.5, %v1632_v5 }
0x18e2   :  { %v1623_v21 = vpop.permute.xlu0 %1622 }
0x18e3   :  { %v1625_v33 = vmul.f32 %v2645_v31, %v1623_v21 }
0x18e5   :  { %1627 = vrot.lane.b32.xlu0 %v1625_v33, %s2781_s4 }
0x1921   :  { %v1594_v26 = vpop.permute.xlu1 %1593 }
0x1922   :  { %v1596_v36 = vadd.f32 %v1594_v26, %v1585_v47  ;;  %v3669_v47 = vld [vmem:[%s4061_s1 + $0xf] ss:$0 sm:$0xff] }
0x1924   :  { %2646 = vtanh.f32 %v1596_v36 }
0x1931   :  { %v2647_v22 = vpop.eup %2646 }
0x1932   :  { %v1600_v17 = vsub.f32 %v3529_v28, %v2647_v22 }
0x1934   :  { %1602 = vrot.lane.b32.xlu1 %v1600_v17, %s2782_s5 }
0x1957   :  { %v1628_v30 = vpop.permute.xlu0 %1627 }
0x1958   :  { %v1630_v32 = vadd.f32 %v1628_v30, %v1619_v10  ;;  %v3703_v30 = vld [vmem:[%s4061_s1 + $0xd] ss:$0 sm:$0xff] }
0x195a   :  { %2648 = vtanh.f32 %v1630_v32 }
0x1967   :  { %v2649_v18 = vpop.eup %2648 }
0x1968   :  { %v1634_v16 = vsub.f32 %v3539_v20, %v2649_v18 }
0x196a   :  { %1636 = vrot.lane.b32.xlu0 %v1634_v16, %s2782_s5 }
0x19a6   :  { %v1603_v3 = vpop.permute.xlu1 %1602 }
0x19a7   :  { %v1605_v6 = vmul.f32 %v1603_v3, %v1599_v55  ;;  %v3721_v3 = vld [vmem:[%s4061_s1 + $0xb] ss:$0 sm:$0xff] }
0x19a9   :  { %1607 = vrot.lane.b32.xlu1 %v1605_v6, %s2785_s6 }
0x19dc   :  { %v1637_v45 = vpop.permute.xlu0 %1636 }
0x19dd   :  { %v1639_v28 = vmul.f32 %v1637_v45, %v1633_v53 }
0x19df   :  { %1641 = vrot.lane.b32.xlu0 %v1639_v28, %s2785_s6  ;;  %v3727_v28 = vld [vmem:[%s4061_s1 + $0xe] ss:$0 sm:$0xff] }
0x1a1b   :  { %v1608_v56 = vpop.permute.xlu1 %1607 }
0x1a1c   :  { %v3636_v48 = vadd.f32 %v2647_v22, %v1608_v56 }
0x1a1e   :  { %1677 = vperm.xlu0 %2495, %v3636_v48   ;;  %1672 = vperm.xlu1 %2494, %v3636_v48  }
0x1a22   :  { %2496 = vset.pattern.permute.xlu1 %v2786_v0  ;;  %2498 = vset.pattern.permute.xlu0 %v2783_v43 }
0x1a23   :  { %1682 = vperm.xlu1 %2496, %v3636_v48  }
0x1a27   :  { %2497 = vset.pattern.permute.xlu1 %v2787_v8 }
0x1a28   :  { %1687 = vperm.xlu1 %2497, %v3636_v48  }
0x1a2c   :  { %2499 = vset.pattern.permute.xlu1 %v2784_v44 }
0x1a51   :  { %v1642_v20 = vpop.permute.xlu0 %1641 }
0x1a52   :  { %v3646_v15 = vadd.f32 %v2649_v18, %v1642_v20  ;;  %v3709_v18 = vld [vmem:[%s4061_s1 + $0xc] ss:$0 sm:$0xff] }
0x1a54   :  { %1647 = vperm.xlu0 %2498, %v3646_v15   ;;  %1652 = vperm.xlu1 %2499, %v3646_v15  }
0x1a58   :  { %2501 = vset.pattern.permute.xlu0 %v2787_v8  ;;  %2500 = vset.pattern.permute.xlu1 %v2786_v0 }
0x1a59   :  { %1662 = vperm.xlu0 %2501, %v3646_v15   ;;  %1657 = vperm.xlu1 %2500, %v3646_v15  }
0x1a5d   :  { %2502 = vset.pattern.permute.xlu1 %v2777_v2  ;;  %2503 = vset.pattern.permute.xlu0 %v2779_v14 }
0x1a5e   :  { %406 = vperm.xlu0 %2503, %v398_v11  }
0x1a62   :  { %2507 = vset.pattern.permute.xlu0 %v2784_v44 }
0x1a99   :  { %v1673_v37 = vpop.permute.xlu1 %1672  ;;  %v1678_v41 = vpop.permute.xlu0 %1677 }
0x1a9a   :  { %v1680_v59 = vmul.f32 %v3663_v50, %v1678_v41  ;;  %v1675_v58 = vmul.f32 %v3669_v47, %v1673_v37 }
0x1a9c   :  { %v1691_v60 = vadd.f32 %v1680_v59, %v1675_v58 }
0x1a9e   :  { %v1683_v40 = vpop.permute.xlu1 %1682 }
0x1a9f   :  { %v1685_v63 = vmul.f32 %v3675_v19, %v1683_v40 }
0x1aa3   :  { %v1688_v12 = vpop.permute.xlu1 %1687 }
0x1aa4   :  { %v1690_v25 = vmul.f32 %v3681_v49, %v1688_v12 }
0x1aa6   :  { %v1692_v42 = vadd.f32 %v1690_v25, %v1685_v63 }
0x1aa8   :  { %v1693_v24 = vadd.f32 %v1692_v42, %v1691_v60 }
0x1aaa   :  { %v1694_v34 = vadd.f32 %v3687_v38, %v1693_v24 }
0x1aac   :  { %1698 = vrot.lane.b32.xlu1 %v1694_v34, %s2780_s21 }
0x1ab0   :  { %401 = vperm.xlu1 %2502, %v398_v11  }
0x1ab4   :  { %2504 = vset.pattern.permute.xlu1 %v2776_v1 }
0x1ab5   :  { %411 = vperm.xlu1 %2504, %v398_v11  }
0x1ab9   :  { %2505 = vset.pattern.permute.xlu1 %v2778_v13 }
0x1aba   :  { %416 = vperm.xlu1 %2505, %v398_v11  }
0x1abe   :  { %2506 = vset.pattern.permute.xlu1 %v2783_v43 }
0x1acf   :  { %v1648_v51 = vpop.permute.xlu0 %1647  ;;  %v1653_v61 = vpop.permute.xlu1 %1652 }
0x1ad0   :  { %v1721_v29 = vmul.f32 %v3565_v35, %v1648_v51  ;;  %v1722_v7 = vmul.f32 %v3571_v57, %v1653_v61  ;;  %v1650_v55 = vmul.f32 %v3715_v39, %v1648_v51  ;;  %v1655_v6 = vmul.f32 %v3721_v3, %v1653_v61 }
0x1ad2   :  { %v1725_v26 = vadd.f32 %v1722_v7, %v1721_v29  ;;  %v1666_v53 = vadd.f32 %v1655_v6, %v1650_v55 }
0x1ad4   :  { %v1663_v10 = vpop.permute.xlu0 %1662  ;;  %v1658_v31 = vpop.permute.xlu1 %1657 }
0x1ad5   :  { %v1724_v21 = vmul.f32 %v3577_v62, %v1663_v10  ;;  %v1723_v33 = vmul.f32 %v3583_v4, %v1658_v31  ;;  %v1665_v32 = vmul.f32 %v3703_v30, %v1663_v10  ;;  %v1660_v16 = vmul.f32 %v3709_v18, %v1658_v31 }
0x1ad7   :  { %v1726_v36 = vadd.f32 %v1724_v21, %v1723_v33  ;;  %v1667_v5 = vadd.f32 %v1665_v32, %v1660_v16 }
0x1ad9   :  { %v1727_v22 = vadd.f32 %v1726_v36, %v1725_v26  ;;  %v1668_v45 = vadd.f32 %v1667_v5, %v1666_v53  ;;  %v407_v59 = vpop.permute.xlu0 %406 }
0x1ada   :  { %v409_v63 = vmul.f32 %v3608_v9, %v407_v59 }
0x1adb   :  { %v1728_v17 = vadd.f32 %v3589_v54, %v1727_v22  ;;  %v1669_v56 = vadd.f32 %v3727_v28, %v1668_v45 }
0x1add   :  { %1732 = vrot.lane.b32.xlu0 %v1728_v17, %s2780_s21  ;;  %v1695_v20 = vadd.f32 %v1694_v34, %v1669_v56 }
0x1adf   :  { %2650 = vtanh.f32 %v1695_v20 }
0x1aec   :  { %v2651_v11 = vpop.eup %2650 }
0x1aed   :  { %v1708_v55 = vmul.f32 0.5, %v2651_v11 }
0x1aef   :  { %v1709_v6 = vadd.f32 0.5, %v1708_v55 }
0x1b1e   :  { %v1699_v37 = vpop.permute.xlu1 %1698 }
0x1b1f   :  { %v1701_v40 = vmul.f32 %v2651_v11, %v1699_v37 }
0x1b21   :  { %1703 = vrot.lane.b32.xlu1 %v1701_v40, %s2781_s4 }
0x1b2b   :  { %v402_v41 = vpop.permute.xlu1 %401 }
0x1b2c   :  { %v404_v12 = vmul.f32 %v3602_v52, %v402_v41  ;;  %v424_v41 = vld [vmem:[%s4060_s0 + $0x60] sm:$0xff] }
0x1b2e   :  { %v420_v42 = vadd.f32 %v409_v63, %v404_v12 }
0x1b30   :  { %v412_v58 = vpop.permute.xlu1 %411 }
0x1b31   :  { %v414_v25 = vmul.f32 %v3614_v27, %v412_v58 }
0x1b35   :  { %v417_v60 = vpop.permute.xlu1 %416 }
0x1b36   :  { %v419_v24 = vmul.f32 %v3620_v46, %v417_v60 }
0x1b38   :  { %v421_v34 = vadd.f32 %v419_v24, %v414_v25 }
0x1b3a   :  { %v422_v51 = vadd.f32 %v421_v34, %v420_v42 }
0x1b3c   :  { %v423_v61 = vadd.f32 %v3626_v23, %v422_v51 }
0x1b3e   :  { %v1729_v29 = vadd.f32 %v1728_v17, %v423_v61 }
0x1b40   :  { %2652 = vtanh.f32 %v1729_v29 }
0x1b4d   :  { %v2653_v7 = vpop.eup %2652 }
0x1b4e   :  { %v1742_v45 = vmul.f32 0.5, %v2653_v7 }
0x1b4f   :  { %v1733_v10 = vpop.permute.xlu0 %1732 }
0x1b50   :  { %v1735_v31 = vmul.f32 %v2653_v7, %v1733_v10  ;;  %v1743_v56 = vadd.f32 0.5, %v1742_v45 }
0x1b52   :  { %1737 = vrot.lane.b32.xlu0 %v1735_v31, %s2781_s4 }
0x1b93   :  { %v1704_v21 = vpop.permute.xlu1 %1703 }
0x1b94   :  { %v1706_v33 = vadd.f32 %v1704_v21, %v1695_v20 }
0x1b96   :  { %2654 = vtanh.f32 %v1706_v33 }
0x1ba3   :  { %v2655_v26 = vpop.eup %2654 }
0x1ba4   :  { %v1710_v36 = vsub.f32 %v3636_v48, %v2655_v26 }
0x1ba6   :  { %1712 = vrot.lane.b32.xlu1 %v1710_v36, %s2782_s5 }
0x1bc4   :  { %v1738_v22 = vpop.permute.xlu0 %1737 }
0x1bc5   :  { %v1740_v32 = vadd.f32 %v1738_v22, %v1729_v29 }
0x1bc7   :  { %2656 = vtanh.f32 %v1740_v32 }
0x1bd4   :  { %v2657_v16 = vpop.eup %2656 }
0x1bd5   :  { %v1744_v17 = vsub.f32 %v3646_v15, %v2657_v16 }
0x1bd7   :  { %1746 = vrot.lane.b32.xlu0 %v1744_v17, %s2782_s5 }
0x1c18   :  { %v1713_v5 = vpop.permute.xlu1 %1712 }
0x1c19   :  { %v1715_v53 = vmul.f32 %v1713_v5, %v1709_v6 }
0x1c1b   :  { %1717 = vrot.lane.b32.xlu1 %v1715_v53, %s2785_s6 }
0x1c49   :  { %v1747_v20 = vpop.permute.xlu0 %1746 }
0x1c4a   :  { %v1749_v48 = vmul.f32 %v1747_v20, %v1743_v56 }
0x1c4c   :  { %1751 = vrot.lane.b32.xlu0 %v1749_v48, %s2785_s6 }
0x1c8d   :  { %v1718_v37 = vpop.permute.xlu1 %1717 }
0x1c8e   :  { %v3743_v40 = vadd.f32 %v2655_v26, %v1718_v37 }
0x1c90   :  { %1787 = vperm.xlu0 %2507, %v3743_v40   ;;  %1782 = vperm.xlu1 %2506, %v3743_v40  }
0x1c94   :  { %2508 = vset.pattern.permute.xlu1 %v2786_v0  ;;  %2510 = vset.pattern.permute.xlu0 %v2783_v43 }
0x1c95   :  { %1792 = vperm.xlu1 %2508, %v3743_v40  }
0x1c99   :  { %2509 = vset.pattern.permute.xlu1 %v2787_v8 }
0x1c9a   :  { %1797 = vperm.xlu1 %2509, %v3743_v40  }
0x1c9e   :  { %2511 = vset.pattern.permute.xlu1 %v2784_v44 }
0x1cbe   :  { %v1752_v15 = vpop.permute.xlu0 %1751 }
0x1cbf   :  { %v3753_v11 = vadd.f32 %v2657_v16, %v1752_v15 }
0x1cc1   :  { %1757 = vperm.xlu0 %2510, %v3753_v11   ;;  %1762 = vperm.xlu1 %2511, %v3753_v11  }
0x1cc5   :  { %2513 = vset.pattern.permute.xlu0 %v2787_v8  ;;  %2512 = vset.pattern.permute.xlu1 %v2786_v0 }
0x1cc6   :  { %1772 = vperm.xlu0 %2513, %v3753_v11   ;;  %1767 = vperm.xlu1 %2512, %v3753_v11  }
0x1cca   :  { %2514 = vset.pattern.permute.xlu1 %v2777_v2  ;;  %2515 = vset.pattern.permute.xlu0 %v2779_v14 }
0x1ccb   :  { %432 = vperm.xlu0 %2515, %v424_v41  }
0x1ccf   :  { %2519 = vset.pattern.permute.xlu0 %v2784_v44 }
0x1d0b   :  { %v1783_v59 = vpop.permute.xlu1 %1782  ;;  %v1788_v12 = vpop.permute.xlu0 %1787 }
0x1d0c   :  { %v1790_v63 = vmul.f32 %v3663_v50, %v1788_v12  ;;  %v1785_v25 = vmul.f32 %v3669_v47, %v1783_v59 }
0x1d0e   :  { %v1801_v34 = vadd.f32 %v1790_v63, %v1785_v25 }
0x1d10   :  { %v1793_v58 = vpop.permute.xlu1 %1792 }
0x1d11   :  { %v1795_v42 = vmul.f32 %v3675_v19, %v1793_v58 }
0x1d15   :  { %v1798_v60 = vpop.permute.xlu1 %1797 }
0x1d16   :  { %v1800_v24 = vmul.f32 %v3681_v49, %v1798_v60 }
0x1d18   :  { %v1802_v51 = vadd.f32 %v1800_v24, %v1795_v42 }
0x1d1a   :  { %v1803_v61 = vadd.f32 %v1802_v51, %v1801_v34 }
0x1d1c   :  { %v1804_v29 = vadd.f32 %v3687_v38, %v1803_v61 }
0x1d1e   :  { %1808 = vrot.lane.b32.xlu1 %v1804_v29, %s2780_s21 }
0x1d22   :  { %427 = vperm.xlu1 %2514, %v424_v41  }
0x1d26   :  { %2516 = vset.pattern.permute.xlu1 %v2776_v1 }
0x1d27   :  { %437 = vperm.xlu1 %2516, %v424_v41  }
0x1d2b   :  { %2517 = vset.pattern.permute.xlu1 %v2778_v13 }
0x1d2c   :  { %442 = vperm.xlu1 %2517, %v424_v41  }
0x1d30   :  { %2518 = vset.pattern.permute.xlu1 %v2783_v43 }
0x1d3c   :  { %v1758_v7 = vpop.permute.xlu0 %1757  ;;  %v1763_v10 = vpop.permute.xlu1 %1762 }
0x1d3d   :  { %v1831_v31 = vmul.f32 %v3565_v35, %v1758_v7  ;;  %v1832_v21 = vmul.f32 %v3571_v57, %v1763_v10  ;;  %v1760_v53 = vmul.f32 %v3715_v39, %v1758_v7  ;;  %v1765_v45 = vmul.f32 %v3721_v3, %v1763_v10 }
0x1d3f   :  { %v1835_v32 = vadd.f32 %v1832_v21, %v1831_v31  ;;  %v1776_v20 = vadd.f32 %v1765_v45, %v1760_v53 }
0x1d41   :  { %v1773_v33 = vpop.permute.xlu0 %1772  ;;  %v1768_v26 = vpop.permute.xlu1 %1767 }
0x1d42   :  { %v1834_v36 = vmul.f32 %v3577_v62, %v1773_v33  ;;  %v1833_v22 = vmul.f32 %v3583_v4, %v1768_v26  ;;  %v1775_v6 = vmul.f32 %v3703_v30, %v1773_v33  ;;  %v1770_v5 = vmul.f32 %v3709_v18, %v1768_v26 }
0x1d44   :  { %v1836_v16 = vadd.f32 %v1834_v36, %v1833_v22  ;;  %v1777_v56 = vadd.f32 %v1775_v6, %v1770_v5 }
0x1d46   :  { %v1837_v17 = vadd.f32 %v1836_v16, %v1835_v32  ;;  %v1778_v48 = vadd.f32 %v1777_v56, %v1776_v20  ;;  %v433_v63 = vpop.permute.xlu0 %432 }
0x1d47   :  { %v435_v42 = vmul.f32 %v3608_v9, %v433_v63 }
0x1d48   :  { %v1838_v55 = vadd.f32 %v3589_v54, %v1837_v17  ;;  %v1779_v37 = vadd.f32 %v3727_v28, %v1778_v48 }
0x1d4a   :  { %1842 = vrot.lane.b32.xlu0 %v1838_v55, %s2780_s21  ;;  %v1805_v15 = vadd.f32 %v1804_v29, %v1779_v37 }
0x1d4c   :  { %2658 = vtanh.f32 %v1805_v15 }
0x1d59   :  { %v2659_v41 = vpop.eup %2658 }
0x1d5a   :  { %v1818_v53 = vmul.f32 0.5, %v2659_v41 }
0x1d5c   :  { %v1819_v45 = vadd.f32 0.5, %v1818_v53 }
0x1d90   :  { %v1809_v59 = vpop.permute.xlu1 %1808 }
0x1d91   :  { %v1811_v58 = vmul.f32 %v2659_v41, %v1809_v59 }
0x1d93   :  { %1813 = vrot.lane.b32.xlu1 %v1811_v58, %s2781_s4 }
0x1d9d   :  { %v428_v12 = vpop.permute.xlu1 %427 }
0x1d9e   :  { %v430_v60 = vmul.f32 %v3602_v52, %v428_v12  ;;  %v450_v12 = vld [vmem:[%s4060_s0 + $0x68] sm:$0xff] }
0x1da0   :  { %v446_v51 = vadd.f32 %v435_v42, %v430_v60 }
0x1da2   :  { %v438_v25 = vpop.permute.xlu1 %437 }
0x1da3   :  { %v440_v24 = vmul.f32 %v3614_v27, %v438_v25 }
0x1da7   :  { %v443_v34 = vpop.permute.xlu1 %442 }
0x1da8   :  { %v445_v61 = vmul.f32 %v3620_v46, %v443_v34 }
0x1daa   :  { %v447_v29 = vadd.f32 %v445_v61, %v440_v24 }
0x1dac   :  { %v448_v7 = vadd.f32 %v447_v29, %v446_v51 }
0x1dae   :  { %v449_v10 = vadd.f32 %v3626_v23, %v448_v7 }
0x1db0   :  { %v1839_v31 = vadd.f32 %v1838_v55, %v449_v10 }
0x1db2   :  { %2660 = vtanh.f32 %v1839_v31 }
0x1dbc   :  { %v1843_v33 = vpop.permute.xlu0 %1842 }
0x1dbf   :  { %v2661_v21 = vpop.eup %2660 }
0x1dc0   :  { %v1845_v26 = vmul.f32 %v2661_v21, %v1843_v33  ;;  %v1852_v48 = vmul.f32 0.5, %v2661_v21 }
0x1dc2   :  { %1847 = vrot.lane.b32.xlu0 %v1845_v26, %s2781_s4  ;;  %v1853_v37 = vadd.f32 0.5, %v1852_v48 }
0x1e05   :  { %v1814_v36 = vpop.permute.xlu1 %1813 }
0x1e06   :  { %v1816_v22 = vadd.f32 %v1814_v36, %v1805_v15 }
0x1e08   :  { %2662 = vtanh.f32 %v1816_v22 }
0x1e15   :  { %v2663_v32 = vpop.eup %2662 }
0x1e16   :  { %v1820_v16 = vsub.f32 %v3743_v40, %v2663_v32 }
0x1e18   :  { %1822 = vrot.lane.b32.xlu1 %v1820_v16, %s2782_s5 }
0x1e34   :  { %v1848_v17 = vpop.permute.xlu0 %1847 }
0x1e35   :  { %v1850_v6 = vadd.f32 %v1848_v17, %v1839_v31 }
0x1e37   :  { %2664 = vtanh.f32 %v1850_v6 }
0x1e44   :  { %v2665_v5 = vpop.eup %2664 }
0x1e45   :  { %v1854_v55 = vsub.f32 %v3753_v11, %v2665_v5 }
0x1e47   :  { %1856 = vrot.lane.b32.xlu0 %v1854_v55, %s2782_s5 }
0x1e8a   :  { %v1823_v56 = vpop.permute.xlu1 %1822 }
0x1e8b   :  { %v1825_v20 = vmul.f32 %v1823_v56, %v1819_v45 }
0x1e8d   :  { %1827 = vrot.lane.b32.xlu1 %v1825_v20, %s2785_s6 }
0x1eb9   :  { %v1857_v15 = vpop.permute.xlu0 %1856 }
0x1eba   :  { %v1859_v40 = vmul.f32 %v1857_v15, %v1853_v37 }
0x1ebc   :  { %1861 = vrot.lane.b32.xlu0 %v1859_v40, %s2785_s6 }
0x1eff   :  { %v1828_v59 = vpop.permute.xlu1 %1827 }
0x1f00   :  { %v3800_v58 = vadd.f32 %v2663_v32, %v1828_v59 }
0x1f02   :  { %1897 = vperm.xlu0 %2519, %v3800_v58   ;;  %1892 = vperm.xlu1 %2518, %v3800_v58  }
0x1f06   :  { %2520 = vset.pattern.permute.xlu1 %v2786_v0  ;;  %2522 = vset.pattern.permute.xlu0 %v2783_v43 }
0x1f07   :  { %1902 = vperm.xlu1 %2520, %v3800_v58  }
0x1f0b   :  { %2521 = vset.pattern.permute.xlu1 %v2787_v8 }
0x1f0c   :  { %1907 = vperm.xlu1 %2521, %v3800_v58  }
0x1f10   :  { %2523 = vset.pattern.permute.xlu1 %v2784_v44 }
0x1f2e   :  { %v1862_v11 = vpop.permute.xlu0 %1861 }
0x1f2f   :  { %v3810_v41 = vadd.f32 %v2665_v5, %v1862_v11 }
0x1f31   :  { %1867 = vperm.xlu0 %2522, %v3810_v41   ;;  %1872 = vperm.xlu1 %2523, %v3810_v41  }
0x1f35   :  { %2525 = vset.pattern.permute.xlu0 %v2787_v8  ;;  %2524 = vset.pattern.permute.xlu1 %v2786_v0 }
0x1f36   :  { %1882 = vperm.xlu0 %2525, %v3810_v41   ;;  %1877 = vperm.xlu1 %2524, %v3810_v41  }
0x1f3a   :  { %2526 = vset.pattern.permute.xlu1 %v2777_v2  ;;  %2527 = vset.pattern.permute.xlu0 %v2779_v14 }
0x1f3b   :  { %458 = vperm.xlu0 %2527, %v450_v12  }
0x1f3f   :  { %2531 = vset.pattern.permute.xlu0 %v2784_v44 }
0x1f7d   :  { %v1893_v63 = vpop.permute.xlu1 %1892  ;;  %v1898_v60 = vpop.permute.xlu0 %1897 }
0x1f7e   :  { %v1900_v42 = vmul.f32 %v3663_v50, %v1898_v60  ;;  %v1895_v24 = vmul.f32 %v3669_v47, %v1893_v63 }
0x1f80   :  { %v1911_v29 = vadd.f32 %v1900_v42, %v1895_v24 }
0x1f82   :  { %v1903_v25 = vpop.permute.xlu1 %1902 }
0x1f83   :  { %v1905_v51 = vmul.f32 %v3675_v19, %v1903_v25 }
0x1f87   :  { %v1908_v34 = vpop.permute.xlu1 %1907 }
0x1f88   :  { %v1910_v61 = vmul.f32 %v3681_v49, %v1908_v34 }
0x1f8a   :  { %v1912_v7 = vadd.f32 %v1910_v61, %v1905_v51 }
0x1f8c   :  { %v1913_v10 = vadd.f32 %v1912_v7, %v1911_v29 }
0x1f8e   :  { %v1914_v31 = vadd.f32 %v3687_v38, %v1913_v10 }
0x1f90   :  { %1918 = vrot.lane.b32.xlu1 %v1914_v31, %s2780_s21 }
0x1f94   :  { %453 = vperm.xlu1 %2526, %v450_v12  }
0x1f98   :  { %2528 = vset.pattern.permute.xlu1 %v2776_v1 }
0x1f99   :  { %463 = vperm.xlu1 %2528, %v450_v12  }
0x1f9d   :  { %2529 = vset.pattern.permute.xlu1 %v2778_v13 }
0x1f9e   :  { %468 = vperm.xlu1 %2529, %v450_v12  }
0x1fa2   :  { %2530 = vset.pattern.permute.xlu1 %v2783_v43 }
0x1fac   :  { %v1868_v21 = vpop.permute.xlu0 %1867  ;;  %v1873_v33 = vpop.permute.xlu1 %1872 }
0x1fad   :  { %v1941_v26 = vmul.f32 %v3565_v35, %v1868_v21  ;;  %v1942_v36 = vmul.f32 %v3571_v57, %v1873_v33  ;;  %v1870_v20 = vmul.f32 %v3715_v39, %v1868_v21  ;;  %v1875_v48 = vmul.f32 %v3721_v3, %v1873_v33 }
0x1faf   :  { %v1945_v6 = vadd.f32 %v1942_v36, %v1941_v26  ;;  %v1886_v15 = vadd.f32 %v1875_v48, %v1870_v20 }
0x1fb1   :  { %v1883_v22 = vpop.permute.xlu0 %1882  ;;  %v1878_v32 = vpop.permute.xlu1 %1877 }
0x1fb2   :  { %v1944_v16 = vmul.f32 %v3577_v62, %v1883_v22  ;;  %v1943_v17 = vmul.f32 %v3583_v4, %v1878_v32  ;;  %v1885_v45 = vmul.f32 %v3703_v30, %v1883_v22  ;;  %v1880_v56 = vmul.f32 %v3709_v18, %v1878_v32 }
0x1fb4   :  { %v1946_v5 = vadd.f32 %v1944_v16, %v1943_v17  ;;  %v1887_v37 = vadd.f32 %v1885_v45, %v1880_v56 }
0x1fb6   :  { %v1947_v55 = vadd.f32 %v1946_v5, %v1945_v6  ;;  %v1888_v40 = vadd.f32 %v1887_v37, %v1886_v15  ;;  %v459_v42 = vpop.permute.xlu0 %458 }
0x1fb7   :  { %v461_v51 = vmul.f32 %v3608_v9, %v459_v42 }
0x1fb8   :  { %v1948_v53 = vadd.f32 %v3589_v54, %v1947_v55  ;;  %v1889_v59 = vadd.f32 %v3727_v28, %v1888_v40 }
0x1fba   :  { %1952 = vrot.lane.b32.xlu0 %v1948_v53, %s2780_s21  ;;  %v1915_v11 = vadd.f32 %v1914_v31, %v1889_v59 }
0x1fbc   :  { %2666 = vtanh.f32 %v1915_v11 }
0x1fc9   :  { %v2667_v12 = vpop.eup %2666 }
0x1fca   :  { %v1928_v20 = vmul.f32 0.5, %v2667_v12 }
0x1fcc   :  { %v1929_v48 = vadd.f32 0.5, %v1928_v20 }
0x2002   :  { %v1919_v63 = vpop.permute.xlu1 %1918 }
0x2003   :  { %v1921_v25 = vmul.f32 %v2667_v12, %v1919_v63 }
0x2005   :  { %1923 = vrot.lane.b32.xlu1 %v1921_v25, %s2781_s4 }
0x200f   :  { %v454_v60 = vpop.permute.xlu1 %453 }
0x2010   :  { %v456_v34 = vmul.f32 %v3602_v52, %v454_v60  ;;  %v476_v60 = vld [vmem:[%s4060_s0 + $0x70] sm:$0xff] }
0x2012   :  { %v472_v7 = vadd.f32 %v461_v51, %v456_v34 }
0x2014   :  { %v464_v24 = vpop.permute.xlu1 %463 }
0x2015   :  { %v466_v61 = vmul.f32 %v3614_v27, %v464_v24 }
0x2019   :  { %v469_v29 = vpop.permute.xlu1 %468 }
0x201a   :  { %v471_v10 = vmul.f32 %v3620_v46, %v469_v29 }
0x201c   :  { %v473_v31 = vadd.f32 %v471_v10, %v466_v61 }
0x201e   :  { %v474_v21 = vadd.f32 %v473_v31, %v472_v7 }
0x2020   :  { %v475_v33 = vadd.f32 %v3626_v23, %v474_v21 }
0x2022   :  { %v1949_v26 = vadd.f32 %v1948_v53, %v475_v33 }
0x2024   :  { %2668 = vtanh.f32 %v1949_v26 }
0x202c   :  { %v1953_v22 = vpop.permute.xlu0 %1952 }
0x2031   :  { %v2669_v36 = vpop.eup %2668 }
0x2032   :  { %v1955_v32 = vmul.f32 %v2669_v36, %v1953_v22  ;;  %v1962_v40 = vmul.f32 0.5, %v2669_v36 }
0x2034   :  { %1957 = vrot.lane.b32.xlu0 %v1955_v32, %s2781_s4  ;;  %v1963_v59 = vadd.f32 0.5, %v1962_v40 }
0x2077   :  { %v1924_v16 = vpop.permute.xlu1 %1923 }
0x2078   :  { %v1926_v17 = vadd.f32 %v1924_v16, %v1915_v11 }
0x207a   :  { %2670 = vtanh.f32 %v1926_v17 }
0x2087   :  { %v2671_v6 = vpop.eup %2670 }
0x2088   :  { %v1930_v5 = vsub.f32 %v3800_v58, %v2671_v6 }
0x208a   :  { %1932 = vrot.lane.b32.xlu1 %v1930_v5, %s2782_s5 }
0x20a6   :  { %v1958_v55 = vpop.permute.xlu0 %1957 }
0x20a7   :  { %v1960_v45 = vadd.f32 %v1958_v55, %v1949_v26 }
0x20a9   :  { %2672 = vtanh.f32 %v1960_v45 }
0x20b6   :  { %v2673_v56 = vpop.eup %2672 }
0x20b7   :  { %v1964_v53 = vsub.f32 %v3810_v41, %v2673_v56 }
0x20b9   :  { %1966 = vrot.lane.b32.xlu0 %v1964_v53, %s2782_s5 }
0x20fc   :  { %v1933_v37 = vpop.permute.xlu1 %1932 }
0x20fd   :  { %v1935_v15 = vmul.f32 %v1933_v37, %v1929_v48 }
0x20ff   :  { %1937 = vrot.lane.b32.xlu1 %v1935_v15, %s2785_s6 }
0x212b   :  { %v1967_v11 = vpop.permute.xlu0 %1966 }
0x212c   :  { %v1969_v58 = vmul.f32 %v1967_v11, %v1963_v59 }
0x212e   :  { %1971 = vrot.lane.b32.xlu0 %v1969_v58, %s2785_s6 }
0x2171   :  { %v1938_v63 = vpop.permute.xlu1 %1937 }
0x2172   :  { %v3857_v25 = vadd.f32 %v2671_v6, %v1938_v63 }
0x2174   :  { %2007 = vperm.xlu0 %2531, %v3857_v25   ;;  %2002 = vperm.xlu1 %2530, %v3857_v25  }
0x2178   :  { %2532 = vset.pattern.permute.xlu1 %v2786_v0  ;;  %2534 = vset.pattern.permute.xlu0 %v2783_v43 }
0x2179   :  { %2012 = vperm.xlu1 %2532, %v3857_v25  }
0x217d   :  { %2533 = vset.pattern.permute.xlu1 %v2787_v8 }
0x217e   :  { %2017 = vperm.xlu1 %2533, %v3857_v25  }
0x2182   :  { %2535 = vset.pattern.permute.xlu1 %v2784_v44 }
0x21a0   :  { %v1972_v41 = vpop.permute.xlu0 %1971 }
0x21a1   :  { %v3867_v12 = vadd.f32 %v2673_v56, %v1972_v41 }
0x21a3   :  { %1977 = vperm.xlu0 %2534, %v3867_v12   ;;  %1982 = vperm.xlu1 %2535, %v3867_v12  }
0x21a7   :  { %2537 = vset.pattern.permute.xlu0 %v2787_v8  ;;  %2536 = vset.pattern.permute.xlu1 %v2786_v0 }
0x21a8   :  { %1992 = vperm.xlu0 %2537, %v3867_v12   ;;  %1987 = vperm.xlu1 %2536, %v3867_v12  }
0x21ac   :  { %2538 = vset.pattern.permute.xlu1 %v2777_v2  ;;  %2539 = vset.pattern.permute.xlu0 %v2779_v14 }
0x21ad   :  { %484 = vperm.xlu0 %2539, %v476_v60  }
0x21b1   :  { %2543 = vset.pattern.permute.xlu0 %v2784_v44 }
0x21ef   :  { %v2003_v42 = vpop.permute.xlu1 %2002  ;;  %v2008_v34 = vpop.permute.xlu0 %2007 }
0x21f0   :  { %v2010_v51 = vmul.f32 %v3663_v50, %v2008_v34  ;;  %v2005_v61 = vmul.f32 %v3669_v47, %v2003_v42 }
0x21f2   :  { %v2021_v31 = vadd.f32 %v2010_v51, %v2005_v61 }
0x21f4   :  { %v2013_v24 = vpop.permute.xlu1 %2012 }
0x21f5   :  { %v2015_v7 = vmul.f32 %v3675_v19, %v2013_v24 }
0x21f9   :  { %v2018_v29 = vpop.permute.xlu1 %2017 }
0x21fa   :  { %v2020_v10 = vmul.f32 %v3681_v49, %v2018_v29 }
0x21fc   :  { %v2022_v21 = vadd.f32 %v2020_v10, %v2015_v7 }
0x21fe   :  { %v2023_v33 = vadd.f32 %v2022_v21, %v2021_v31 }
0x2200   :  { %v2024_v26 = vadd.f32 %v3687_v38, %v2023_v33 }
0x2202   :  { %2028 = vrot.lane.b32.xlu1 %v2024_v26, %s2780_s21 }
0x2206   :  { %479 = vperm.xlu1 %2538, %v476_v60  }
0x220a   :  { %2540 = vset.pattern.permute.xlu1 %v2776_v1 }
0x220b   :  { %489 = vperm.xlu1 %2540, %v476_v60  }
0x220f   :  { %2541 = vset.pattern.permute.xlu1 %v2778_v13 }
0x2210   :  { %494 = vperm.xlu1 %2541, %v476_v60  }
0x2214   :  { %2542 = vset.pattern.permute.xlu1 %v2783_v43 }
0x221e   :  { %v1978_v36 = vpop.permute.xlu0 %1977  ;;  %v1983_v22 = vpop.permute.xlu1 %1982 }
0x221f   :  { %v2051_v32 = vmul.f32 %v3565_v35, %v1978_v36  ;;  %v2052_v16 = vmul.f32 %v3571_v57, %v1983_v22  ;;  %v1980_v35 = vmul.f32 %v3715_v39, %v1978_v36  ;;  %v1985_v57 = vmul.f32 %v3721_v3, %v1983_v22 }
0x2221   :  { %v2055_v45 = vadd.f32 %v2052_v16, %v2051_v32  ;;  %v1996_v40 = vadd.f32 %v1985_v57, %v1980_v35  ;;  %v502_v35 = vld [vmem:[%s4060_s0 + $0x78] sm:$0xff] }
0x2223   :  { %v1993_v17 = vpop.permute.xlu0 %1992  ;;  %v1988_v6 = vpop.permute.xlu1 %1987 }
0x2224   :  { %v2054_v5 = vmul.f32 %v3577_v62, %v1993_v17  ;;  %v2053_v55 = vmul.f32 %v3583_v4, %v1988_v6  ;;  %v1995_v48 = vmul.f32 %v3703_v30, %v1993_v17  ;;  %v1990_v37 = vmul.f32 %v3709_v18, %v1988_v6 }
0x2226   :  { %v2056_v56 = vadd.f32 %v2054_v5, %v2053_v55  ;;  %v1997_v15 = vadd.f32 %v1995_v48, %v1990_v37 }
0x2228   :  { %v2057_v53 = vadd.f32 %v2056_v56, %v2055_v45  ;;  %v1998_v62 = vadd.f32 %v1997_v15, %v1996_v40  ;;  %v485_v41 = vpop.permute.xlu0 %484 }
0x2229   :  { %v487_v24 = vmul.f32 %v3608_v9, %v485_v41 }
0x222a   :  { %v2058_v20 = vadd.f32 %v3589_v54, %v2057_v53  ;;  %v1999_v4 = vadd.f32 %v3727_v28, %v1998_v62 }
0x222c   :  { %2062 = vrot.lane.b32.xlu0 %v2058_v20, %s2780_s21  ;;  %v2025_v59 = vadd.f32 %v2024_v26, %v1999_v4 }
0x222e   :  { %2674 = vtanh.f32 %v2025_v59 }
0x223b   :  { %v2675_v11 = vpop.eup %2674 }
0x223c   :  { %v2038_v17 = vmul.f32 0.5, %v2675_v11 }
0x223e   :  { %v2039_v6 = vadd.f32 0.5, %v2038_v17 }
0x2274   :  { %v2029_v58 = vpop.permute.xlu1 %2028 }
0x2275   :  { %v2031_v54 = vmul.f32 %v2675_v11, %v2029_v58 }
0x2277   :  { %2033 = vrot.lane.b32.xlu1 %v2031_v54, %s2781_s4 }
0x2281   :  { %v480_v63 = vpop.permute.xlu1 %479 }
0x2282   :  { %v482_v42 = vmul.f32 %v3602_v52, %v480_v63 }
0x2284   :  { %v498_v61 = vadd.f32 %v487_v24, %v482_v42  ;;  %v2737_v24 = vld [vmem:[%s4061_s1 + $0x7] ss:$0 sm:$0xff] }
0x2286   :  { %v490_v60 = vpop.permute.xlu1 %489 }
0x2287   :  { %v492_v34 = vmul.f32 %v3614_v27, %v490_v60 }
0x228b   :  { %v495_v51 = vpop.permute.xlu1 %494 }
0x228c   :  { %v497_v29 = vmul.f32 %v3620_v46, %v495_v51 }
0x228e   :  { %v499_v7 = vadd.f32 %v497_v29, %v492_v34 }
0x2290   :  { %v500_v10 = vadd.f32 %v499_v7, %v498_v61  ;;  %v2738_v7 = vld [vmem:[%s4061_s1 + $0x9] ss:$0 sm:$0xff] }
0x2292   :  { %v501_v31 = vadd.f32 %v3626_v23, %v500_v10 }
0x2294   :  { %v2059_v21 = vadd.f32 %v2058_v20, %v501_v31 }
0x2296   :  { %2676 = vtanh.f32 %v2059_v21 }
0x229e   :  { %v2063_v26 = vpop.permute.xlu0 %2062 }
0x22a3   :  { %v2677_v33 = vpop.eup %2676 }
0x22a4   :  { %v2065_v36 = vmul.f32 %v2677_v33, %v2063_v26  ;;  %v2072_v45 = vmul.f32 0.5, %v2677_v33 }
0x22a6   :  { %2067 = vrot.lane.b32.xlu0 %v2065_v36, %s2781_s4  ;;  %v2073_v56 = vadd.f32 0.5, %v2072_v45 }
0x22e9   :  { %v2034_v52 = vpop.permute.xlu1 %2033 }
0x22ea   :  { %v2036_v22 = vadd.f32 %v2034_v52, %v2025_v59 }
0x22ec   :  { %2678 = vtanh.f32 %v2036_v22 }
0x22f9   :  { %v2679_v9 = vpop.eup %2678 }
0x22fa   :  { %v2040_v27 = vsub.f32 %v3857_v25, %v2679_v9 }
0x22fc   :  { %2042 = vrot.lane.b32.xlu1 %v2040_v27, %s2782_s5 }
0x2318   :  { %v2068_v46 = vpop.permute.xlu0 %2067 }
0x2319   :  { %v2070_v32 = vadd.f32 %v2068_v46, %v2059_v21 }
0x231b   :  { %2680 = vtanh.f32 %v2070_v32 }
0x2328   :  { %v2681_v16 = vpop.eup %2680 }
0x2329   :  { %v2074_v23 = vsub.f32 %v3867_v12, %v2681_v16 }
0x232b   :  { %2076 = vrot.lane.b32.xlu0 %v2074_v23, %s2782_s5 }
0x236e   :  { %v2043_v5 = vpop.permute.xlu1 %2042 }
0x236f   :  { %v2045_v55 = vmul.f32 %v2043_v5, %v2039_v6  ;;  %v2741_v6 = vld [vmem:[%s4061_s1 + $0x2] ss:$0 sm:$0xff] }
0x2371   :  { %2047 = vrot.lane.b32.xlu1 %v2045_v55, %s2785_s6 }
0x239d   :  { %v2077_v53 = vpop.permute.xlu0 %2076 }
0x239e   :  { %v2079_v25 = vmul.f32 %v2077_v53, %v2073_v56  ;;  %v2742_v56 = vld [vmem:[%s4061_s1 + $0x3] ss:$0 sm:$0xff] }
0x23a0   :  { %2081 = vrot.lane.b32.xlu0 %v2079_v25, %s2785_s6 }
0x23e3   :  { %v2048_v20 = vpop.permute.xlu1 %2047 }
0x23e4   :  { %v3914_v48 = vadd.f32 %v2679_v9, %v2048_v20 }
0x23e6   :  { %2117 = vperm.xlu0 %2543, %v3914_v48   ;;  %2112 = vperm.xlu1 %2542, %v3914_v48  }
0x23ea   :  { %2544 = vset.pattern.permute.xlu1 %v2786_v0  ;;  %2546 = vset.pattern.permute.xlu0 %v2783_v43 }
0x23eb   :  { %2122 = vperm.xlu1 %2544, %v3914_v48  }
0x23ef   :  { %2545 = vset.pattern.permute.xlu1 %v2787_v8 }
0x23f0   :  { %2127 = vperm.xlu1 %2545, %v3914_v48  }
0x23f4   :  { %2547 = vset.pattern.permute.xlu1 %v2784_v44 }
0x2412   :  { %v2082_v12 = vpop.permute.xlu0 %2081 }
0x2413   :  { %v3924_v37 = vadd.f32 %v2681_v16, %v2082_v12  ;;  %v2743_v12 = vld [vmem:[%s4061_s1 + $0x4] ss:$0 sm:$0xff] }
0x2415   :  { %2087 = vperm.xlu0 %2546, %v3924_v37   ;;  %2092 = vperm.xlu1 %2547, %v3924_v37  }
0x2419   :  { %2549 = vset.pattern.permute.xlu0 %v2787_v8  ;;  %2548 = vset.pattern.permute.xlu1 %v2786_v0 }
0x241a   :  { %2102 = vperm.xlu0 %2549, %v3924_v37   ;;  %2097 = vperm.xlu1 %2548, %v3924_v37  }
0x241e   :  { %2550 = vset.pattern.permute.xlu1 %v2777_v2  ;;  %2551 = vset.pattern.permute.xlu0 %v2779_v14 }
0x241f   :  { %510 = vperm.xlu0 %2551, %v502_v35  }
0x2423   :  { %2555 = vset.pattern.permute.xlu0 %v2784_v44 }
0x2461   :  { %v2113_v57 = vpop.permute.xlu1 %2112  ;;  %v2118_v40 = vpop.permute.xlu0 %2117 }
0x2462   :  { %v2120_v62 = vmul.f32 %v3663_v50, %v2118_v40  ;;  %v2115_v4 = vmul.f32 %v3669_v47, %v2113_v57 }
0x2464   :  { %v2131_v58 = vadd.f32 %v2120_v62, %v2115_v4 }
0x2466   :  { %v2123_v15 = vpop.permute.xlu1 %2122 }
0x2467   :  { %v2125_v11 = vmul.f32 %v3675_v19, %v2123_v15  ;;  %v2734_v19 = vld [vmem:[%s4061_s1 + $0x5] ss:$0 sm:$0xff] }
0x246b   :  { %v2128_v59 = vpop.permute.xlu1 %2127 }
0x246c   :  { %v2130_v2 = vmul.f32 %v3681_v49, %v2128_v59 }
0x246e   :  { %v2132_v54 = vadd.f32 %v2130_v2, %v2125_v11 }
0x2470   :  { %v2133_v63 = vadd.f32 %v2132_v54, %v2131_v58 }
0x2472   :  { %v2134_v14 = vadd.f32 %v3687_v38, %v2133_v63  ;;  %v2735_v38 = vld [vmem:[%s4061_s1 + $0x6] ss:$0 sm:$0xff] }
0x2474   :  { %2138 = vrot.lane.b32.xlu1 %v2134_v14, %s2780_s21 }
0x2478   :  { %505 = vperm.xlu1 %2550, %v502_v35  }
0x247c   :  { %2552 = vset.pattern.permute.xlu1 %v2776_v1 }
0x247d   :  { %515 = vperm.xlu1 %2552, %v502_v35  }
0x2481   :  { %2553 = vset.pattern.permute.xlu1 %v2778_v13  ;;  %v2736_v13 = vld [vmem:[%s4061_s1 + $0x8] ss:$0 sm:$0xff] }
0x2482   :  { %520 = vperm.xlu1 %2553, %v502_v35  }
0x2486   :  { %2554 = vset.pattern.permute.xlu1 %v2783_v43 }
0x2490   :  { %v2088_v50 = vpop.permute.xlu0 %2087  ;;  %v2093_v47 = vpop.permute.xlu1 %2092 }
0x2491   :  { %v2161_v49 = vmul.f32 %v2734_v19, %v2088_v50  ;;  %v2162_v41 = vmul.f32 %v2735_v38, %v2093_v47  ;;  %v2090_v33 = vmul.f32 %v3715_v39, %v2088_v50  ;;  %v2095_v26 = vmul.f32 %v3721_v3, %v2093_v47  ;;  %v2740_v3 = vld [vmem:[%s4061_s1 + $0x1] ss:$0 sm:$0xff] }
0x2493   :  { %v2165_v51 = vadd.f32 %v2162_v41, %v2161_v49  ;;  %v2106_v52 = vadd.f32 %v2095_v26, %v2090_v33 }
0x2495   :  { %v2103_v60 = vpop.permute.xlu0 %2102  ;;  %v2098_v1 = vpop.permute.xlu1 %2097 }
0x2496   :  { %v2164_v42 = vmul.f32 %v2736_v13, %v2103_v60  ;;  %v2163_v34 = vmul.f32 %v2737_v24, %v2098_v1  ;;  %v2105_v31 = vmul.f32 %v3703_v30, %v2103_v60  ;;  %v2100_v21 = vmul.f32 %v3709_v18, %v2098_v1  ;;  %v2739_v18 = vld [vmem:[%s4061_s1] ss:$0 sm:$0xff] }
0x2498   :  { %v2166_v61 = vadd.f32 %v2164_v42, %v2163_v34  ;;  %v2107_v36 = vadd.f32 %v2105_v31, %v2100_v21 }
0x249a   :  { %v2167_v29 = vadd.f32 %v2166_v61, %v2165_v51  ;;  %v2108_v22 = vadd.f32 %v2107_v36, %v2106_v52  ;;  %v511_v30 = vpop.permute.xlu0 %510  ;;  %v2744_v61 = vld [vmem:[%s4061_s1 + $0x10] ss:$0 sm:$0xff] }
0x249c   :  { %v2168_v10 = vadd.f32 %v2738_v7, %v2167_v29  ;;  %v2109_v9 = vadd.f32 %v3727_v28, %v2108_v22  ;;  %v513_v28 = vmul.f32 %v2740_v3, %v511_v30  ;;  %v2745_v7 = vld [vmem:[%s4061_s1 + $0xf] ss:$0 sm:$0xff]  ;;  %v2748_v22 = vld [vmem:[%s4061_s1 + $0x13] ss:$0 sm:$0xff] }
0x249e   :  { %2172 = vrot.lane.b32.xlu0 %v2168_v10, %s2780_s21  ;;  %v2135_v27 = vadd.f32 %v2134_v14, %v2109_v9 }
0x24a0   :  { %2682 = vtanh.f32 %v2135_v27 }
0x24ad   :  { %v2683_v46 = vpop.eup %2682 }
0x24ae   :  { %v2148_v50 = vmul.f32 0.5, %v2683_v46 }
0x24b0   :  { %v2149_v47 = vadd.f32 0.5, %v2148_v50  ;;  %v2358_v50 = vld [vmem:[%s4061_s1 + $0x15] ss:$0 sm:$0xff] }
0x24e6   :  { %v2139_v32 = vpop.permute.xlu1 %2138 }
0x24e7   :  { %v2141_v16 = vmul.f32 %v2683_v46, %v2139_v32 }
0x24e9   :  { %2143 = vrot.lane.b32.xlu1 %v2141_v16, %s2781_s4 }
0x24f3   :  { %v506_v23 = vpop.permute.xlu1 %505 }
0x24f4   :  { %v508_v39 = vmul.f32 %v2739_v18, %v506_v23  ;;  %v2749_v23 = vld [vmem:[%s4061_s1 + $0xd] ss:$0 sm:$0xff] }
0x24f6   :  { %v524_v45 = vadd.f32 %v513_v28, %v508_v39  ;;  %v2751_v39 = vld [vmem:[%s4061_s1 + $0xa] ss:$0 sm:$0xff]  ;;  %v2752_v28 = vld [vmem:[%s4061_s1 + $0xb] ss:$0 sm:$0xff] }
0x24f8   :  { %v516_v17 = vpop.permute.xlu1 %515 }
0x24f9   :  { %v518_v5 = vmul.f32 %v2741_v6, %v516_v17  ;;  %v2750_v17 = vld [vmem:[%s4061_s1 + $0xc] ss:$0 sm:$0xff] }
0x24fd   :  { %v521_v55 = vpop.permute.xlu1 %520 }
0x24fe   :  { %v523_v53 = vmul.f32 %v2742_v56, %v521_v55  ;;  %v2753_v56 = vld [vmem:[%s4061_s1 + $0xe] ss:$0 sm:$0xff] }
0x2500   :  { %v525_v25 = vadd.f32 %v523_v53, %v518_v5 }
0x2502   :  { %v526_v20 = vadd.f32 %v525_v25, %v524_v45 }
0x2504   :  { %v527_v35 = vadd.f32 %v2743_v12, %v526_v20 }
0x2506   :  { %v2169_v57 = vadd.f32 %v2168_v10, %v527_v35 }
0x2508   :  { %2684 = vtanh.f32 %v2169_v57 }
0x2510   :  { %v2173_v40 = vpop.permute.xlu0 %2172 }
0x2515   :  { %v2685_v15 = vpop.eup %2684 }
0x2516   :  { %v2175_v62 = vmul.f32 %v2685_v15, %v2173_v40  ;;  %v2182_v38 = vmul.f32 0.5, %v2685_v15 }
0x2518   :  { %2177 = vrot.lane.b32.xlu0 %v2175_v62, %s2781_s4  ;;  %v2183_v41 = vadd.f32 0.5, %v2182_v38 }
0x255b   :  { %v2144_v4 = vpop.permute.xlu1 %2143 }
0x255c   :  { %v2146_v59 = vadd.f32 %v2144_v4, %v2135_v27 }
0x255e   :  { %2686 = vtanh.f32 %v2146_v59 }
0x256b   :  { %v2687_v11 = vpop.eup %2686 }
0x256c   :  { %v2150_v2 = vsub.f32 %v3914_v48, %v2687_v11 }
0x256e   :  { %2152 = vrot.lane.b32.xlu1 %v2150_v2, %s2782_s5 }
0x258a   :  { %v2178_v58 = vpop.permute.xlu0 %2177 }
0x258b   :  { %v2180_v54 = vadd.f32 %v2178_v58, %v2169_v57 }
0x258d   :  { %2688 = vtanh.f32 %v2180_v54 }
0x259a   :  { %v2689_v63 = vpop.eup %2688 }
0x259b   :  { %v2184_v14 = vsub.f32 %v3924_v37, %v2689_v63 }
0x259d   :  { %2186 = vrot.lane.b32.xlu0 %v2184_v14, %s2782_s5 }
0x25e0   :  { %v2153_v19 = vpop.permute.xlu1 %2152 }
0x25e1   :  { %v2155_v49 = vmul.f32 %v2153_v19, %v2149_v47  ;;  %v2357_v47 = vld [vmem:[%s4061_s1 + $0x14] ss:$0 sm:$0xff]  ;;  %v2359_v19 = vld [vmem:[%s4061_s1 + $0x16] ss:$0 sm:$0xff] }
0x25e3   :  { %2157 = vrot.lane.b32.xlu1 %v2155_v49, %s2785_s6 }
0x260f   :  { %v2187_v60 = vpop.permute.xlu0 %2186 }
0x2610   :  { %v2189_v48 = vmul.f32 %v2187_v60, %v2183_v41 }
0x2612   :  { %2191 = vrot.lane.b32.xlu0 %v2189_v48, %s2785_s6 }
0x2655   :  { %v2158_v1 = vpop.permute.xlu1 %2157 }
0x2656   :  { %v3991_v13 = vadd.f32 %v2687_v11, %v2158_v1 }
0x2658   :  { %2227 = vperm.xlu0 %2555, %v3991_v13   ;;  %2222 = vperm.xlu1 %2554, %v3991_v13  }
0x265c   :  { %2556 = vset.pattern.permute.xlu1 %v2786_v0  ;;  %2558 = vset.pattern.permute.xlu0 %v2783_v43 }
0x265d   :  { %2232 = vperm.xlu1 %2556, %v3991_v13  }
0x2661   :  { %2557 = vset.pattern.permute.xlu1 %v2787_v8 }
0x2662   :  { %2237 = vperm.xlu1 %2557, %v3991_v13  }
0x2666   :  { %2559 = vset.pattern.permute.xlu1 %v2784_v44 }
0x2684   :  { %v2192_v37 = vpop.permute.xlu0 %2191 }
0x2685   :  { %v2194_v42 = vadd.f32 %v2689_v63, %v2192_v37  ;;  %v2356_v37 = vld [vmem:[%s4061_s1 + $0x18] ss:$0 sm:$0xff] }
0x2687   :  { %2197 = vperm.xlu0 %2558, %v2194_v42   ;;  %2202 = vperm.xlu1 %2559, %v2194_v42  }
0x268b   :  { %2561 = vset.pattern.permute.xlu0 %v2787_v8  ;;  %2560 = vset.pattern.permute.xlu1 %v2786_v0 }
0x268c   :  { %2212 = vperm.xlu0 %2561, %v2194_v42   ;;  %2207 = vperm.xlu1 %2560, %v2194_v42  }
0x2690   :  { %2562 = vset.pattern.permute.xlu0 %v2783_v43  ;;  %2563 = vset.pattern.permute.xlu1 %v2784_v44  ;;  %v2746_v43 = vld [vmem:[%s4061_s1 + $0x11] ss:$0 sm:$0xff]  ;;  %v2747_v44 = vld [vmem:[%s4061_s1 + $0x12] ss:$0 sm:$0xff] }
0x26d3   :  { %v2223_v24 = vpop.permute.xlu1 %2222  ;;  %v2228_v51 = vpop.permute.xlu0 %2227 }
0x26d4   :  { %v2230_v29 = vmul.f32 %v2744_v61, %v2228_v51  ;;  %v2225_v10 = vmul.f32 %v2745_v7, %v2223_v24 }
0x26d6   :  { %v2241_v26 = vadd.f32 %v2230_v29, %v2225_v10 }
0x26d8   :  { %v2233_v34 = vpop.permute.xlu1 %2232 }
0x26d9   :  { %v2235_v21 = vmul.f32 %v2746_v43, %v2233_v34 }
0x26dd   :  { %v2238_v31 = vpop.permute.xlu1 %2237 }
0x26de   :  { %v2240_v33 = vmul.f32 %v2747_v44, %v2238_v31 }
0x26e0   :  { %v2242_v36 = vadd.f32 %v2240_v33, %v2235_v21 }
0x26e2   :  { %v2243_v52 = vadd.f32 %v2242_v36, %v2241_v26 }
0x26e4   :  { %v2244_v9 = vadd.f32 %v2748_v22, %v2243_v52 }
0x26e6   :  { %2248 = vrot.lane.b32.xlu1 %v2244_v9, %s2780_s21 }
0x2702   :  { %v2198_v27 = vpop.permute.xlu0 %2197  ;;  %v2203_v46 = vpop.permute.xlu1 %2202 }
0x2703   :  { %v2200_v3 = vmul.f32 %v2751_v39, %v2198_v27  ;;  %v2205_v6 = vmul.f32 %v2752_v28, %v2203_v46 }
0x2705   :  { %v2216_v55 = vadd.f32 %v2205_v6, %v2200_v3 }
0x2707   :  { %v2213_v32 = vpop.permute.xlu0 %2212  ;;  %v2208_v16 = vpop.permute.xlu1 %2207 }
0x2708   :  { %v2215_v30 = vmul.f32 %v2749_v23, %v2213_v32  ;;  %v2210_v18 = vmul.f32 %v2750_v17, %v2208_v16 }
0x270a   :  { %v2217_v5 = vadd.f32 %v2215_v30, %v2210_v18 }
0x270c   :  { %v2218_v45 = vadd.f32 %v2217_v5, %v2216_v55 }
0x270e   :  { %v2219_v53 = vadd.f32 %v2753_v56, %v2218_v45 }
0x2710   :  { %v2245_v25 = vadd.f32 %v2244_v9, %v2219_v53 }
0x2712   :  { %2690 = vtanh.f32 %v2245_v25 }
0x271f   :  { %v2691_v20 = vpop.eup %2690 }
0x2720   :  { %v2258_v4 = vmul.f32 0.5, %v2691_v20 }
0x2722   :  { %v2259_v59 = vadd.f32 0.5, %v2258_v4 }
0x2758   :  { %v2249_v12 = vpop.permute.xlu1 %2248 }
0x2759   :  { %v2251_v35 = vmul.f32 %v2691_v20, %v2249_v12 }
0x275b   :  { %2253 = vrot.lane.b32.xlu1 %v2251_v35, %s2781_s4 }
0x27cd   :  { %v2254_v57 = vpop.permute.xlu1 %2253 }
0x27ce   :  { %v2256_v15 = vadd.f32 %v2254_v57, %v2245_v25 }
0x27d0   :  { %2692 = vtanh.f32 %v2256_v15 }
0x27dd   :  { %v2693_v40 = vpop.eup %2692 }
0x27de   :  { %v2260_v62 = vsub.f32 %v3991_v13, %v2693_v40 }
0x27e0   :  { %2262 = vrot.lane.b32.xlu0 %v2260_v62, %s2782_s5 }
0x2852   :  { %v2263_v11 = vpop.permute.xlu0 %2262 }
0x2853   :  { %v2265_v2 = vmul.f32 %v2263_v11, %v2259_v59 }
0x2855   :  { %2267 = vrot.lane.b32.xlu1 %v2265_v2, %s2785_s6 }
0x28c7   :  { %v2268_v58 = vpop.permute.xlu1 %2267 }
0x28c8   :  { %v2270_v54 = vadd.f32 %v2693_v40, %v2268_v58 }
0x28ca   :  { %2303 = vperm.xlu1 %2563, %v2270_v54   ;;  %2298 = vperm.xlu0 %2562, %v2270_v54  }
0x28ce   :  { %2564 = vset.pattern.permute.xlu1 %v2786_v0  ;;  %2565 = vset.pattern.permute.xlu0 %v2787_v8  ;;  %v2360_v0 = vld [vmem:[%s4061_s1 + $0x17] ss:$0 sm:$0xff] }
0x28cf   :  { %2308 = vperm.xlu1 %2564, %v2270_v54   ;;  %2313 = vperm.xlu0 %2565, %v2270_v54  }
0x2945   :  { %v2304_v63 = vpop.permute.xlu1 %2303  ;;  %v2299_v14 = vpop.permute.xlu0 %2298 }
0x2946   :  { %v2306_v8 = vmul.f32 %v2358_v50, %v2304_v63  ;;  %v2301_v49 = vmul.f32 %v2357_v47, %v2299_v14 }
0x2948   :  { %v2317_v1 = vadd.f32 %v2306_v8, %v2301_v49 }
0x294a   :  { %v2309_v38 = vpop.permute.xlu1 %2308  ;;  %v2314_v41 = vpop.permute.xlu0 %2313 }
0x294b   :  { %v2311_v60 = vmul.f32 %v2359_v19, %v2309_v38  ;;  %v2316_v48 = vmul.f32 %v2360_v0, %v2314_v41 }
0x294d   :  { %v2318_v13 = vadd.f32 %v2316_v48, %v2311_v60 }
0x294f   :  { %v2319_v42 = vadd.f32 %v2318_v13, %v2317_v1 }
0x2951   :  { %v2320_v24 = vadd.f32 %v2356_v37, %v2319_v42 }
0x2953   :  { %2321 = vst [vmem:[#allocation2] sm:$0xff] %v2320_v24 }
0x2954   :  { %2765 = shalt.err (!%p2762_p4)
}
0x2955   :  { %2331 = dma.vmem_to_hbm [thread:$0]  %s2329_s14, 128, %s4062_s2, [#allocation3]  }
0x2956   :  { %2774 = dma.done.wait [#allocation3], 128  }
0x2957   :  { %2775 = vsyncadd [#allocation3], 4294967168 }
0x2958   :  { %2335 = vsyncpa [#allocation3], 1 }

</bundles_post_ra>
